<compile_context>
chip_gen: v5e
topology: v5e:2x2
jax: 0.10.0
libtpu: 0.0.40
codegen_flags: <defaults>
</compile_context>

<pallas_src>
import functools
import numpy as np
import jax
import jax.numpy as jnp
from jax import lax
from jax.experimental import pallas as pl
from jax.experimental.pallas import tpu as pltpu


# ----------------------------- fused inception kernel -----------------------------

def _inception_kernel(cols_ref, wconv_ref, wpool_ref, bconv_ref, bpool_ref, out_ref,
                      *, cin, width):
    """One fused InceptionBlock on an im2col'd row tile.

    cols_ref : (Mblk, 5*cin)   5 width-taps (offsets -2..+2, zero padded), channels-last.
    wconv_ref: (5*cin, C1+C2+C3) block-stacked 1x1/1x3/1x5 conv weights -> ONE matmul.
    wpool_ref: (cin, C4)       1x1 conv applied to the (1,3) max-pool branch.
    out_ref  : (Mblk, C1+C2+C3+C4) with bias + ReLU applied.
    """
    cols = cols_ref[...]
    # branches 1-3 (1x1, 1x3, 1x5 convs) as a single matmul on the MXU
    conv = jnp.dot(cols, wconv_ref[...], preferred_element_type=jnp.float32)

    # branch 4: MaxPool2d((1,3), stride=1, pad=(0,1)) (implicit -inf pad) then 1x1 conv
    x0 = cols_ref[:, 2 * cin:3 * cin]      # tap at w
    xm1 = cols_ref[:, 1 * cin:2 * cin]     # tap at w-1
    xp1 = cols_ref[:, 3 * cin:4 * cin]     # tap at w+1
    m = cols_ref.shape[0]
    row = lax.broadcasted_iota(jnp.int32, (m, cin), 0)
    if (width & (width - 1)) == 0:         # widths here are powers of two
        wpos = row & (width - 1)
    else:
        wpos = row % width
    left = jnp.where(wpos > 0, xm1, x0)            # drop zero-pad at w == 0
    right = jnp.where(wpos < width - 1, xp1, x0)   # drop zero-pad at w == W-1
    pooled = jnp.maximum(x0, jnp.maximum(left, right))
    poolc = jnp.dot(pooled, wpool_ref[...], preferred_element_type=jnp.float32)

    c123 = conv.shape[-1]
    out_ref[:, :c123] = jnp.maximum(conv + bconv_ref[...], 0.0)
    out_ref[:, c123:] = jnp.maximum(poolc + bpool_ref[...], 0.0)


def _tap_matrix(w):
    """(Cout, Cin, 1, k) conv weight -> (k*Cin, Cout) matmul matrix (tap-major rows)."""
    cout, cin, _, k = w.shape
    return jnp.transpose(w[:, :, 0, :], (2, 1, 0)).reshape(k * cin, cout).astype(jnp.float32)


def fuse_inception_weights(block_params):
    (w1, b1), (w2, b2), (w3, b3), (w4, b4) = block_params
    cin = w1.shape[1]
    c1, c2 = w1.shape[0], w2.shape[0]
    wconv = jnp.zeros((5 * cin, c1 + c2 + w3.shape[0]), jnp.float32)
    wconv = wconv.at[2 * cin:3 * cin, 0:c1].set(_tap_matrix(w1))        # 1x1 (center tap)
    wconv = wconv.at[1 * cin:4 * cin, c1:c1 + c2].set(_tap_matrix(w2))  # 1x3 (taps -1..+1)
    wconv = wconv.at[:, c1 + c2:].set(_tap_matrix(w3))                  # 1x5 (all taps)
    wpool = _tap_matrix(w4)                                             # (cin, c4)
    bconv = jnp.concatenate([b1, b2, b3]).reshape(1, -1).astype(jnp.float32)
    bpool = b4.reshape(1, -1).astype(jnp.float32)
    return wconv, wpool, bconv, bpool


def run_inception(x_nhwc, block_params):
    """Fused InceptionBlock, channels-last in/out. ONE pallas_call per block."""
    wconv, wpool, bconv, bpool = fuse_inception_weights(block_params)
    B, H, W, Cin = x_nhwc.shape
    M = B * H * W
    C123, C4 = wconv.shape[-1], wpool.shape[-1]
    Ctot = C123 + C4

    # im2col for the widest (1,5) kernel: 5 shifted taps of the zero-padded width axis (XLA glue).
    xp = jnp.pad(x_nhwc.astype(jnp.float32), ((0, 0), (0, 0), (2, 2), (0, 0)))
    cols = jnp.concatenate([xp[:, :, t:t + W, :] for t in range(5)], axis=-1)
    cols = cols.reshape(M, 5 * Cin)

    # leading "parallel" grid axis (2 row chunks) so v7x's second TensorCore can be used;
    # chunk boundaries must stay multiples of 8 (sublane) and of W (pool-mask indexing).
    nchunks = 2 if (M % 2 == 0 and (M // 2) % 8 == 0 and (M // 2) % W == 0) else 1
    mb = M // nchunks

    out = pl.pallas_call(
        functools.partial(_inception_kernel, cin=Cin, width=W),
        grid_spec=pltpu.PrefetchScalarGridSpec(
            num_scalar_prefetch=0,
            grid=(nchunks,),
            in_specs=[
                pl.BlockSpec((mb, 5 * Cin), lambda i: (i, 0)),
                pl.BlockSpec((5 * Cin, C123), lambda i: (0, 0)),
                pl.BlockSpec((Cin, C4), lambda i: (0, 0)),
                pl.BlockSpec((1, C123), lambda i: (0, 0)),
                pl.BlockSpec((1, C4), lambda i: (0, 0)),
            ],
            out_specs=pl.BlockSpec((mb, Ctot), lambda i: (i, 0)),
        ),
        out_shape=jax.ShapeDtypeStruct((M, Ctot), jnp.float32),
        compiler_params=pltpu.CompilerParams(dimension_semantics=("parallel",)),
    )(cols, wconv, wpool, bconv, bpool)
    return out.reshape(B, H, W, Ctot)


# --------------------------------- GRU kernel ---------------------------------

def _sigmoid(x):
    return 1.0 / (1.0 + jnp.exp(-x))


def _gru_kernel(gi_ref, whh_ref, bhh_ref, out_ref, *, hidden, time):
    """Single-launch GRU recurrence (h0 = zeros). Input gates gi = x @ W_ih^T + b_ih are
    precomputed (hoisted out of the serial loop); gi_ref is time-major (T, B, 3H)."""
    batch = out_ref.shape[1]
    h = jnp.zeros((batch, hidden), jnp.float32)
    for t in range(time):                          # T is small & static -> unrolled
        gi = gi_ref[t]                             # (B, 3H)
        gh = jnp.dot(h, whh_ref[...], preferred_element_type=jnp.float32) + bhh_ref[...]
        i_r, i_z, i_n = gi[:, :hidden], gi[:, hidden:2 * hidden], gi[:, 2 * hidden:3 * hidden]
        h_r, h_z, h_n = gh[:, :hidden], gh[:, hidden:2 * hidden], gh[:, 2 * hidden:3 * hidden]
        r = _sigmoid(i_r + h_r)
        z = _sigmoid(i_z + h_z)
        n = jnp.tanh(i_n + r * h_n)
        h = (1.0 - z) * n + z * h
        out_ref[t] = h.astype(out_ref.dtype)


def pallas_gru(gi_btg, w_hh, b_hh, hidden):
    """PyTorch-semantics single-layer GRU (batch_first, h0 = zeros) given precomputed input
    gates gi = x @ W_ih^T + b_ih of shape (B, T, 3H). Returns all hidden states (B, T, H)."""
    B, T, _ = gi_btg.shape
    gi_tm = jnp.transpose(gi_btg, (1, 0, 2)).astype(jnp.float32)   # time-major (T, B, 3H)
    out = pl.pallas_call(
        functools.partial(_gru_kernel, hidden=hidden, time=T),
        out_shape=jax.ShapeDtypeStruct((T, B, hidden), jnp.float32),
    )(gi_tm, w_hh.T.astype(jnp.float32), b_hh.reshape(1, -1).astype(jnp.float32))
    return jnp.transpose(out, (1, 0, 2))           # (B, T, H)


# ------------------------------- XLA glue helpers -------------------------------

def maxpool_1x2_nhwc(x):
    """MaxPool2d((1, 2)), channels-last."""
    B, H, W, C = x.shape
    return jnp.max(x.reshape(B, H, W // 2, 2, C), axis=3)


def bilinear_w_matrix(w_in, w_out):
    """Width-interp matrix matching F.interpolate(mode='bilinear', align_corners=True)
    when the output height equals the input height (identity height map)."""
    M = np.zeros((w_in, w_out), np.float32)
    if w_out == 1:
        M[0, 0] = 1.0
        return jnp.asarray(M)
    for j in range(w_out):
        pos = j * (w_in - 1) / (w_out - 1)
        lo = int(np.floor(pos))
        hi = min(lo + 1, w_in - 1)
        frac = pos - lo
        M[lo, j] += 1.0 - frac
        M[hi, j] += frac
    return jnp.asarray(M)


# ----------------------------- parameter init -----------------------------

def init_inception_params(key, in_channels, nk):
    ks = [1, 3, 5, 1]
    params = []
    for cout, k in zip(nk, ks):
        key, k1, k2 = jax.random.split(key, 3)
        fan_out = cout * 1 * k  # kaiming_normal_(mode='fan_out', nonlinearity='relu')
        w = jax.random.normal(k1, (cout, in_channels, 1, k), jnp.float32) * np.sqrt(2.0 / fan_out)
        b = jax.random.normal(k2, (cout,), jnp.float32) * 0.01
        params.append((w, b))
    return key, params


def init_cdck2_params(key, prediction_timestep, hidden_size, z_len):
    params = {}
    enc = []
    for cin, nk in [(1, [8, 16, 4, 4]), (32, [8, 16, 4, 4]), (32, [4, 8, 2, 2]), (16, [2, 4, 1, 1])]:
        key, p = init_inception_params(key, cin, nk)
        enc.append(p)
    params['encoder'] = enc
    key, p = init_inception_params(key, 8, [2, 4, 1, 1])
    params['after1'] = p
    key, k1 = jax.random.split(key)
    params['after2_w'] = jax.random.normal(k1, (1, 8, 1, 1), jnp.float32) * np.sqrt(2.0)  # bias=False
    key, k1, k2, k3, k4 = jax.random.split(key, 5)
    params['gru_w_ih'] = jax.random.normal(k1, (3 * hidden_size, z_len), jnp.float32) * np.sqrt(2.0 / (3 * hidden_size))
    params['gru_w_hh'] = jax.random.normal(k2, (3 * hidden_size, hidden_size), jnp.float32) * np.sqrt(2.0 / (3 * hidden_size))
    params['gru_b_ih'] = jax.random.uniform(k3, (3 * hidden_size,), jnp.float32, -0.1, 0.1)
    params['gru_b_hh'] = jax.random.uniform(k4, (3 * hidden_size,), jnp.float32, -0.1, 0.1)
    # Wk prediction heads exist in __init__ but are NOT used in forward(); kept for fidelity.
    wk = []
    for _ in range(prediction_timestep):
        key, k1 = jax.random.split(key)
        wk.append((jax.random.normal(k1, (z_len, hidden_size), jnp.float32) * np.sqrt(2.0 / z_len),
                   jnp.zeros((z_len,), jnp.float32)))
    params['Wk'] = wk
    return params


# ------------------------------- forward pass -------------------------------

def cdck2_forward(params, x_input, x_predicted, *, hidden_size, z_len):
    B = x_input.shape[0]
    # run x_input and x_predicted through the shared encoder/post path in one batched pass
    x = jnp.concatenate([x_input, x_predicted], axis=0).astype(jnp.float32)   # (2B,1,H,W) NCHW
    x = jnp.transpose(x, (0, 2, 3, 1))                                        # channels-last

    enc = params['encoder']
    for i, blk in enumerate(enc):
        x = run_inception(x, blk)                    # fused InceptionBlock (1 launch)
        if i < len(enc) - 1:
            x = maxpool_1x2_nhwc(x)                  # MaxPool2d((1,2)) between blocks

    # post path: interp -> InceptionBlock -> interp -> 1x1 conv (no bias)
    M1 = bilinear_w_matrix(x.shape[2], z_len // 2)
    x = jnp.einsum('bhwc,wv->bhvc', x, M1)           # ~100 FLOPs -> XLA glue, not a launch
    x = run_inception(x, params['after1'])
    M2 = bilinear_w_matrix(x.shape[2], z_len)
    x = jnp.einsum('bhwc,wv->bhvc', x, M2)
    wa2 = params['after2_w'][0, :, 0, 0]             # (8,)
    z_final = jnp.einsum('bhvc,c->bhv', x, wa2)      # (2B, H, z_len) == squeeze(1)

    z_in, z_out = z_final[:B], z_final[B:]

    # GRU input projection hoisted out of the serial recurrence (fuses with the glue above)
    gi = jnp.einsum('btf,gf->btg', z_in, params['gru_w_ih']) + params['gru_b_ih'][None, None, :]
    all_hiddens = pallas_gru(gi, params['gru_w_hh'], params['gru_b_hh'], hidden_size)
    c_t = all_hiddens[:, -1, :].reshape(B, hidden_size)   # last hidden == hidden_out
    return c_t, all_hiddens, z_out


# ----------------------------------- main -----------------------------------

if __name__ == "__main__":
    prediction_timestep = 3
    hidden_size = 16
    z_len = 8
    batch = 2
    seq_len = 8        # conv "height" (preserved through the encoder; GRU time axis)
    num_features = 16  # conv "width"; halved 3x by the (1,2) maxpools -> 2

    key = jax.random.PRNGKey(0)
    kp, kx1, kx2 = jax.random.split(key, 3)
    params = init_cdck2_params(kp, prediction_timestep, hidden_size, z_len)

    x_input = jax.random.normal(kx1, (batch, 1, seq_len, num_features), jnp.float32)
    x_predicted = jax.random.normal(kx2, (batch, 1, seq_len, num_features), jnp.float32)

    fwd = jax.jit(functools.partial(cdck2_forward, hidden_size=hidden_size, z_len=z_len))
    c_t, all_hiddens, z_out = fwd(params, x_input, x_predicted)
    jax.block_until_ready((c_t, all_hiddens, z_out))

    assert c_t.shape == (batch, hidden_size)
    assert all_hiddens.shape == (batch, seq_len, hidden_size)
    assert z_out.shape == (batch, seq_len, z_len)
    assert bool(jnp.all(jnp.isfinite(c_t))) and bool(jnp.all(jnp.isfinite(z_out)))
    print("KERNEL_OK")
</pallas_src>

<mosaic_0001>
module attributes {stable_mosaic.version = 11 : i64} {
  func.func @_inception_kernel(%arg0: i32, %arg1: memref<256x5xf32, #tpu.memory_space<vmem>>, %arg2: memref<5x28xf32, #tpu.memory_space<vmem>>, %arg3: memref<1x4xf32, #tpu.memory_space<vmem>>, %arg4: memref<1x28xf32, #tpu.memory_space<vmem>>, %arg5: memref<1x4xf32, #tpu.memory_space<vmem>>, %arg6: memref<256x32xf32, #tpu.memory_space<vmem>>) attributes {dimension_semantics = [#tpu.dimension_semantics<parallel>], iteration_bounds = array<i64: 2>, scalar_prefetch = 0 : i64, scratch_operands = 0 : i64, tpu.core_type = #tpu.core_type<tc>, window_params = [{transform_indices = @transform_0, window_bounds = array<i64: 256, 5>}, {pipeline_mode = #tpu.pipeline_mode<synchronous>, transform_indices = @transform_1, window_bounds = array<i64: 5, 28>}, {pipeline_mode = #tpu.pipeline_mode<synchronous>, transform_indices = @transform_2, window_bounds = array<i64: 1, 4>}, {pipeline_mode = #tpu.pipeline_mode<synchronous>, transform_indices = @transform_3, window_bounds = array<i64: 1, 28>}, {pipeline_mode = #tpu.pipeline_mode<synchronous>, transform_indices = @transform_4, window_bounds = array<i64: 1, 4>}, {transform_indices = @transform_5, window_bounds = array<i64: 256, 32>}]} {
    %c0 = arith.constant 0 : index
    %c0_0 = arith.constant 0 : index
    %0 = vector.load %arg1[%c0, %c0_0] : memref<256x5xf32, #tpu.memory_space<vmem>>, vector<256x5xf32>
    %c0_1 = arith.constant 0 : index
    %c0_2 = arith.constant 0 : index
    %1 = vector.load %arg2[%c0_1, %c0_2] : memref<5x28xf32, #tpu.memory_space<vmem>>, vector<5x28xf32>
    %cst = arith.constant dense<0.000000e+00> : vector<256x28xf32>
    %2 = tpu.matmul %0, %1, %cst {dimension_numbers = #tpu.dot_dimension_numbers<[1], [0], [0], [1], [0, 0, 1, 1], [], []>} : vector<256x5xf32>, vector<5x28xf32>, vector<256x28xf32> -> vector<256x28xf32>
    %c0_3 = arith.constant 0 : index
    %c2 = arith.constant 2 : index
    %3 = vector.load %arg1[%c0_3, %c2] : memref<256x5xf32, #tpu.memory_space<vmem>>, vector<256x1xf32>
    %c0_4 = arith.constant 0 : index
    %c1 = arith.constant 1 : index
    %4 = vector.load %arg1[%c0_4, %c1] : memref<256x5xf32, #tpu.memory_space<vmem>>, vector<256x1xf32>
    %c0_5 = arith.constant 0 : index
    %c3 = arith.constant 3 : index
    %5 = vector.load %arg1[%c0_5, %c3] : memref<256x5xf32, #tpu.memory_space<vmem>>, vector<256x1xf32>
    %6 = tpu.iota {dimensions = array<i32: 0>} : vector<256x1xi32>
    %c15_i32 = arith.constant 15 : i32
    %7 = vector.broadcast %c15_i32 : i32 to vector<256x1xi32>
    %8 = arith.andi %6, %7 : vector<256x1xi32>
    %c0_i32 = arith.constant 0 : i32
    %9 = vector.broadcast %c0_i32 : i32 to vector<256x1xi32>
    %10 = arith.cmpi sgt, %8, %9 : vector<256x1xi32>
    %11 = arith.select %10, %4, %3 : vector<256x1xi1>, vector<256x1xf32>
    %c15_i32_6 = arith.constant 15 : i32
    %12 = vector.broadcast %c15_i32_6 : i32 to vector<256x1xi32>
    %13 = arith.cmpi slt, %8, %12 : vector<256x1xi32>
    %14 = arith.select %13, %5, %3 : vector<256x1xi1>, vector<256x1xf32>
    %15 = arith.maximumf %11, %14 : vector<256x1xf32>
    %16 = arith.maximumf %3, %15 : vector<256x1xf32>
    %c0_7 = arith.constant 0 : index
    %c0_8 = arith.constant 0 : index
    %17 = vector.load %arg3[%c0_7, %c0_8] : memref<1x4xf32, #tpu.memory_space<vmem>>, vector<1x4xf32>
    %cst_9 = arith.constant dense<0.000000e+00> : vector<256x4xf32>
    %18 = tpu.matmul %16, %17, %cst_9 {dimension_numbers = #tpu.dot_dimension_numbers<[1], [0], [0], [1], [0, 0, 1, 1], [], []>} : vector<256x1xf32>, vector<1x4xf32>, vector<256x4xf32> -> vector<256x4xf32>
    %c0_10 = arith.constant 0 : index
    %c0_11 = arith.constant 0 : index
    %19 = vector.load %arg4[%c0_10, %c0_11] : memref<1x28xf32, #tpu.memory_space<vmem>>, vector<1x28xf32>
    %20 = vector.broadcast %19 : vector<1x28xf32> to vector<256x28xf32>
    %21 = arith.addf %2, %20 : vector<256x28xf32>
    %cst_12 = arith.constant 0.000000e+00 : f32
    %22 = vector.broadcast %cst_12 : f32 to vector<256x28xf32>
    %23 = arith.maximumf %21, %22 : vector<256x28xf32>
    %c0_13 = arith.constant 0 : index
    %c0_14 = arith.constant 0 : index
    %24 = vector.load %arg6[%c0_13, %c0_14] : memref<256x32xf32, #tpu.memory_space<vmem>>, vector<256x28xf32>
    tpu.vector_store %arg6[%c0_13, %c0_14], %23 {strides = array<i32>} : memref<256x32xf32, #tpu.memory_space<vmem>>, vector<256x28xf32>,
    %c0_15 = arith.constant 0 : index
    %c0_16 = arith.constant 0 : index
    %25 = vector.load %arg5[%c0_15, %c0_16] : memref<1x4xf32, #tpu.memory_space<vmem>>, vector<1x4xf32>
    %26 = vector.broadcast %25 : vector<1x4xf32> to vector<256x4xf32>
    %27 = arith.addf %18, %26 : vector<256x4xf32>
    %cst_17 = arith.constant 0.000000e+00 : f32
    %28 = vector.broadcast %cst_17 : f32 to vector<256x4xf32>
    %29 = arith.maximumf %27, %28 : vector<256x4xf32>
    %c0_18 = arith.constant 0 : index
    %c28 = arith.constant 28 : index
    %30 = vector.load %arg6[%c0_18, %c28] : memref<256x32xf32, #tpu.memory_space<vmem>>, vector<256x4xf32>
    tpu.vector_store %arg6[%c0_18, %c28], %29 {strides = array<i32>} : memref<256x32xf32, #tpu.memory_space<vmem>>, vector<256x4xf32>,
    return
  }
  func.func @transform_0(%arg0: i32) -> (i32, i32) {
    %c0_i32 = arith.constant 0 : i32
    %c0_i32_0 = arith.constant 0 : i32
    return %arg0, %c0_i32 : i32, i32
  }
  func.func @transform_1(%arg0: i32) -> (i32, i32) {
    %c0_i32 = arith.constant 0 : i32
    %c0_i32_0 = arith.constant 0 : i32
    %c0_i32_1 = arith.constant 0 : i32
    return %c0_i32, %c0_i32_0 : i32, i32
  }
  func.func @transform_2(%arg0: i32) -> (i32, i32) {
    %c0_i32 = arith.constant 0 : i32
    %c0_i32_0 = arith.constant 0 : i32
    %c0_i32_1 = arith.constant 0 : i32
    return %c0_i32, %c0_i32_0 : i32, i32
  }
  func.func @transform_3(%arg0: i32) -> (i32, i32) {
    %c0_i32 = arith.constant 0 : i32
    %c0_i32_0 = arith.constant 0 : i32
    %c0_i32_1 = arith.constant 0 : i32
    return %c0_i32, %c0_i32_0 : i32, i32
  }
  func.func @transform_4(%arg0: i32) -> (i32, i32) {
    %c0_i32 = arith.constant 0 : i32
    %c0_i32_0 = arith.constant 0 : i32
    %c0_i32_1 = arith.constant 0 : i32
    return %c0_i32, %c0_i32_0 : i32, i32
  }
  func.func @transform_5(%arg0: i32) -> (i32, i32) {
    %c0_i32 = arith.constant 0 : i32
    %c0_i32_0 = arith.constant 0 : i32
    return %arg0, %c0_i32 : i32, i32
  }
}

module attributes {stable_mosaic.version = 11 : i64} {
  func.func @_inception_kernel(%arg0: i32, %arg1: memref<128x160xf32, #tpu.memory_space<vmem>>, %arg2: memref<160x28xf32, #tpu.memory_space<vmem>>, %arg3: memref<32x4xf32, #tpu.memory_space<vmem>>, %arg4: memref<1x28xf32, #tpu.memory_space<vmem>>, %arg5: memref<1x4xf32, #tpu.memory_space<vmem>>, %arg6: memref<128x32xf32, #tpu.memory_space<vmem>>) attributes {dimension_semantics = [#tpu.dimension_semantics<parallel>], iteration_bounds = array<i64: 2>, scalar_prefetch = 0 : i64, scratch_operands = 0 : i64, tpu.core_type = #tpu.core_type<tc>, window_params = [{transform_indices = @transform_0, window_bounds = array<i64: 128, 160>}, {pipeline_mode = #tpu.pipeline_mode<synchronous>, transform_indices = @transform_1, window_bounds = array<i64: 160, 28>}, {pipeline_mode = #tpu.pipeline_mode<synchronous>, transform_indices = @transform_2, window_bounds = array<i64: 32, 4>}, {pipeline_mode = #tpu.pipeline_mode<synchronous>, transform_indices = @transform_3, window_bounds = array<i64: 1, 28>}, {pipeline_mode = #tpu.pipeline_mode<synchronous>, transform_indices = @transform_4, window_bounds = array<i64: 1, 4>}, {transform_indices = @transform_5, window_bounds = array<i64: 128, 32>}]} {
    %c0 = arith.constant 0 : index
    %c0_0 = arith.constant 0 : index
    %0 = vector.load %arg1[%c0, %c0_0] : memref<128x160xf32, #tpu.memory_space<vmem>>, vector<128x160xf32>
    %c0_1 = arith.constant 0 : index
    %c0_2 = arith.constant 0 : index
    %1 = vector.load %arg2[%c0_1, %c0_2] : memref<160x28xf32, #tpu.memory_space<vmem>>, vector<160x28xf32>
    %cst = arith.constant dense<0.000000e+00> : vector<128x28xf32>
    %2 = tpu.matmul %0, %1, %cst {dimension_numbers = #tpu.dot_dimension_numbers<[1], [0], [0], [1], [0, 0, 1, 1], [], []>} : vector<128x160xf32>, vector<160x28xf32>, vector<128x28xf32> -> vector<128x28xf32>
    %c0_3 = arith.constant 0 : index
    %c64 = arith.constant 64 : index
    %3 = vector.load %arg1[%c0_3, %c64] : memref<128x160xf32, #tpu.memory_space<vmem>>, vector<128x32xf32>
    %c0_4 = arith.constant 0 : index
    %c32 = arith.constant 32 : index
    %4 = vector.load %arg1[%c0_4, %c32] : memref<128x160xf32, #tpu.memory_space<vmem>>, vector<128x32xf32>
    %c0_5 = arith.constant 0 : index
    %c96 = arith.constant 96 : index
    %5 = vector.load %arg1[%c0_5, %c96] : memref<128x160xf32, #tpu.memory_space<vmem>>, vector<128x32xf32>
    %6 = tpu.iota {dimensions = array<i32: 0>} : vector<128x32xi32>
    %c7_i32 = arith.constant 7 : i32
    %7 = vector.broadcast %c7_i32 : i32 to vector<128x32xi32>
    %8 = arith.andi %6, %7 : vector<128x32xi32>
    %c0_i32 = arith.constant 0 : i32
    %9 = vector.broadcast %c0_i32 : i32 to vector<128x32xi32>
    %10 = arith.cmpi sgt, %8, %9 : vector<128x32xi32>
    %11 = arith.select %10, %4, %3 : vector<128x32xi1>, vector<128x32xf32>
    %c7_i32_6 = arith.constant 7 : i32
    %12 = vector.broadcast %c7_i32_6 : i32 to vector<128x32xi32>
    %13 = arith.cmpi slt, %8, %12 : vector<128x32xi32>
    %14 = arith.select %13, %5, %3 : vector<128x32xi1>, vector<128x32xf32>
    %15 = arith.maximumf %11, %14 : vector<128x32xf32>
    %16 = arith.maximumf %3, %15 : vector<128x32xf32>
    %c0_7 = arith.constant 0 : index
    %c0_8 = arith.constant 0 : index
    %17 = vector.load %arg3[%c0_7, %c0_8] : memref<32x4xf32, #tpu.memory_space<vmem>>, vector<32x4xf32>
    %cst_9 = arith.constant dense<0.000000e+00> : vector<128x4xf32>
    %18 = tpu.matmul %16, %17, %cst_9 {dimension_numbers = #tpu.dot_dimension_numbers<[1], [0], [0], [1], [0, 0, 1, 1], [], []>} : vector<128x32xf32>, vector<32x4xf32>, vector<128x4xf32> -> vector<128x4xf32>
    %c0_10 = arith.constant 0 : index
    %c0_11 = arith.constant 0 : index
    %19 = vector.load %arg4[%c0_10, %c0_11] : memref<1x28xf32, #tpu.memory_space<vmem>>, vector<1x28xf32>
    %20 = vector.broadcast %19 : vector<1x28xf32> to vector<128x28xf32>
    %21 = arith.addf %2, %20 : vector<128x28xf32>
    %cst_12 = arith.constant 0.000000e+00 : f32
    %22 = vector.broadcast %cst_12 : f32 to vector<128x28xf32>
    %23 = arith.maximumf %21, %22 : vector<128x28xf32>
    %c0_13 = arith.constant 0 : index
    %c0_14 = arith.constant 0 : index
    %24 = vector.load %arg6[%c0_13, %c0_14] : memref<128x32xf32, #tpu.memory_space<vmem>>, vector<128x28xf32>
    tpu.vector_store %arg6[%c0_13, %c0_14], %23 {strides = array<i32>} : memref<128x32xf32, #tpu.memory_space<vmem>>, vector<128x28xf32>,
    %c0_15 = arith.constant 0 : index
    %c0_16 = arith.constant 0 : index
    %25 = vector.load %arg5[%c0_15, %c0_16] : memref<1x4xf32, #tpu.memory_space<vmem>>, vector<1x4xf32>
    %26 = vector.broadcast %25 : vector<1x4xf32> to vector<128x4xf32>
    %27 = arith.addf %18, %26 : vector<128x4xf32>
    %cst_17 = arith.constant 0.000000e+00 : f32
    %28 = vector.broadcast %cst_17 : f32 to vector<128x4xf32>
    %29 = arith.maximumf %27, %28 : vector<128x4xf32>
    %c0_18 = arith.constant 0 : index
    %c28 = arith.constant 28 : index
    %30 = vector.load %arg6[%c0_18, %c28] : memref<128x32xf32, #tpu.memory_space<vmem>>, vector<128x4xf32>
    tpu.vector_store %arg6[%c0_18, %c28], %29 {strides = array<i32>} : memref<128x32xf32, #tpu.memory_space<vmem>>, vector<128x4xf32>,
    return
  }
  func.func @transform_0(%arg0: i32) -> (i32, i32) {
    %c0_i32 = arith.constant 0 : i32
    %c0_i32_0 = arith.constant 0 : i32
    return %arg0, %c0_i32 : i32, i32
  }
  func.func @transform_1(%arg0: i32) -> (i32, i32) {
    %c0_i32 = arith.constant 0 : i32
    %c0_i32_0 = arith.constant 0 : i32
    %c0_i32_1 = arith.constant 0 : i32
    return %c0_i32, %c0_i32_0 : i32, i32
  }
  func.func @transform_2(%arg0: i32) -> (i32, i32) {
    %c0_i32 = arith.constant 0 : i32
    %c0_i32_0 = arith.constant 0 : i32
    %c0_i32_1 = arith.constant 0 : i32
    return %c0_i32, %c0_i32_0 : i32, i32
  }
  func.func @transform_3(%arg0: i32) -> (i32, i32) {
    %c0_i32 = arith.constant 0 : i32
    %c0_i32_0 = arith.constant 0 : i32
    %c0_i32_1 = arith.constant 0 : i32
    return %c0_i32, %c0_i32_0 : i32, i32
  }
  func.func @transform_4(%arg0: i32) -> (i32, i32) {
    %c0_i32 = arith.constant 0 : i32
    %c0_i32_0 = arith.constant 0 : i32
    %c0_i32_1 = arith.constant 0 : i32
    return %c0_i32, %c0_i32_0 : i32, i32
  }
  func.func @transform_5(%arg0: i32) -> (i32, i32) {
    %c0_i32 = arith.constant 0 : i32
    %c0_i32_0 = arith.constant 0 : i32
    return %arg0, %c0_i32 : i32, i32
  }
}

module attributes {stable_mosaic.version = 11 : i64} {
  func.func @_inception_kernel(%arg0: i32, %arg1: memref<64x160xf32, #tpu.memory_space<vmem>>, %arg2: memref<160x14xf32, #tpu.memory_space<vmem>>, %arg3: memref<32x2xf32, #tpu.memory_space<vmem>>, %arg4: memref<1x14xf32, #tpu.memory_space<vmem>>, %arg5: memref<1x2xf32, #tpu.memory_space<vmem>>, %arg6: memref<64x16xf32, #tpu.memory_space<vmem>>) attributes {dimension_semantics = [#tpu.dimension_semantics<parallel>], iteration_bounds = array<i64: 2>, scalar_prefetch = 0 : i64, scratch_operands = 0 : i64, tpu.core_type = #tpu.core_type<tc>, window_params = [{transform_indices = @transform_0, window_bounds = array<i64: 64, 160>}, {pipeline_mode = #tpu.pipeline_mode<synchronous>, transform_indices = @transform_1, window_bounds = array<i64: 160, 14>}, {pipeline_mode = #tpu.pipeline_mode<synchronous>, transform_indices = @transform_2, window_bounds = array<i64: 32, 2>}, {pipeline_mode = #tpu.pipeline_mode<synchronous>, transform_indices = @transform_3, window_bounds = array<i64: 1, 14>}, {pipeline_mode = #tpu.pipeline_mode<synchronous>, transform_indices = @transform_4, window_bounds = array<i64: 1, 2>}, {transform_indices = @transform_5, window_bounds = array<i64: 64, 16>}]} {
    %c0 = arith.constant 0 : index
    %c0_0 = arith.constant 0 : index
    %0 = vector.load %arg1[%c0, %c0_0] : memref<64x160xf32, #tpu.memory_space<vmem>>, vector<64x160xf32>
    %c0_1 = arith.constant 0 : index
    %c0_2 = arith.constant 0 : index
    %1 = vector.load %arg2[%c0_1, %c0_2] : memref<160x14xf32, #tpu.memory_space<vmem>>, vector<160x14xf32>
    %cst = arith.constant dense<0.000000e+00> : vector<64x14xf32>
    %2 = tpu.matmul %0, %1, %cst {dimension_numbers = #tpu.dot_dimension_numbers<[1], [0], [0], [1], [0, 0, 1, 1], [], []>} : vector<64x160xf32>, vector<160x14xf32>, vector<64x14xf32> -> vector<64x14xf32>
    %c0_3 = arith.constant 0 : index
    %c64 = arith.constant 64 : index
    %3 = vector.load %arg1[%c0_3, %c64] : memref<64x160xf32, #tpu.memory_space<vmem>>, vector<64x32xf32>
    %c0_4 = arith.constant 0 : index
    %c32 = arith.constant 32 : index
    %4 = vector.load %arg1[%c0_4, %c32] : memref<64x160xf32, #tpu.memory_space<vmem>>, vector<64x32xf32>
    %c0_5 = arith.constant 0 : index
    %c96 = arith.constant 96 : index
    %5 = vector.load %arg1[%c0_5, %c96] : memref<64x160xf32, #tpu.memory_space<vmem>>, vector<64x32xf32>
    %6 = tpu.iota {dimensions = array<i32: 0>} : vector<64x32xi32>
    %c3_i32 = arith.constant 3 : i32
    %7 = vector.broadcast %c3_i32 : i32 to vector<64x32xi32>
    %8 = arith.andi %6, %7 : vector<64x32xi32>
    %c0_i32 = arith.constant 0 : i32
    %9 = vector.broadcast %c0_i32 : i32 to vector<64x32xi32>
    %10 = arith.cmpi sgt, %8, %9 : vector<64x32xi32>
    %11 = arith.select %10, %4, %3 : vector<64x32xi1>, vector<64x32xf32>
    %c3_i32_6 = arith.constant 3 : i32
    %12 = vector.broadcast %c3_i32_6 : i32 to vector<64x32xi32>
    %13 = arith.cmpi slt, %8, %12 : vector<64x32xi32>
    %14 = arith.select %13, %5, %3 : vector<64x32xi1>, vector<64x32xf32>
    %15 = arith.maximumf %11, %14 : vector<64x32xf32>
    %16 = arith.maximumf %3, %15 : vector<64x32xf32>
    %c0_7 = arith.constant 0 : index
    %c0_8 = arith.constant 0 : index
    %17 = vector.load %arg3[%c0_7, %c0_8] : memref<32x2xf32, #tpu.memory_space<vmem>>, vector<32x2xf32>
    %cst_9 = arith.constant dense<0.000000e+00> : vector<64x2xf32>
    %18 = tpu.matmul %16, %17, %cst_9 {dimension_numbers = #tpu.dot_dimension_numbers<[1], [0], [0], [1], [0, 0, 1, 1], [], []>} : vector<64x32xf32>, vector<32x2xf32>, vector<64x2xf32> -> vector<64x2xf32>
    %c0_10 = arith.constant 0 : index
    %c0_11 = arith.constant 0 : index
    %19 = vector.load %arg4[%c0_10, %c0_11] : memref<1x14xf32, #tpu.memory_space<vmem>>, vector<1x14xf32>
    %20 = vector.broadcast %19 : vector<1x14xf32> to vector<64x14xf32>
    %21 = arith.addf %2, %20 : vector<64x14xf32>
    %cst_12 = arith.constant 0.000000e+00 : f32
    %22 = vector.broadcast %cst_12 : f32 to vector<64x14xf32>
    %23 = arith.maximumf %21, %22 : vector<64x14xf32>
    %c0_13 = arith.constant 0 : index
    %c0_14 = arith.constant 0 : index
    %24 = vector.load %arg6[%c0_13, %c0_14] : memref<64x16xf32, #tpu.memory_space<vmem>>, vector<64x14xf32>
    tpu.vector_store %arg6[%c0_13, %c0_14], %23 {strides = array<i32>} : memref<64x16xf32, #tpu.memory_space<vmem>>, vector<64x14xf32>,
    %c0_15 = arith.constant 0 : index
    %c0_16 = arith.constant 0 : index
    %25 = vector.load %arg5[%c0_15, %c0_16] : memref<1x2xf32, #tpu.memory_space<vmem>>, vector<1x2xf32>
    %26 = vector.broadcast %25 : vector<1x2xf32> to vector<64x2xf32>
    %27 = arith.addf %18, %26 : vector<64x2xf32>
    %cst_17 = arith.constant 0.000000e+00 : f32
    %28 = vector.broadcast %cst_17 : f32 to vector<64x2xf32>
    %29 = arith.maximumf %27, %28 : vector<64x2xf32>
    %c0_18 = arith.constant 0 : index
    %c14 = arith.constant 14 : index
    %30 = vector.load %arg6[%c0_18, %c14] : memref<64x16xf32, #tpu.memory_space<vmem>>, vector<64x2xf32>
    tpu.vector_store %arg6[%c0_18, %c14], %29 {strides = array<i32>} : memref<64x16xf32, #tpu.memory_space<vmem>>, vector<64x2xf32>,
    return
  }
  func.func @transform_0(%arg0: i32) -> (i32, i32) {
    %c0_i32 = arith.constant 0 : i32
    %c0_i32_0 = arith.constant 0 : i32
    return %arg0, %c0_i32 : i32, i32
  }
  func.func @transform_1(%arg0: i32) -> (i32, i32) {
    %c0_i32 = arith.constant 0 : i32
    %c0_i32_0 = arith.constant 0 : i32
    %c0_i32_1 = arith.constant 0 : i32
    return %c0_i32, %c0_i32_0 : i32, i32
  }
  func.func @transform_2(%arg0: i32) -> (i32, i32) {
    %c0_i32 = arith.constant 0 : i32
    %c0_i32_0 = arith.constant 0 : i32
    %c0_i32_1 = arith.constant 0 : i32
    return %c0_i32, %c0_i32_0 : i32, i32
  }
  func.func @transform_3(%arg0: i32) -> (i32, i32) {
    %c0_i32 = arith.constant 0 : i32
    %c0_i32_0 = arith.constant 0 : i32
    %c0_i32_1 = arith.constant 0 : i32
    return %c0_i32, %c0_i32_0 : i32, i32
  }
  func.func @transform_4(%arg0: i32) -> (i32, i32) {
    %c0_i32 = arith.constant 0 : i32
    %c0_i32_0 = arith.constant 0 : i32
    %c0_i32_1 = arith.constant 0 : i32
    return %c0_i32, %c0_i32_0 : i32, i32
  }
  func.func @transform_5(%arg0: i32) -> (i32, i32) {
    %c0_i32 = arith.constant 0 : i32
    %c0_i32_0 = arith.constant 0 : i32
    return %arg0, %c0_i32 : i32, i32
  }
}

module attributes {stable_mosaic.version = 11 : i64} {
  func.func @_inception_kernel(%arg0: i32, %arg1: memref<32x80xf32, #tpu.memory_space<vmem>>, %arg2: memref<80x7xf32, #tpu.memory_space<vmem>>, %arg3: memref<16x1xf32, #tpu.memory_space<vmem>>, %arg4: memref<1x7xf32, #tpu.memory_space<vmem>>, %arg5: memref<1x1xf32, #tpu.memory_space<vmem>>, %arg6: memref<32x8xf32, #tpu.memory_space<vmem>>) attributes {dimension_semantics = [#tpu.dimension_semantics<parallel>], iteration_bounds = array<i64: 2>, scalar_prefetch = 0 : i64, scratch_operands = 0 : i64, tpu.core_type = #tpu.core_type<tc>, window_params = [{transform_indices = @transform_0, window_bounds = array<i64: 32, 80>}, {pipeline_mode = #tpu.pipeline_mode<synchronous>, transform_indices = @transform_1, window_bounds = array<i64: 80, 7>}, {pipeline_mode = #tpu.pipeline_mode<synchronous>, transform_indices = @transform_2, window_bounds = array<i64: 16, 1>}, {pipeline_mode = #tpu.pipeline_mode<synchronous>, transform_indices = @transform_3, window_bounds = array<i64: 1, 7>}, {pipeline_mode = #tpu.pipeline_mode<synchronous>, transform_indices = @transform_4, window_bounds = array<i64: 1, 1>}, {transform_indices = @transform_5, window_bounds = array<i64: 32, 8>}]} {
    %c0 = arith.constant 0 : index
    %c0_0 = arith.constant 0 : index
    %0 = vector.load %arg1[%c0, %c0_0] : memref<32x80xf32, #tpu.memory_space<vmem>>, vector<32x80xf32>
    %c0_1 = arith.constant 0 : index
    %c0_2 = arith.constant 0 : index
    %1 = vector.load %arg2[%c0_1, %c0_2] : memref<80x7xf32, #tpu.memory_space<vmem>>, vector<80x7xf32>
    %cst = arith.constant dense<0.000000e+00> : vector<32x7xf32>
    %2 = tpu.matmul %0, %1, %cst {dimension_numbers = #tpu.dot_dimension_numbers<[1], [0], [0], [1], [0, 0, 1, 1], [], []>} : vector<32x80xf32>, vector<80x7xf32>, vector<32x7xf32> -> vector<32x7xf32>
    %c0_3 = arith.constant 0 : index
    %c32 = arith.constant 32 : index
    %3 = vector.load %arg1[%c0_3, %c32] : memref<32x80xf32, #tpu.memory_space<vmem>>, vector<32x16xf32>
    %c0_4 = arith.constant 0 : index
    %c16 = arith.constant 16 : index
    %4 = vector.load %arg1[%c0_4, %c16] : memref<32x80xf32, #tpu.memory_space<vmem>>, vector<32x16xf32>
    %c0_5 = arith.constant 0 : index
    %c48 = arith.constant 48 : index
    %5 = vector.load %arg1[%c0_5, %c48] : memref<32x80xf32, #tpu.memory_space<vmem>>, vector<32x16xf32>
    %6 = tpu.iota {dimensions = array<i32: 0>} : vector<32x16xi32>
    %c1_i32 = arith.constant 1 : i32
    %7 = vector.broadcast %c1_i32 : i32 to vector<32x16xi32>
    %8 = arith.andi %6, %7 : vector<32x16xi32>
    %c0_i32 = arith.constant 0 : i32
    %9 = vector.broadcast %c0_i32 : i32 to vector<32x16xi32>
    %10 = arith.cmpi sgt, %8, %9 : vector<32x16xi32>
    %11 = arith.select %10, %4, %3 : vector<32x16xi1>, vector<32x16xf32>
    %c1_i32_6 = arith.constant 1 : i32
    %12 = vector.broadcast %c1_i32_6 : i32 to vector<32x16xi32>
    %13 = arith.cmpi slt, %8, %12 : vector<32x16xi32>
    %14 = arith.select %13, %5, %3 : vector<32x16xi1>, vector<32x16xf32>
    %15 = arith.maximumf %11, %14 : vector<32x16xf32>
    %16 = arith.maximumf %3, %15 : vector<32x16xf32>
    %c0_7 = arith.constant 0 : index
    %c0_8 = arith.constant 0 : index
    %17 = vector.load %arg3[%c0_7, %c0_8] : memref<16x1xf32, #tpu.memory_space<vmem>>, vector<16x1xf32>
    %cst_9 = arith.constant dense<0.000000e+00> : vector<32x1xf32>
    %18 = tpu.matmul %16, %17, %cst_9 {dimension_numbers = #tpu.dot_dimension_numbers<[1], [0], [0], [1], [0, 0, 1, 1], [], []>} : vector<32x16xf32>, vector<16x1xf32>, vector<32x1xf32> -> vector<32x1xf32>
    %c0_10 = arith.constant 0 : index
    %c0_11 = arith.constant 0 : index
    %19 = vector.load %arg4[%c0_10, %c0_11] : memref<1x7xf32, #tpu.memory_space<vmem>>, vector<1x7xf32>
    %20 = vector.broadcast %19 : vector<1x7xf32> to vector<32x7xf32>
    %21 = arith.addf %2, %20 : vector<32x7xf32>
    %cst_12 = arith.constant 0.000000e+00 : f32
    %22 = vector.broadcast %cst_12 : f32 to vector<32x7xf32>
    %23 = arith.maximumf %21, %22 : vector<32x7xf32>
    %c0_13 = arith.constant 0 : index
    %c0_14 = arith.constant 0 : index
    %24 = vector.load %arg6[%c0_13, %c0_14] : memref<32x8xf32, #tpu.memory_space<vmem>>, vector<32x7xf32>
    tpu.vector_store %arg6[%c0_13, %c0_14], %23 {strides = array<i32>} : memref<32x8xf32, #tpu.memory_space<vmem>>, vector<32x7xf32>,
    %c0_15 = arith.constant 0 : index
    %c0_16 = arith.constant 0 : index
    %25 = vector.load %arg5[%c0_15, %c0_16] : memref<1x1xf32, #tpu.memory_space<vmem>>, vector<1x1xf32>
    %26 = vector.broadcast %25 : vector<1x1xf32> to vector<32x1xf32>
    %27 = arith.addf %18, %26 : vector<32x1xf32>
    %cst_17 = arith.constant 0.000000e+00 : f32
    %28 = vector.broadcast %cst_17 : f32 to vector<32x1xf32>
    %29 = arith.maximumf %27, %28 : vector<32x1xf32>
    %c0_18 = arith.constant 0 : index
    %c7 = arith.constant 7 : index
    %30 = vector.load %arg6[%c0_18, %c7] : memref<32x8xf32, #tpu.memory_space<vmem>>, vector<32x1xf32>
    tpu.vector_store %arg6[%c0_18, %c7], %29 {strides = array<i32>} : memref<32x8xf32, #tpu.memory_space<vmem>>, vector<32x1xf32>,
    return
  }
  func.func @transform_0(%arg0: i32) -> (i32, i32) {
    %c0_i32 = arith.constant 0 : i32
    %c0_i32_0 = arith.constant 0 : i32
    return %arg0, %c0_i32 : i32, i32
  }
  func.func @transform_1(%arg0: i32) -> (i32, i32) {
    %c0_i32 = arith.constant 0 : i32
    %c0_i32_0 = arith.constant 0 : i32
    %c0_i32_1 = arith.constant 0 : i32
    return %c0_i32, %c0_i32_0 : i32, i32
  }
  func.func @transform_2(%arg0: i32) -> (i32, i32) {
    %c0_i32 = arith.constant 0 : i32
    %c0_i32_0 = arith.constant 0 : i32
    %c0_i32_1 = arith.constant 0 : i32
    return %c0_i32, %c0_i32_0 : i32, i32
  }
  func.func @transform_3(%arg0: i32) -> (i32, i32) {
    %c0_i32 = arith.constant 0 : i32
    %c0_i32_0 = arith.constant 0 : i32
    %c0_i32_1 = arith.constant 0 : i32
    return %c0_i32, %c0_i32_0 : i32, i32
  }
  func.func @transform_4(%arg0: i32) -> (i32, i32) {
    %c0_i32 = arith.constant 0 : i32
    %c0_i32_0 = arith.constant 0 : i32
    %c0_i32_1 = arith.constant 0 : i32
    return %c0_i32, %c0_i32_0 : i32, i32
  }
  func.func @transform_5(%arg0: i32) -> (i32, i32) {
    %c0_i32 = arith.constant 0 : i32
    %c0_i32_0 = arith.constant 0 : i32
    return %arg0, %c0_i32 : i32, i32
  }
}

module attributes {stable_mosaic.version = 11 : i64} {
  func.func @_inception_kernel(%arg0: i32, %arg1: memref<64x40xf32, #tpu.memory_space<vmem>>, %arg2: memref<40x7xf32, #tpu.memory_space<vmem>>, %arg3: memref<8x1xf32, #tpu.memory_space<vmem>>, %arg4: memref<1x7xf32, #tpu.memory_space<vmem>>, %arg5: memref<1x1xf32, #tpu.memory_space<vmem>>, %arg6: memref<64x8xf32, #tpu.memory_space<vmem>>) attributes {dimension_semantics = [#tpu.dimension_semantics<parallel>], iteration_bounds = array<i64: 2>, scalar_prefetch = 0 : i64, scratch_operands = 0 : i64, tpu.core_type = #tpu.core_type<tc>, window_params = [{transform_indices = @transform_0, window_bounds = array<i64: 64, 40>}, {pipeline_mode = #tpu.pipeline_mode<synchronous>, transform_indices = @transform_1, window_bounds = array<i64: 40, 7>}, {pipeline_mode = #tpu.pipeline_mode<synchronous>, transform_indices = @transform_2, window_bounds = array<i64: 8, 1>}, {pipeline_mode = #tpu.pipeline_mode<synchronous>, transform_indices = @transform_3, window_bounds = array<i64: 1, 7>}, {pipeline_mode = #tpu.pipeline_mode<synchronous>, transform_indices = @transform_4, window_bounds = array<i64: 1, 1>}, {transform_indices = @transform_5, window_bounds = array<i64: 64, 8>}]} {
    %c0 = arith.constant 0 : index
    %c0_0 = arith.constant 0 : index
    %0 = vector.load %arg1[%c0, %c0_0] : memref<64x40xf32, #tpu.memory_space<vmem>>, vector<64x40xf32>
    %c0_1 = arith.constant 0 : index
    %c0_2 = arith.constant 0 : index
    %1 = vector.load %arg2[%c0_1, %c0_2] : memref<40x7xf32, #tpu.memory_space<vmem>>, vector<40x7xf32>
    %cst = arith.constant dense<0.000000e+00> : vector<64x7xf32>
    %2 = tpu.matmul %0, %1, %cst {dimension_numbers = #tpu.dot_dimension_numbers<[1], [0], [0], [1], [0, 0, 1, 1], [], []>} : vector<64x40xf32>, vector<40x7xf32>, vector<64x7xf32> -> vector<64x7xf32>
    %c0_3 = arith.constant 0 : index
    %c16 = arith.constant 16 : index
    %3 = vector.load %arg1[%c0_3, %c16] : memref<64x40xf32, #tpu.memory_space<vmem>>, vector<64x8xf32>
    %c0_4 = arith.constant 0 : index
    %c8 = arith.constant 8 : index
    %4 = vector.load %arg1[%c0_4, %c8] : memref<64x40xf32, #tpu.memory_space<vmem>>, vector<64x8xf32>
    %c0_5 = arith.constant 0 : index
    %c24 = arith.constant 24 : index
    %5 = vector.load %arg1[%c0_5, %c24] : memref<64x40xf32, #tpu.memory_space<vmem>>, vector<64x8xf32>
    %6 = tpu.iota {dimensions = array<i32: 0>} : vector<64x8xi32>
    %c3_i32 = arith.constant 3 : i32
    %7 = vector.broadcast %c3_i32 : i32 to vector<64x8xi32>
    %8 = arith.andi %6, %7 : vector<64x8xi32>
    %c0_i32 = arith.constant 0 : i32
    %9 = vector.broadcast %c0_i32 : i32 to vector<64x8xi32>
    %10 = arith.cmpi sgt, %8, %9 : vector<64x8xi32>
    %11 = arith.select %10, %4, %3 : vector<64x8xi1>, vector<64x8xf32>
    %c3_i32_6 = arith.constant 3 : i32
    %12 = vector.broadcast %c3_i32_6 : i32 to vector<64x8xi32>
    %13 = arith.cmpi slt, %8, %12 : vector<64x8xi32>
    %14 = arith.select %13, %5, %3 : vector<64x8xi1>, vector<64x8xf32>
    %15 = arith.maximumf %11, %14 : vector<64x8xf32>
    %16 = arith.maximumf %3, %15 : vector<64x8xf32>
    %c0_7 = arith.constant 0 : index
    %c0_8 = arith.constant 0 : index
    %17 = vector.load %arg3[%c0_7, %c0_8] : memref<8x1xf32, #tpu.memory_space<vmem>>, vector<8x1xf32>
    %cst_9 = arith.constant dense<0.000000e+00> : vector<64x1xf32>
    %18 = tpu.matmul %16, %17, %cst_9 {dimension_numbers = #tpu.dot_dimension_numbers<[1], [0], [0], [1], [0, 0, 1, 1], [], []>} : vector<64x8xf32>, vector<8x1xf32>, vector<64x1xf32> -> vector<64x1xf32>
    %c0_10 = arith.constant 0 : index
    %c0_11 = arith.constant 0 : index
    %19 = vector.load %arg4[%c0_10, %c0_11] : memref<1x7xf32, #tpu.memory_space<vmem>>, vector<1x7xf32>
    %20 = vector.broadcast %19 : vector<1x7xf32> to vector<64x7xf32>
    %21 = arith.addf %2, %20 : vector<64x7xf32>
    %cst_12 = arith.constant 0.000000e+00 : f32
    %22 = vector.broadcast %cst_12 : f32 to vector<64x7xf32>
    %23 = arith.maximumf %21, %22 : vector<64x7xf32>
    %c0_13 = arith.constant 0 : index
    %c0_14 = arith.constant 0 : index
    %24 = vector.load %arg6[%c0_13, %c0_14] : memref<64x8xf32, #tpu.memory_space<vmem>>, vector<64x7xf32>
    tpu.vector_store %arg6[%c0_13, %c0_14], %23 {strides = array<i32>} : memref<64x8xf32, #tpu.memory_space<vmem>>, vector<64x7xf32>,
    %c0_15 = arith.constant 0 : index
    %c0_16 = arith.constant 0 : index
    %25 = vector.load %arg5[%c0_15, %c0_16] : memref<1x1xf32, #tpu.memory_space<vmem>>, vector<1x1xf32>
    %26 = vector.broadcast %25 : vector<1x1xf32> to vector<64x1xf32>
    %27 = arith.addf %18, %26 : vector<64x1xf32>
    %cst_17 = arith.constant 0.000000e+00 : f32
    %28 = vector.broadcast %cst_17 : f32 to vector<64x1xf32>
    %29 = arith.maximumf %27, %28 : vector<64x1xf32>
    %c0_18 = arith.constant 0 : index
    %c7 = arith.constant 7 : index
    %30 = vector.load %arg6[%c0_18, %c7] : memref<64x8xf32, #tpu.memory_space<vmem>>, vector<64x1xf32>
    tpu.vector_store %arg6[%c0_18, %c7], %29 {strides = array<i32>} : memref<64x8xf32, #tpu.memory_space<vmem>>, vector<64x1xf32>,
    return
  }
  func.func @transform_0(%arg0: i32) -> (i32, i32) {
    %c0_i32 = arith.constant 0 : i32
    %c0_i32_0 = arith.constant 0 : i32
    return %arg0, %c0_i32 : i32, i32
  }
  func.func @transform_1(%arg0: i32) -> (i32, i32) {
    %c0_i32 = arith.constant 0 : i32
    %c0_i32_0 = arith.constant 0 : i32
    %c0_i32_1 = arith.constant 0 : i32
    return %c0_i32, %c0_i32_0 : i32, i32
  }
  func.func @transform_2(%arg0: i32) -> (i32, i32) {
    %c0_i32 = arith.constant 0 : i32
    %c0_i32_0 = arith.constant 0 : i32
    %c0_i32_1 = arith.constant 0 : i32
    return %c0_i32, %c0_i32_0 : i32, i32
  }
  func.func @transform_3(%arg0: i32) -> (i32, i32) {
    %c0_i32 = arith.constant 0 : i32
    %c0_i32_0 = arith.constant 0 : i32
    %c0_i32_1 = arith.constant 0 : i32
    return %c0_i32, %c0_i32_0 : i32, i32
  }
  func.func @transform_4(%arg0: i32) -> (i32, i32) {
    %c0_i32 = arith.constant 0 : i32
    %c0_i32_0 = arith.constant 0 : i32
    %c0_i32_1 = arith.constant 0 : i32
    return %c0_i32, %c0_i32_0 : i32, i32
  }
  func.func @transform_5(%arg0: i32) -> (i32, i32) {
    %c0_i32 = arith.constant 0 : i32
    %c0_i32_0 = arith.constant 0 : i32
    return %arg0, %c0_i32 : i32, i32
  }
}

module attributes {stable_mosaic.version = 11 : i64} {
  func.func @_gru_kernel(%arg0: memref<8x2x48xf32, #tpu.memory_space<vmem>>, %arg1: memref<16x48xf32, #tpu.memory_space<vmem>>, %arg2: memref<1x48xf32, #tpu.memory_space<vmem>>, %arg3: memref<8x2x16xf32, #tpu.memory_space<vmem>>) attributes {dimension_semantics = [], scalar_prefetch = 0 : i64, scratch_operands = 0 : i64, tpu.core_type = #tpu.core_type<tc>} {
    %cst = arith.constant 0.000000e+00 : f32
    %0 = vector.broadcast %cst : f32 to vector<2x16xf32>
    %c0 = arith.constant 0 : index
    %c0_0 = arith.constant 0 : index
    %c0_1 = arith.constant 0 : index
    %1 = vector.load %arg0[%c0, %c0_0, %c0_1] : memref<8x2x48xf32, #tpu.memory_space<vmem>>, vector<1x2x48xf32>
    %2 = vector.shape_cast %1 : vector<1x2x48xf32> to vector<2x48xf32>
    %c0_2 = arith.constant 0 : index
    %c0_3 = arith.constant 0 : index
    %3 = vector.load %arg1[%c0_2, %c0_3] : memref<16x48xf32, #tpu.memory_space<vmem>>, vector<16x48xf32>
    %cst_4 = arith.constant dense<0.000000e+00> : vector<2x48xf32>
    %4 = tpu.matmul %0, %3, %cst_4 {dimension_numbers = #tpu.dot_dimension_numbers<[1], [0], [0], [1], [0, 0, 1, 1], [], []>} : vector<2x16xf32>, vector<16x48xf32>, vector<2x48xf32> -> vector<2x48xf32>
    %c0_5 = arith.constant 0 : index
    %c0_6 = arith.constant 0 : index
    %5 = vector.load %arg2[%c0_5, %c0_6] : memref<1x48xf32, #tpu.memory_space<vmem>>, vector<1x48xf32>
    %6 = vector.broadcast %5 : vector<1x48xf32> to vector<2x48xf32>
    %7 = arith.addf %4, %6 : vector<2x48xf32>
    %8 = vector.extract_strided_slice %2 {offsets = [0, 0], sizes = [2, 16], strides = [1, 1]} : vector<2x48xf32> to vector<2x16xf32>
    %9 = vector.extract_strided_slice %2 {offsets = [0, 16], sizes = [2, 16], strides = [1, 1]} : vector<2x48xf32> to vector<2x16xf32>
    %10 = vector.extract_strided_slice %2 {offsets = [0, 32], sizes = [2, 16], strides = [1, 1]} : vector<2x48xf32> to vector<2x16xf32>
    %11 = vector.extract_strided_slice %7 {offsets = [0, 0], sizes = [2, 16], strides = [1, 1]} : vector<2x48xf32> to vector<2x16xf32>
    %12 = vector.extract_strided_slice %7 {offsets = [0, 16], sizes = [2, 16], strides = [1, 1]} : vector<2x48xf32> to vector<2x16xf32>
    %13 = vector.extract_strided_slice %7 {offsets = [0, 32], sizes = [2, 16], strides = [1, 1]} : vector<2x48xf32> to vector<2x16xf32>
    %14 = arith.addf %8, %11 : vector<2x16xf32>
    %cst_7 = arith.constant 0.000000e+00 : f32
    %15 = vector.broadcast %cst_7 : f32 to vector<2x16xf32>
    %16 = arith.subf %15, %14 : vector<2x16xf32>
    %17 = math.exp %16 : vector<2x16xf32>
    %cst_8 = arith.constant 1.000000e+00 : f32
    %18 = vector.broadcast %cst_8 : f32 to vector<2x16xf32>
    %19 = arith.addf %18, %17 : vector<2x16xf32>
    %cst_9 = arith.constant 1.000000e+00 : f32
    %20 = vector.broadcast %cst_9 : f32 to vector<2x16xf32>
    %21 = arith.divf %20, %19 : vector<2x16xf32>
    %22 = arith.addf %9, %12 : vector<2x16xf32>
    %cst_10 = arith.constant 0.000000e+00 : f32
    %23 = vector.broadcast %cst_10 : f32 to vector<2x16xf32>
    %24 = arith.subf %23, %22 : vector<2x16xf32>
    %25 = math.exp %24 : vector<2x16xf32>
    %cst_11 = arith.constant 1.000000e+00 : f32
    %26 = vector.broadcast %cst_11 : f32 to vector<2x16xf32>
    %27 = arith.addf %26, %25 : vector<2x16xf32>
    %cst_12 = arith.constant 1.000000e+00 : f32
    %28 = vector.broadcast %cst_12 : f32 to vector<2x16xf32>
    %29 = arith.divf %28, %27 : vector<2x16xf32>
    %30 = arith.mulf %21, %13 : vector<2x16xf32>
    %31 = arith.addf %10, %30 : vector<2x16xf32>
    %32 = math.tanh %31 : vector<2x16xf32>
    %cst_13 = arith.constant 1.000000e+00 : f32
    %33 = vector.broadcast %cst_13 : f32 to vector<2x16xf32>
    %34 = arith.subf %33, %29 : vector<2x16xf32>
    %35 = arith.mulf %34, %32 : vector<2x16xf32>
    %36 = arith.mulf %29, %0 : vector<2x16xf32>
    %37 = arith.addf %35, %36 : vector<2x16xf32>
    %c0_14 = arith.constant 0 : index
    %c0_15 = arith.constant 0 : index
    %c0_16 = arith.constant 0 : index
    %38 = vector.load %arg3[%c0_14, %c0_15, %c0_16] : memref<8x2x16xf32, #tpu.memory_space<vmem>>, vector<1x2x16xf32>
    %39 = vector.shape_cast %38 : vector<1x2x16xf32> to vector<2x16xf32>
    %40 = vector.shape_cast %37 : vector<2x16xf32> to vector<1x2x16xf32>
    tpu.vector_store %arg3[%c0_14, %c0_15, %c0_16], %40 {strides = array<i32>} : memref<8x2x16xf32, #tpu.memory_space<vmem>>, vector<1x2x16xf32>,
    %c1 = arith.constant 1 : index
    %c0_17 = arith.constant 0 : index
    %c0_18 = arith.constant 0 : index
    %41 = vector.load %arg0[%c1, %c0_17, %c0_18] : memref<8x2x48xf32, #tpu.memory_space<vmem>>, vector<1x2x48xf32>
    %42 = vector.shape_cast %41 : vector<1x2x48xf32> to vector<2x48xf32>
    %c0_19 = arith.constant 0 : index
    %c0_20 = arith.constant 0 : index
    %43 = vector.load %arg1[%c0_19, %c0_20] : memref<16x48xf32, #tpu.memory_space<vmem>>, vector<16x48xf32>
    %cst_21 = arith.constant dense<0.000000e+00> : vector<2x48xf32>
    %44 = tpu.matmul %37, %43, %cst_21 {dimension_numbers = #tpu.dot_dimension_numbers<[1], [0], [0], [1], [0, 0, 1, 1], [], []>} : vector<2x16xf32>, vector<16x48xf32>, vector<2x48xf32> -> vector<2x48xf32>
    %c0_22 = arith.constant 0 : index
    %c0_23 = arith.constant 0 : index
    %45 = vector.load %arg2[%c0_22, %c0_23] : memref<1x48xf32, #tpu.memory_space<vmem>>, vector<1x48xf32>
    %46 = vector.broadcast %45 : vector<1x48xf32> to vector<2x48xf32>
    %47 = arith.addf %44, %46 : vector<2x48xf32>
    %48 = vector.extract_strided_slice %42 {offsets = [0, 0], sizes = [2, 16], strides = [1, 1]} : vector<2x48xf32> to vector<2x16xf32>
    %49 = vector.extract_strided_slice %42 {offsets = [0, 16], sizes = [2, 16], strides = [1, 1]} : vector<2x48xf32> to vector<2x16xf32>
    %50 = vector.extract_strided_slice %42 {offsets = [0, 32], sizes = [2, 16], strides = [1, 1]} : vector<2x48xf32> to vector<2x16xf32>
    %51 = vector.extract_strided_slice %47 {offsets = [0, 0], sizes = [2, 16], strides = [1, 1]} : vector<2x48xf32> to vector<2x16xf32>
    %52 = vector.extract_strided_slice %47 {offsets = [0, 16], sizes = [2, 16], strides = [1, 1]} : vector<2x48xf32> to vector<2x16xf32>
    %53 = vector.extract_strided_slice %47 {offsets = [0, 32], sizes = [2, 16], strides = [1, 1]} : vector<2x48xf32> to vector<2x16xf32>
    %54 = arith.addf %48, %51 : vector<2x16xf32>
    %cst_24 = arith.constant 0.000000e+00 : f32
    %55 = vector.broadcast %cst_24 : f32 to vector<2x16xf32>
    %56 = arith.subf %55, %54 : vector<2x16xf32>
    %57 = math.exp %56 : vector<2x16xf32>
    %cst_25 = arith.constant 1.000000e+00 : f32
    %58 = vector.broadcast %cst_25 : f32 to vector<2x16xf32>
    %59 = arith.addf %58, %57 : vector<2x16xf32>
    %cst_26 = arith.constant 1.000000e+00 : f32
    %60 = vector.broadcast %cst_26 : f32 to vector<2x16xf32>
    %61 = arith.divf %60, %59 : vector<2x16xf32>
    %62 = arith.addf %49, %52 : vector<2x16xf32>
    %cst_27 = arith.constant 0.000000e+00 : f32
    %63 = vector.broadcast %cst_27 : f32 to vector<2x16xf32>
    %64 = arith.subf %63, %62 : vector<2x16xf32>
    %65 = math.exp %64 : vector<2x16xf32>
    %cst_28 = arith.constant 1.000000e+00 : f32
    %66 = vector.broadcast %cst_28 : f32 to vector<2x16xf32>
    %67 = arith.addf %66, %65 : vector<2x16xf32>
    %cst_29 = arith.constant 1.000000e+00 : f32
    %68 = vector.broadcast %cst_29 : f32 to vector<2x16xf32>
    %69 = arith.divf %68, %67 : vector<2x16xf32>
    %70 = arith.mulf %61, %53 : vector<2x16xf32>
    %71 = arith.addf %50, %70 : vector<2x16xf32>
    %72 = math.tanh %71 : vector<2x16xf32>
    %cst_30 = arith.constant 1.000000e+00 : f32
    %73 = vector.broadcast %cst_30 : f32 to vector<2x16xf32>
    %74 = arith.subf %73, %69 : vector<2x16xf32>
    %75 = arith.mulf %74, %72 : vector<2x16xf32>
    %76 = arith.mulf %69, %37 : vector<2x16xf32>
    %77 = arith.addf %75, %76 : vector<2x16xf32>
    %c1_31 = arith.constant 1 : index
    %c0_32 = arith.constant 0 : index
    %c0_33 = arith.constant 0 : index
    %78 = vector.load %arg3[%c1_31, %c0_32, %c0_33] : memref<8x2x16xf32, #tpu.memory_space<vmem>>, vector<1x2x16xf32>
    %79 = vector.shape_cast %78 : vector<1x2x16xf32> to vector<2x16xf32>
    %80 = vector.shape_cast %77 : vector<2x16xf32> to vector<1x2x16xf32>
    tpu.vector_store %arg3[%c1_31, %c0_32, %c0_33], %80 {strides = array<i32>} : memref<8x2x16xf32, #tpu.memory_space<vmem>>, vector<1x2x16xf32>,
    %c2 = arith.constant 2 : index
    %c0_34 = arith.constant 0 : index
    %c0_35 = arith.constant 0 : index
    %81 = vector.load %arg0[%c2, %c0_34, %c0_35] : memref<8x2x48xf32, #tpu.memory_space<vmem>>, vector<1x2x48xf32>
    %82 = vector.shape_cast %81 : vector<1x2x48xf32> to vector<2x48xf32>
    %c0_36 = arith.constant 0 : index
    %c0_37 = arith.constant 0 : index
    %83 = vector.load %arg1[%c0_36, %c0_37] : memref<16x48xf32, #tpu.memory_space<vmem>>, vector<16x48xf32>
    %cst_38 = arith.constant dense<0.000000e+00> : vector<2x48xf32>
    %84 = tpu.matmul %77, %83, %cst_38 {dimension_numbers = #tpu.dot_dimension_numbers<[1], [0], [0], [1], [0, 0, 1, 1], [], []>} : vector<2x16xf32>, vector<16x48xf32>, vector<2x48xf32> -> vector<2x48xf32>
    %c0_39 = arith.constant 0 : index
    %c0_40 = arith.constant 0 : index
    %85 = vector.load %arg2[%c0_39, %c0_40] : memref<1x48xf32, #tpu.memory_space<vmem>>, vector<1x48xf32>
    %86 = vector.broadcast %85 : vector<1x48xf32> to vector<2x48xf32>
    %87 = arith.addf %84, %86 : vector<2x48xf32>
    %88 = vector.extract_strided_slice %82 {offsets = [0, 0], sizes = [2, 16], strides = [1, 1]} : vector<2x48xf32> to vector<2x16xf32>
    %89 = vector.extract_strided_slice %82 {offsets = [0, 16], sizes = [2, 16], strides = [1, 1]} : vector<2x48xf32> to vector<2x16xf32>
    %90 = vector.extract_strided_slice %82 {offsets = [0, 32], sizes = [2, 16], strides = [1, 1]} : vector<2x48xf32> to vector<2x16xf32>
    %91 = vector.extract_strided_slice %87 {offsets = [0, 0], sizes = [2, 16], strides = [1, 1]} : vector<2x48xf32> to vector<2x16xf32>
    %92 = vector.extract_strided_slice %87 {offsets = [0, 16], sizes = [2, 16], strides = [1, 1]} : vector<2x48xf32> to vector<2x16xf32>
    %93 = vector.extract_strided_slice %87 {offsets = [0, 32], sizes = [2, 16], strides = [1, 1]} : vector<2x48xf32> to vector<2x16xf32>
    %94 = arith.addf %88, %91 : vector<2x16xf32>
    %cst_41 = arith.constant 0.000000e+00 : f32
    %95 = vector.broadcast %cst_41 : f32 to vector<2x16xf32>
    %96 = arith.subf %95, %94 : vector<2x16xf32>
    %97 = math.exp %96 : vector<2x16xf32>
    %cst_42 = arith.constant 1.000000e+00 : f32
    %98 = vector.broadcast %cst_42 : f32 to vector<2x16xf32>
    %99 = arith.addf %98, %97 : vector<2x16xf32>
    %cst_43 = arith.constant 1.000000e+00 : f32
    %100 = vector.broadcast %cst_43 : f32 to vector<2x16xf32>
    %101 = arith.divf %100, %99 : vector<2x16xf32>
    %102 = arith.addf %89, %92 : vector<2x16xf32>
    %cst_44 = arith.constant 0.000000e+00 : f32
    %103 = vector.broadcast %cst_44 : f32 to vector<2x16xf32>
    %104 = arith.subf %103, %102 : vector<2x16xf32>
    %105 = math.exp %104 : vector<2x16xf32>
    %cst_45 = arith.constant 1.000000e+00 : f32
    %106 = vector.broadcast %cst_45 : f32 to vector<2x16xf32>
    %107 = arith.addf %106, %105 : vector<2x16xf32>
    %cst_46 = arith.constant 1.000000e+00 : f32
    %108 = vector.broadcast %cst_46 : f32 to vector<2x16xf32>
    %109 = arith.divf %108, %107 : vector<2x16xf32>
    %110 = arith.mulf %101, %93 : vector<2x16xf32>
    %111 = arith.addf %90, %110 : vector<2x16xf32>
    %112 = math.tanh %111 : vector<2x16xf32>
    %cst_47 = arith.constant 1.000000e+00 : f32
    %113 = vector.broadcast %cst_47 : f32 to vector<2x16xf32>
    %114 = arith.subf %113, %109 : vector<2x16xf32>
    %115 = arith.mulf %114, %112 : vector<2x16xf32>
    %116 = arith.mulf %109, %77 : vector<2x16xf32>
    %117 = arith.addf %115, %116 : vector<2x16xf32>
    %c2_48 = arith.constant 2 : index
    %c0_49 = arith.constant 0 : index
    %c0_50 = arith.constant 0 : index
    %118 = vector.load %arg3[%c2_48, %c0_49, %c0_50] : memref<8x2x16xf32, #tpu.memory_space<vmem>>, vector<1x2x16xf32>
    %119 = vector.shape_cast %118 : vector<1x2x16xf32> to vector<2x16xf32>
    %120 = vector.shape_cast %117 : vector<2x16xf32> to vector<1x2x16xf32>
    tpu.vector_store %arg3[%c2_48, %c0_49, %c0_50], %120 {strides = array<i32>} : memref<8x2x16xf32, #tpu.memory_space<vmem>>, vector<1x2x16xf32>,
    %c3 = arith.constant 3 : index
    %c0_51 = arith.constant 0 : index
    %c0_52 = arith.constant 0 : index
    %121 = vector.load %arg0[%c3, %c0_51, %c0_52] : memref<8x2x48xf32, #tpu.memory_space<vmem>>, vector<1x2x48xf32>
    %122 = vector.shape_cast %121 : vector<1x2x48xf32> to vector<2x48xf32>
    %c0_53 = arith.constant 0 : index
    %c0_54 = arith.constant 0 : index
    %123 = vector.load %arg1[%c0_53, %c0_54] : memref<16x48xf32, #tpu.memory_space<vmem>>, vector<16x48xf32>
    %cst_55 = arith.constant dense<0.000000e+00> : vector<2x48xf32>
    %124 = tpu.matmul %117, %123, %cst_55 {dimension_numbers = #tpu.dot_dimension_numbers<[1], [0], [0], [1], [0, 0, 1, 1], [], []>} : vector<2x16xf32>, vector<16x48xf32>, vector<2x48xf32> -> vector<2x48xf32>
    %c0_56 = arith.constant 0 : index
    %c0_57 = arith.constant 0 : index
    %125 = vector.load %arg2[%c0_56, %c0_57] : memref<1x48xf32, #tpu.memory_space<vmem>>, vector<1x48xf32>
    %126 = vector.broadcast %125 : vector<1x48xf32> to vector<2x48xf32>
    %127 = arith.addf %124, %126 : vector<2x48xf32>
    %128 = vector.extract_strided_slice %122 {offsets = [0, 0], sizes = [2, 16], strides = [1, 1]} : vector<2x48xf32> to vector<2x16xf32>
    %129 = vector.extract_strided_slice %122 {offsets = [0, 16], sizes = [2, 16], strides = [1, 1]} : vector<2x48xf32> to vector<2x16xf32>
    %130 = vector.extract_strided_slice %122 {offsets = [0, 32], sizes = [2, 16], strides = [1, 1]} : vector<2x48xf32> to vector<2x16xf32>
    %131 = vector.extract_strided_slice %127 {offsets = [0, 0], sizes = [2, 16], strides = [1, 1]} : vector<2x48xf32> to vector<2x16xf32>
    %132 = vector.extract_strided_slice %127 {offsets = [0, 16], sizes = [2, 16], strides = [1, 1]} : vector<2x48xf32> to vector<2x16xf32>
    %133 = vector.extract_strided_slice %127 {offsets = [0, 32], sizes = [2, 16], strides = [1, 1]} : vector<2x48xf32> to vector<2x16xf32>
    %134 = arith.addf %128, %131 : vector<2x16xf32>
    %cst_58 = arith.constant 0.000000e+00 : f32
    %135 = vector.broadcast %cst_58 : f32 to vector<2x16xf32>
    %136 = arith.subf %135, %134 : vector<2x16xf32>
    %137 = math.exp %136 : vector<2x16xf32>
    %cst_59 = arith.constant 1.000000e+00 : f32
    %138 = vector.broadcast %cst_59 : f32 to vector<2x16xf32>
    %139 = arith.addf %138, %137 : vector<2x16xf32>
    %cst_60 = arith.constant 1.000000e+00 : f32
    %140 = vector.broadcast %cst_60 : f32 to vector<2x16xf32>
    %141 = arith.divf %140, %139 : vector<2x16xf32>
    %142 = arith.addf %129, %132 : vector<2x16xf32>
    %cst_61 = arith.constant 0.000000e+00 : f32
    %143 = vector.broadcast %cst_61 : f32 to vector<2x16xf32>
    %144 = arith.subf %143, %142 : vector<2x16xf32>
    %145 = math.exp %144 : vector<2x16xf32>
    %cst_62 = arith.constant 1.000000e+00 : f32
    %146 = vector.broadcast %cst_62 : f32 to vector<2x16xf32>
    %147 = arith.addf %146, %145 : vector<2x16xf32>
    %cst_63 = arith.constant 1.000000e+00 : f32
    %148 = vector.broadcast %cst_63 : f32 to vector<2x16xf32>
    %149 = arith.divf %148, %147 : vector<2x16xf32>
    %150 = arith.mulf %141, %133 : vector<2x16xf32>
    %151 = arith.addf %130, %150 : vector<2x16xf32>
    %152 = math.tanh %151 : vector<2x16xf32>
    %cst_64 = arith.constant 1.000000e+00 : f32
    %153 = vector.broadcast %cst_64 : f32 to vector<2x16xf32>
    %154 = arith.subf %153, %149 : vector<2x16xf32>
    %155 = arith.mulf %154, %152 : vector<2x16xf32>
    %156 = arith.mulf %149, %117 : vector<2x16xf32>
    %157 = arith.addf %155, %156 : vector<2x16xf32>
    %c3_65 = arith.constant 3 : index
    %c0_66 = arith.constant 0 : index
    %c0_67 = arith.constant 0 : index
    %158 = vector.load %arg3[%c3_65, %c0_66, %c0_67] : memref<8x2x16xf32, #tpu.memory_space<vmem>>, vector<1x2x16xf32>
    %159 = vector.shape_cast %158 : vector<1x2x16xf32> to vector<2x16xf32>
    %160 = vector.shape_cast %157 : vector<2x16xf32> to vector<1x2x16xf32>
    tpu.vector_store %arg3[%c3_65, %c0_66, %c0_67], %160 {strides = array<i32>} : memref<8x2x16xf32, #tpu.memory_space<vmem>>, vector<1x2x16xf32>,
    %c4 = arith.constant 4 : index
    %c0_68 = arith.constant 0 : index
    %c0_69 = arith.constant 0 : index
    %161 = vector.load %arg0[%c4, %c0_68, %c0_69] : memref<8x2x48xf32, #tpu.memory_space<vmem>>, vector<1x2x48xf32>
    %162 = vector.shape_cast %161 : vector<1x2x48xf32> to vector<2x48xf32>
    %c0_70 = arith.constant 0 : index
    %c0_71 = arith.constant 0 : index
    %163 = vector.load %arg1[%c0_70, %c0_71] : memref<16x48xf32, #tpu.memory_space<vmem>>, vector<16x48xf32>
    %cst_72 = arith.constant dense<0.000000e+00> : vector<2x48xf32>
    %164 = tpu.matmul %157, %163, %cst_72 {dimension_numbers = #tpu.dot_dimension_numbers<[1], [0], [0], [1], [0, 0, 1, 1], [], []>} : vector<2x16xf32>, vector<16x48xf32>, vector<2x48xf32> -> vector<2x48xf32>
    %c0_73 = arith.constant 0 : index
    %c0_74 = arith.constant 0 : index
    %165 = vector.load %arg2[%c0_73, %c0_74] : memref<1x48xf32, #tpu.memory_space<vmem>>, vector<1x48xf32>
    %166 = vector.broadcast %165 : vector<1x48xf32> to vector<2x48xf32>
    %167 = arith.addf %164, %166 : vector<2x48xf32>
    %168 = vector.extract_strided_slice %162 {offsets = [0, 0], sizes = [2, 16], strides = [1, 1]} : vector<2x48xf32> to vector<2x16xf32>
    %169 = vector.extract_strided_slice %162 {offsets = [0, 16], sizes = [2, 16], strides = [1, 1]} : vector<2x48xf32> to vector<2x16xf32>
    %170 = vector.extract_strided_slice %162 {offsets = [0, 32], sizes = [2, 16], strides = [1, 1]} : vector<2x48xf32> to vector<2x16xf32>
    %171 = vector.extract_strided_slice %167 {offsets = [0, 0], sizes = [2, 16], strides = [1, 1]} : vector<2x48xf32> to vector<2x16xf32>
    %172 = vector.extract_strided_slice %167 {offsets = [0, 16], sizes = [2, 16], strides = [1, 1]} : vector<2x48xf32> to vector<2x16xf32>
    %173 = vector.extract_strided_slice %167 {offsets = [0, 32], sizes = [2, 16], strides = [1, 1]} : vector<2x48xf32> to vector<2x16xf32>
    %174 = arith.addf %168, %171 : vector<2x16xf32>
    %cst_75 = arith.constant 0.000000e+00 : f32
    %175 = vector.broadcast %cst_75 : f32 to vector<2x16xf32>
    %176 = arith.subf %175, %174 : vector<2x16xf32>
    %177 = math.exp %176 : vector<2x16xf32>
    %cst_76 = arith.constant 1.000000e+00 : f32
    %178 = vector.broadcast %cst_76 : f32 to vector<2x16xf32>
    %179 = arith.addf %178, %177 : vector<2x16xf32>
    %cst_77 = arith.constant 1.000000e+00 : f32
    %180 = vector.broadcast %cst_77 : f32 to vector<2x16xf32>
    %181 = arith.divf %180, %179 : vector<2x16xf32>
    %182 = arith.addf %169, %172 : vector<2x16xf32>
    %cst_78 = arith.constant 0.000000e+00 : f32
    %183 = vector.broadcast %cst_78 : f32 to vector<2x16xf32>
    %184 = arith.subf %183, %182 : vector<2x16xf32>
    %185 = math.exp %184 : vector<2x16xf32>
    %cst_79 = arith.constant 1.000000e+00 : f32
    %186 = vector.broadcast %cst_79 : f32 to vector<2x16xf32>
    %187 = arith.addf %186, %185 : vector<2x16xf32>
    %cst_80 = arith.constant 1.000000e+00 : f32
    %188 = vector.broadcast %cst_80 : f32 to vector<2x16xf32>
    %189 = arith.divf %188, %187 : vector<2x16xf32>
    %190 = arith.mulf %181, %173 : vector<2x16xf32>
    %191 = arith.addf %170, %190 : vector<2x16xf32>
    %192 = math.tanh %191 : vector<2x16xf32>
    %cst_81 = arith.constant 1.000000e+00 : f32
    %193 = vector.broadcast %cst_81 : f32 to vector<2x16xf32>
    %194 = arith.subf %193, %189 : vector<2x16xf32>
    %195 = arith.mulf %194, %192 : vector<2x16xf32>
    %196 = arith.mulf %189, %157 : vector<2x16xf32>
    %197 = arith.addf %195, %196 : vector<2x16xf32>
    %c4_82 = arith.constant 4 : index
    %c0_83 = arith.constant 0 : index
    %c0_84 = arith.constant 0 : index
    %198 = vector.load %arg3[%c4_82, %c0_83, %c0_84] : memref<8x2x16xf32, #tpu.memory_space<vmem>>, vector<1x2x16xf32>
    %199 = vector.shape_cast %198 : vector<1x2x16xf32> to vector<2x16xf32>
    %200 = vector.shape_cast %197 : vector<2x16xf32> to vector<1x2x16xf32>
    tpu.vector_store %arg3[%c4_82, %c0_83, %c0_84], %200 {strides = array<i32>} : memref<8x2x16xf32, #tpu.memory_space<vmem>>, vector<1x2x16xf32>,
    %c5 = arith.constant 5 : index
    %c0_85 = arith.constant 0 : index
    %c0_86 = arith.constant 0 : index
    %201 = vector.load %arg0[%c5, %c0_85, %c0_86] : memref<8x2x48xf32, #tpu.memory_space<vmem>>, vector<1x2x48xf32>
    %202 = vector.shape_cast %201 : vector<1x2x48xf32> to vector<2x48xf32>
    %c0_87 = arith.constant 0 : index
    %c0_88 = arith.constant 0 : index
    %203 = vector.load %arg1[%c0_87, %c0_88] : memref<16x48xf32, #tpu.memory_space<vmem>>, vector<16x48xf32>
    %cst_89 = arith.constant dense<0.000000e+00> : vector<2x48xf32>
    %204 = tpu.matmul %197, %203, %cst_89 {dimension_numbers = #tpu.dot_dimension_numbers<[1], [0], [0], [1], [0, 0, 1, 1], [], []>} : vector<2x16xf32>, vector<16x48xf32>, vector<2x48xf32> -> vector<2x48xf32>
    %c0_90 = arith.constant 0 : index
    %c0_91 = arith.constant 0 : index
    %205 = vector.load %arg2[%c0_90, %c0_91] : memref<1x48xf32, #tpu.memory_space<vmem>>, vector<1x48xf32>
    %206 = vector.broadcast %205 : vector<1x48xf32> to vector<2x48xf32>
    %207 = arith.addf %204, %206 : vector<2x48xf32>
    %208 = vector.extract_strided_slice %202 {offsets = [0, 0], sizes = [2, 16], strides = [1, 1]} : vector<2x48xf32> to vector<2x16xf32>
    %209 = vector.extract_strided_slice %202 {offsets = [0, 16], sizes = [2, 16], strides = [1, 1]} : vector<2x48xf32> to vector<2x16xf32>
    %210 = vector.extract_strided_slice %202 {offsets = [0, 32], sizes = [2, 16], strides = [1, 1]} : vector<2x48xf32> to vector<2x16xf32>
    %211 = vector.extract_strided_slice %207 {offsets = [0, 0], sizes = [2, 16], strides = [1, 1]} : vector<2x48xf32> to vector<2x16xf32>
    %212 = vector.extract_strided_slice %207 {offsets = [0, 16], sizes = [2, 16], strides = [1, 1]} : vector<2x48xf32> to vector<2x16xf32>
    %213 = vector.extract_strided_slice %207 {offsets = [0, 32], sizes = [2, 16], strides = [1, 1]} : vector<2x48xf32> to vector<2x16xf32>
    %214 = arith.addf %208, %211 : vector<2x16xf32>
    %cst_92 = arith.constant 0.000000e+00 : f32
    %215 = vector.broadcast %cst_92 : f32 to vector<2x16xf32>
    %216 = arith.subf %215, %214 : vector<2x16xf32>
    %217 = math.exp %216 : vector<2x16xf32>
    %cst_93 = arith.constant 1.000000e+00 : f32
    %218 = vector.broadcast %cst_93 : f32 to vector<2x16xf32>
    %219 = arith.addf %218, %217 : vector<2x16xf32>
    %cst_94 = arith.constant 1.000000e+00 : f32
    %220 = vector.broadcast %cst_94 : f32 to vector<2x16xf32>
    %221 = arith.divf %220, %219 : vector<2x16xf32>
    %222 = arith.addf %209, %212 : vector<2x16xf32>
    %cst_95 = arith.constant 0.000000e+00 : f32
    %223 = vector.broadcast %cst_95 : f32 to vector<2x16xf32>
    %224 = arith.subf %223, %222 : vector<2x16xf32>
    %225 = math.exp %224 : vector<2x16xf32>
    %cst_96 = arith.constant 1.000000e+00 : f32
    %226 = vector.broadcast %cst_96 : f32 to vector<2x16xf32>
    %227 = arith.addf %226, %225 : vector<2x16xf32>
    %cst_97 = arith.constant 1.000000e+00 : f32
    %228 = vector.broadcast %cst_97 : f32 to vector<2x16xf32>
    %229 = arith.divf %228, %227 : vector<2x16xf32>
    %230 = arith.mulf %221, %213 : vector<2x16xf32>
    %231 = arith.addf %210, %230 : vector<2x16xf32>
    %232 = math.tanh %231 : vector<2x16xf32>
    %cst_98 = arith.constant 1.000000e+00 : f32
    %233 = vector.broadcast %cst_98 : f32 to vector<2x16xf32>
    %234 = arith.subf %233, %229 : vector<2x16xf32>
    %235 = arith.mulf %234, %232 : vector<2x16xf32>
    %236 = arith.mulf %229, %197 : vector<2x16xf32>
    %237 = arith.addf %235, %236 : vector<2x16xf32>
    %c5_99 = arith.constant 5 : index
    %c0_100 = arith.constant 0 : index
    %c0_101 = arith.constant 0 : index
    %238 = vector.load %arg3[%c5_99, %c0_100, %c0_101] : memref<8x2x16xf32, #tpu.memory_space<vmem>>, vector<1x2x16xf32>
    %239 = vector.shape_cast %238 : vector<1x2x16xf32> to vector<2x16xf32>
    %240 = vector.shape_cast %237 : vector<2x16xf32> to vector<1x2x16xf32>
    tpu.vector_store %arg3[%c5_99, %c0_100, %c0_101], %240 {strides = array<i32>} : memref<8x2x16xf32, #tpu.memory_space<vmem>>, vector<1x2x16xf32>,
    %c6 = arith.constant 6 : index
    %c0_102 = arith.constant 0 : index
    %c0_103 = arith.constant 0 : index
    %241 = vector.load %arg0[%c6, %c0_102, %c0_103] : memref<8x2x48xf32, #tpu.memory_space<vmem>>, vector<1x2x48xf32>
    %242 = vector.shape_cast %241 : vector<1x2x48xf32> to vector<2x48xf32>
    %c0_104 = arith.constant 0 : index
    %c0_105 = arith.constant 0 : index
    %243 = vector.load %arg1[%c0_104, %c0_105] : memref<16x48xf32, #tpu.memory_space<vmem>>, vector<16x48xf32>
    %cst_106 = arith.constant dense<0.000000e+00> : vector<2x48xf32>
    %244 = tpu.matmul %237, %243, %cst_106 {dimension_numbers = #tpu.dot_dimension_numbers<[1], [0], [0], [1], [0, 0, 1, 1], [], []>} : vector<2x16xf32>, vector<16x48xf32>, vector<2x48xf32> -> vector<2x48xf32>
    %c0_107 = arith.constant 0 : index
    %c0_108 = arith.constant 0 : index
    %245 = vector.load %arg2[%c0_107, %c0_108] : memref<1x48xf32, #tpu.memory_space<vmem>>, vector<1x48xf32>
    %246 = vector.broadcast %245 : vector<1x48xf32> to vector<2x48xf32>
    %247 = arith.addf %244, %246 : vector<2x48xf32>
    %248 = vector.extract_strided_slice %242 {offsets = [0, 0], sizes = [2, 16], strides = [1, 1]} : vector<2x48xf32> to vector<2x16xf32>
    %249 = vector.extract_strided_slice %242 {offsets = [0, 16], sizes = [2, 16], strides = [1, 1]} : vector<2x48xf32> to vector<2x16xf32>
    %250 = vector.extract_strided_slice %242 {offsets = [0, 32], sizes = [2, 16], strides = [1, 1]} : vector<2x48xf32> to vector<2x16xf32>
    %251 = vector.extract_strided_slice %247 {offsets = [0, 0], sizes = [2, 16], strides = [1, 1]} : vector<2x48xf32> to vector<2x16xf32>
    %252 = vector.extract_strided_slice %247 {offsets = [0, 16], sizes = [2, 16], strides = [1, 1]} : vector<2x48xf32> to vector<2x16xf32>
    %253 = vector.extract_strided_slice %247 {offsets = [0, 32], sizes = [2, 16], strides = [1, 1]} : vector<2x48xf32> to vector<2x16xf32>
    %254 = arith.addf %248, %251 : vector<2x16xf32>
    %cst_109 = arith.constant 0.000000e+00 : f32
    %255 = vector.broadcast %cst_109 : f32 to vector<2x16xf32>
    %256 = arith.subf %255, %254 : vector<2x16xf32>
    %257 = math.exp %256 : vector<2x16xf32>
    %cst_110 = arith.constant 1.000000e+00 : f32
    %258 = vector.broadcast %cst_110 : f32 to vector<2x16xf32>
    %259 = arith.addf %258, %257 : vector<2x16xf32>
    %cst_111 = arith.constant 1.000000e+00 : f32
    %260 = vector.broadcast %cst_111 : f32 to vector<2x16xf32>
    %261 = arith.divf %260, %259 : vector<2x16xf32>
    %262 = arith.addf %249, %252 : vector<2x16xf32>
    %cst_112 = arith.constant 0.000000e+00 : f32
    %263 = vector.broadcast %cst_112 : f32 to vector<2x16xf32>
    %264 = arith.subf %263, %262 : vector<2x16xf32>
    %265 = math.exp %264 : vector<2x16xf32>
    %cst_113 = arith.constant 1.000000e+00 : f32
    %266 = vector.broadcast %cst_113 : f32 to vector<2x16xf32>
    %267 = arith.addf %266, %265 : vector<2x16xf32>
    %cst_114 = arith.constant 1.000000e+00 : f32
    %268 = vector.broadcast %cst_114 : f32 to vector<2x16xf32>
    %269 = arith.divf %268, %267 : vector<2x16xf32>
    %270 = arith.mulf %261, %253 : vector<2x16xf32>
    %271 = arith.addf %250, %270 : vector<2x16xf32>
    %272 = math.tanh %271 : vector<2x16xf32>
    %cst_115 = arith.constant 1.000000e+00 : f32
    %273 = vector.broadcast %cst_115 : f32 to vector<2x16xf32>
    %274 = arith.subf %273, %269 : vector<2x16xf32>
    %275 = arith.mulf %274, %272 : vector<2x16xf32>
    %276 = arith.mulf %269, %237 : vector<2x16xf32>
    %277 = arith.addf %275, %276 : vector<2x16xf32>
    %c6_116 = arith.constant 6 : index
    %c0_117 = arith.constant 0 : index
    %c0_118 = arith.constant 0 : index
    %278 = vector.load %arg3[%c6_116, %c0_117, %c0_118] : memref<8x2x16xf32, #tpu.memory_space<vmem>>, vector<1x2x16xf32>
    %279 = vector.shape_cast %278 : vector<1x2x16xf32> to vector<2x16xf32>
    %280 = vector.shape_cast %277 : vector<2x16xf32> to vector<1x2x16xf32>
    tpu.vector_store %arg3[%c6_116, %c0_117, %c0_118], %280 {strides = array<i32>} : memref<8x2x16xf32, #tpu.memory_space<vmem>>, vector<1x2x16xf32>,
    %c7 = arith.constant 7 : index
    %c0_119 = arith.constant 0 : index
    %c0_120 = arith.constant 0 : index
    %281 = vector.load %arg0[%c7, %c0_119, %c0_120] : memref<8x2x48xf32, #tpu.memory_space<vmem>>, vector<1x2x48xf32>
    %282 = vector.shape_cast %281 : vector<1x2x48xf32> to vector<2x48xf32>
    %c0_121 = arith.constant 0 : index
    %c0_122 = arith.constant 0 : index
    %283 = vector.load %arg1[%c0_121, %c0_122] : memref<16x48xf32, #tpu.memory_space<vmem>>, vector<16x48xf32>
    %cst_123 = arith.constant dense<0.000000e+00> : vector<2x48xf32>
    %284 = tpu.matmul %277, %283, %cst_123 {dimension_numbers = #tpu.dot_dimension_numbers<[1], [0], [0], [1], [0, 0, 1, 1], [], []>} : vector<2x16xf32>, vector<16x48xf32>, vector<2x48xf32> -> vector<2x48xf32>
    %c0_124 = arith.constant 0 : index
    %c0_125 = arith.constant 0 : index
    %285 = vector.load %arg2[%c0_124, %c0_125] : memref<1x48xf32, #tpu.memory_space<vmem>>, vector<1x48xf32>
    %286 = vector.broadcast %285 : vector<1x48xf32> to vector<2x48xf32>
    %287 = arith.addf %284, %286 : vector<2x48xf32>
    %288 = vector.extract_strided_slice %282 {offsets = [0, 0], sizes = [2, 16], strides = [1, 1]} : vector<2x48xf32> to vector<2x16xf32>
    %289 = vector.extract_strided_slice %282 {offsets = [0, 16], sizes = [2, 16], strides = [1, 1]} : vector<2x48xf32> to vector<2x16xf32>
    %290 = vector.extract_strided_slice %282 {offsets = [0, 32], sizes = [2, 16], strides = [1, 1]} : vector<2x48xf32> to vector<2x16xf32>
    %291 = vector.extract_strided_slice %287 {offsets = [0, 0], sizes = [2, 16], strides = [1, 1]} : vector<2x48xf32> to vector<2x16xf32>
    %292 = vector.extract_strided_slice %287 {offsets = [0, 16], sizes = [2, 16], strides = [1, 1]} : vector<2x48xf32> to vector<2x16xf32>
    %293 = vector.extract_strided_slice %287 {offsets = [0, 32], sizes = [2, 16], strides = [1, 1]} : vector<2x48xf32> to vector<2x16xf32>
    %294 = arith.addf %288, %291 : vector<2x16xf32>
    %cst_126 = arith.constant 0.000000e+00 : f32
    %295 = vector.broadcast %cst_126 : f32 to vector<2x16xf32>
    %296 = arith.subf %295, %294 : vector<2x16xf32>
    %297 = math.exp %296 : vector<2x16xf32>
    %cst_127 = arith.constant 1.000000e+00 : f32
    %298 = vector.broadcast %cst_127 : f32 to vector<2x16xf32>
    %299 = arith.addf %298, %297 : vector<2x16xf32>
    %cst_128 = arith.constant 1.000000e+00 : f32
    %300 = vector.broadcast %cst_128 : f32 to vector<2x16xf32>
    %301 = arith.divf %300, %299 : vector<2x16xf32>
    %302 = arith.addf %289, %292 : vector<2x16xf32>
    %cst_129 = arith.constant 0.000000e+00 : f32
    %303 = vector.broadcast %cst_129 : f32 to vector<2x16xf32>
    %304 = arith.subf %303, %302 : vector<2x16xf32>
    %305 = math.exp %304 : vector<2x16xf32>
    %cst_130 = arith.constant 1.000000e+00 : f32
    %306 = vector.broadcast %cst_130 : f32 to vector<2x16xf32>
    %307 = arith.addf %306, %305 : vector<2x16xf32>
    %cst_131 = arith.constant 1.000000e+00 : f32
    %308 = vector.broadcast %cst_131 : f32 to vector<2x16xf32>
    %309 = arith.divf %308, %307 : vector<2x16xf32>
    %310 = arith.mulf %301, %293 : vector<2x16xf32>
    %311 = arith.addf %290, %310 : vector<2x16xf32>
    %312 = math.tanh %311 : vector<2x16xf32>
    %cst_132 = arith.constant 1.000000e+00 : f32
    %313 = vector.broadcast %cst_132 : f32 to vector<2x16xf32>
    %314 = arith.subf %313, %309 : vector<2x16xf32>
    %315 = arith.mulf %314, %312 : vector<2x16xf32>
    %316 = arith.mulf %309, %277 : vector<2x16xf32>
    %317 = arith.addf %315, %316 : vector<2x16xf32>
    %c7_133 = arith.constant 7 : index
    %c0_134 = arith.constant 0 : index
    %c0_135 = arith.constant 0 : index
    %318 = vector.load %arg3[%c7_133, %c0_134, %c0_135] : memref<8x2x16xf32, #tpu.memory_space<vmem>>, vector<1x2x16xf32>
    %319 = vector.shape_cast %318 : vector<1x2x16xf32> to vector<2x16xf32>
    %320 = vector.shape_cast %317 : vector<2x16xf32> to vector<1x2x16xf32>
    tpu.vector_store %arg3[%c7_133, %c0_134, %c0_135], %320 {strides = array<i32>} : memref<8x2x16xf32, #tpu.memory_space<vmem>>, vector<1x2x16xf32>,
    return
  }
}

</mosaic_0001>

<bundles_post_ra>
// kernel: cdck2_forward.6
= control target key start
LH: loop header
LB: loop body
LE: loop exit
PB: predicated region body
PF: predicated region fallthrough
CT: control target
= control target key end

     0   :  { %s1920_s18 = smov 0   ;;  %s2745_s0 = inlined_call_operand.vmem [shape: f32[512,5], index: 0, kind: input, shape index: {}]   ;;  %s2746_s1 = inlined_call_operand.vmem [shape: f32[5,28], index: 1, kind: input, shape index: {}]   ;;  %s2747_s2 = inlined_call_operand.vmem [shape: f32[1,4], index: 2, kind: input, shape index: {}]   ;;  %s2748_s3 = inlined_call_operand.vmem [shape: f32[1,28], index: 3, kind: input, shape index: {}]   ;;  %s2749_s4 = inlined_call_operand.vmem [shape: f32[1,4], index: 4, kind: input, shape index: {}]   ;;  %s2750_s5 = inlined_call_operand.vmem [shape: f32[512,32], index: 5, kind: output, shape index: {}]  }
   0x1 LB: > { %s1781_s19 = sadd.s32 4294967295, %s1884_s18   ;;  %p1785_p0 = scmp.ge.s32.totalorder %s1884_s18, 1  ;;  %s1884_s18 = sphi %s1920_s18, %s15_s18  }
   0x2   : > { %p188_p1 = scmp.lt.s32.totalorder %s1884_s18, 3 }
   0x4   : > { %p189_p2 = pnand %p1785_p0, %p188_p1 }
   0x5   : > { %s1786_s20 = sshll.u32 (!%p189_p2), %s1781_s19, 5  ;;  %s1886_s25 = smov (!%p189_p2), 127  }
   0x6   : > { %192 = sbr.rel (%p189_p2) target bundleno = 1009 (0x3f1), region = 40  ;;  %p217_p3 = scmp.lt.s32.totalorder (!%p189_p2), %s1786_s20, 63 }
   0x7   : > { %s1887_s26 = smov (!%p189_p2), 1   ;;  %s1888_s27 = smov (!%p189_p2), 126  }
   0x8   : > { %s1889_s9 = smov (!%p189_p2), 28  }
   0xb   : > { %s2752_s20 = smov (!%p217_p3, %s1786_s20), 63  ;;  %v261_v36 = vlaneseq }
   0xc   : > { %s1787_s21 = sshll.u32 %s2752_s20, 3 }
   0xd   : > { %s1936_s24 = scalar_lea.vmem %s2745_s0, %s1787_s21  ;;  %v2112_v38 = vshrl.u32 %v261_v36, 7  ;;  %s2515_s14 = scalar_lea.vmem %s2750_s5, %s1787_s21 }
   0xe   : > { %v1939_v0 = vld [vmem:[%s1936_s24 + $0x40] sm:$0xff]  ;;  %v1954_v3 = vld [vmem:[%s1936_s24 + $0x50] sm:$0xff]  ;;  %v1984_v9 = vld [vmem:[%s1936_s24 + $0x88] sm:$0xff] }
   0xf   : > { %v1942_v1 = vld [vmem:[%s1936_s24 + $0x20] sm:$0xff]  ;;  %406 = vrot.lane.b32.xlu2 %v1939_v0, %s1886_s25  ;;  %v1957_v4 = vld [vmem:[%s1936_s24 + $0x30] sm:$0xff]  ;;  %v2002_v13 = vld [vmem:[%s1936_s24 + $0x8] sm:$0xff]  ;;  %v263_v39 = vadd.s32 8, %v2112_v38  ;;  %v279_v44 = vadd.s32 136, %v2112_v38  ;;  %v281_v45 = vadd.s32 152, %v2112_v38 }
  0x10   : > { %v1945_v2 = vld [vmem:[%s1936_s24] sm:$0xff]  ;;  %398 = vrot.lane.b32.xlu1 %v1942_v1, %s1886_s25  ;;  %v1960_v5 = vld [vmem:[%s1936_s24 + $0x10] sm:$0xff]  ;;  %v2017_v16 = vld [vmem:[%s1936_s24 + $0x98] sm:$0xff]  ;;  %v265_v53 = vadd.s32 24, %v2112_v38  ;;  %v267_v59 = vadd.s32 40, %v2112_v38  ;;  %v283_v60 = vadd.s32 168, %v2112_v38 }
  0x11   : > { %390 = vrot.lane.b32.xlu0 %v1945_v2, %s1886_s25  ;;  %v1969_v6 = vld [vmem:[%s1936_s24 + $0x80] sm:$0xff]  ;;  %v1972_v7 = vld [vmem:[%s1936_s24 + $0x70] sm:$0xff]  ;;  %v2029_v18 = vld [vmem:[%s1936_s24 + $0x28] sm:$0xff]  ;;  %v295_v43 = vand.u32 15, %v263_v39  ;;  %v311_v46 = vand.u32 15, %v279_v44  ;;  %v313_v50 = vand.u32 15, %v281_v45 }
  0x12   : > { %v1975_v8 = vld [vmem:[%s1936_s24 + $0x60] sm:$0xff]  ;;  %v1990_v11 = vld [vmem:[%s1936_s24 + $0x90] sm:$0xff]  ;;  %v2035_v20 = vld [vmem:[%s1936_s24 + $0x18] sm:$0xff]  ;;  %v297_v57 = vand.u32 15, %v265_v53  ;;  %v299_v63 = vand.u32 15, %v267_v59  ;;  %v315_v39 = vand.u32 15, %v283_v60 }
  0x13   : > { %v1987_v10 = vld [vmem:[%s1936_s24 + $0xa0] sm:$0xff]  ;;  %v2005_v14 = vld [vmem:[%s1936_s24 + $0xb0] sm:$0xff]  ;;  %v2044_v21 = vld [vmem:[%s1936_s24 + $0xa8] sm:$0xff]  ;;  %vm519_vm0 = vcmp.lt.s32.totalorder %v295_v43, 15  ;;  %vm535_vm1 = vcmp.lt.s32.totalorder %v311_v46, 15  ;;  %vm537_vm2 = vcmp.lt.s32.totalorder %v313_v50, 15 }
  0x14   : > { %v1999_v12 = vld [vmem:[%s1936_s24 + $0xc0] sm:$0xff]  ;;  %v2020_v17 = vld [vmem:[%s1936_s24 + $0xd0] sm:$0xff]  ;;  %v2047_v22 = vld [vmem:[%s1936_s24 + $0x38] sm:$0xff]  ;;  %vm521_vm3 = vcmp.lt.s32.totalorder %v297_v57, 15  ;;  %vm523_vm4 = vcmp.lt.s32.totalorder %v299_v63, 15  ;;  %v280_v43 = vadd.s32 144, %v2112_v38 }
  0x15   : > { %v2014_v15 = vld [vmem:[%s1936_s24 + $0xe0] sm:$0xff]  ;;  %v2032_v19 = vld [vmem:[%s1936_s24 + $0xf0] sm:$0xff]  ;;  %v2062_v23 = vld [vmem:[%s1936_s24 + $0x48] sm:$0xff]  ;;  %vm539_vm5 = vcmp.lt.s32.totalorder %v315_v39, 15  ;;  %v294_v59 = vand.u32 15, %v2112_v38  ;;  %v278_v60 = vadd.s32 128, %v2112_v38 }
  0x16   : > { %v2065_v24 = vld [vmem:[%s1936_s24 + $0xb8] sm:$0xff]  ;;  %v2074_v25 = vld [vmem:[%s1936_s24 + $0xc8] sm:$0xff] }
  0x17   : > { %410 = vrot.lane.b32.xlu2 %v1954_v3, %s1886_s25  ;;  %v2083_v26 = vld [vmem:[%s1936_s24 + $0xd8] sm:$0xff]  ;;  %vm326_vm8 = vcmp.gt.s32.totalorder %v294_v59, 0  ;;  %v310_v39 = vand.u32 15, %v278_v60  ;;  %v266_v59 = vadd.s32 32, %v2112_v38 }
  0x18   : > { %402 = vrot.lane.b32.xlu1 %v1957_v4, %s1886_s25  ;;  %v2090_v27 = vld [vmem:[%s1936_s24 + $0x58] sm:$0xff] }
  0x19   : > { %394 = vrot.lane.b32.xlu0 %v1960_v5, %s1886_s25  ;;  %vm342_vm10 = vcmp.gt.s32.totalorder %v310_v39, 0 }
  0x1f   : > { %422 = vrot.lane.b32.xlu2 %v1969_v6, %s1886_s25 }
  0x20   : > { %418 = vrot.lane.b32.xlu1 %v1972_v7, %s1886_s25 }
  0x21   : > { %414 = vrot.lane.b32.xlu0 %v1975_v8, %s1886_s25 }
  0x27   : > { %584 = vrot.lane.b32.xlu2 %v1984_v9, %s1887_s26 }
  0x28   : > { %430 = vrot.lane.b32.xlu1 %v1987_v10, %s1886_s25 }
  0x29   : > { %426 = vrot.lane.b32.xlu0 %v1990_v11, %s1886_s25 }
  0x2f   : > { %438 = vrot.lane.b32.xlu2 %v1999_v12, %s1886_s25 }
  0x30   : > { %552 = vrot.lane.b32.xlu1 %v2002_v13, %s1887_s26 }
  0x31   : > { %434 = vrot.lane.b32.xlu0 %v2005_v14, %s1886_s25 }
  0x37   : > { %446 = vrot.lane.b32.xlu2 %v2014_v15, %s1886_s25 }
  0x38   : > { %588 = vrot.lane.b32.xlu1 %v2017_v16, %s1887_s26 }
  0x39   : > { %442 = vrot.lane.b32.xlu0 %v2020_v17, %s1886_s25 }
  0x3f   : > { %560 = vrot.lane.b32.xlu2 %v2029_v18, %s1887_s26 }
  0x40   : > { %450 = vrot.lane.b32.xlu1 %v2032_v19, %s1886_s25 }
  0x41   : > { %556 = vrot.lane.b32.xlu0 %v2035_v20, %s1887_s26 }
  0x47   : > { %742 = vrot.lane.b32.xlu2 %v1969_v6, %s1888_s27 }
  0x48   : > { %592 = vrot.lane.b32.xlu1 %v2044_v21, %s1887_s26 }
  0x49   : > { %564 = vrot.lane.b32.xlu0 %v2047_v22, %s1887_s26 }
  0x4f   : > { %714 = vrot.lane.b32.xlu2 %v1960_v5, %s1888_s27 }
  0x50   : > { %746 = vrot.lane.b32.xlu1 %v1990_v11, %s1888_s27 }
  0x51   : > { %710 = vrot.lane.b32.xlu0 %v1945_v2, %s1888_s27 }
  0x57   : > { %718 = vrot.lane.b32.xlu2 %v1942_v1, %s1888_s27 }
  0x58   : > { %568 = vrot.lane.b32.xlu1 %v2062_v23, %s1887_s26 }
  0x59   : > { %596 = vrot.lane.b32.xlu0 %v2065_v24, %s1887_s26 }
  0x5f   : > { %754 = vrot.lane.b32.xlu2 %v2005_v14, %s1888_s27 }
  0x60   : > { %750 = vrot.lane.b32.xlu1 %v1987_v10, %s1888_s27 }
  0x61   : > { %600 = vrot.lane.b32.xlu0 %v2074_v25, %s1887_s26 }
  0x67   : > { %722 = vrot.lane.b32.xlu2 %v1957_v4, %s1888_s27 }
  0x68   : > { %604 = vrot.lane.b32.xlu1 %v2083_v26, %s1887_s26 }
  0x69   : > { %v2094_v28 = vpop.permute.xlu2 %406 }
  0x70   : > { %572 = vrot.lane.b32.xlu1 %v2090_v27, %s1887_s26 }
  0x71   : > { %v2100_v31 = vpop.permute.xlu2 %410 }
  0x79   : > { %v2106_v34 = vpop.permute.xlu2 %422 }
  0x81   : > { %v585_v41 = vpop.permute.xlu2 %584 }
  0x82   : > { %v2096_v29 = vpop.permute.xlu1 %398  ;;  %v663_v51 = vsel %vm535_vm1, %v1984_v9, %v585_v41  ;;  %v269_v41 = vadd.s32 56, %v2112_v38 }
  0x83   : > { %v2098_v30 = vpop.permute.xlu0 %390  ;;  %744 = vrot.lane.b32.xlu1 %v663_v51, %s1888_s27  ;;  %v312_v51 = vand.u32 15, %v280_v43 }
  0x85   : > { %vm344_vm7 = vcmp.gt.s32.totalorder %v312_v51, 0  ;;  %v2168_v51 = vld [vmem:[%s1936_s24 + $0x68] sm:$0xff] }
  0x89   : > { %v2124_v52 = vpop.permute.xlu2 %438 }
  0x8a   : > { %v2102_v32 = vpop.permute.xlu1 %402 }
  0x8b   : > { %v2104_v33 = vpop.permute.xlu0 %394 }
  0x91   : > { %v2132_v58 = vpop.permute.xlu2 %446 }
  0x92   : > { %v2108_v35 = vpop.permute.xlu1 %418 }
  0x93   : > { %v2110_v37 = vpop.permute.xlu0 %414 }
  0x99   : > { %v561_v44 = vpop.permute.xlu2 %560 }
  0x9a   : > { %v2115_v40 = vpop.permute.xlu1 %430  ;;  %v651_v46 = vsel %vm523_vm4, %v2029_v18, %v561_v44 }
  0x9b   : > { %v427_v42 = vpop.permute.xlu0 %426 }
  0x9c   : > { %v504_v57 = vsel %vm344_vm7, %v1990_v11, %v427_v42  ;;  %v2156_v42 = vld [vmem:[%s1936_s24 + $0xe8] sm:$0xff] }
  0xa2   : > { %v553_v47 = vpop.permute.xlu1 %552 }
  0xa3   : > { %v2119_v48 = vpop.permute.xlu0 %434  ;;  %v647_v49 = vsel %vm519_vm0, %v2002_v13, %v553_v47  ;;  %v301_v47 = vand.u32 15, %v269_v41  ;;  %v486_v41 = vsel %vm326_vm8, %v1945_v2, %v2098_v30  ;;  %v264_v30 = vadd.s32 16, %v2112_v38 }
  0xa4   : > { %712 = vrot.lane.b32.xlu2 %v647_v49, %s1888_s27 }
  0xa5   : > { %vm525_vm6 = vcmp.lt.s32.totalorder %v301_v47, 15  ;;  %v502_v47 = vsel %vm342_vm10, %v1969_v6, %v2106_v34  ;;  %v282_v34 = vadd.s32 160, %v2112_v38 }
  0xaa   : > { %v589_v54 = vpop.permute.xlu1 %588 }
  0xab   : > { %v2128_v55 = vpop.permute.xlu0 %442  ;;  %v665_v56 = vsel %vm537_vm2, %v2017_v16, %v589_v54  ;;  %v285_v54 = vadd.s32 184, %v2112_v38 }
  0xac   : > { %748 = vrot.lane.b32.xlu0 %v665_v56, %s1888_s27 }
  0xb2   : > { %v2136_v61 = vpop.permute.xlu1 %450 }
  0xb3   : > { %v557_v62 = vpop.permute.xlu0 %556 }
  0xb4   : > { %v649_v36 = vsel %vm521_vm3, %v2035_v20, %v557_v62 }
  0xb5   : > { %716 = vrot.lane.b32.xlu2 %v649_v36, %s1888_s27  ;;  %v317_v36 = vand.u32 15, %v285_v54 }
  0xb7   : > { %vm541_vm9 = vcmp.lt.s32.totalorder %v317_v36, 15  ;;  %v314_v36 = vand.u32 15, %v282_v34 }
  0xb9   : > { %vm346_vm13 = vcmp.gt.s32.totalorder %v314_v36, 0 }
  0xba   : > { %v593_v45 = vpop.permute.xlu1 %592 }
  0xbb   : > { %v565_v49 = vpop.permute.xlu0 %564  ;;  %v667_v50 = vsel %vm539_vm5, %v2044_v21, %v593_v45  ;;  %v743_v45 = vpop.permute.xlu2 %742 }
  0xbc   : > { %752 = vrot.lane.b32.xlu0 %v667_v50, %s1888_s27  ;;  %v653_v53 = vsel %vm525_vm6, %v2047_v22, %v565_v49  ;;  %v287_v49 = vadd.s32 200, %v2112_v38  ;;  %v822_v50 = vmax.f32 %v502_v47, %v743_v45 }
  0xbd   : > { %720 = vrot.lane.b32.xlu2 %v651_v46, %s1888_s27 }
  0xc2   : > { %v747_v56 = vpop.permute.xlu1 %746 }
  0xc3   : > { %v824_v62 = vmax.f32 %v504_v57, %v747_v56  ;;  %v711_v63 = vpop.permute.xlu0 %710  ;;  %v319_v56 = vand.u32 15, %v287_v49  ;;  %v715_v57 = vpop.permute.xlu2 %714 }
  0xc4   : > { %724 = vrot.lane.b32.xlu0 %v653_v53, %s1888_s27  ;;  %v806_v43 = vmax.f32 %v486_v41, %v711_v63  ;;  %v296_v53 = vand.u32 15, %v264_v30 }
  0xc5   : > { %906 = vrot.lane.b32.xlu2 %v824_v62, %s1887_s26  ;;  %vm543_vm12 = vcmp.lt.s32.totalorder %v319_v56, 15  ;;  %v271_v62 = vadd.s32 72, %v2112_v38  ;;  %v284_v56 = vadd.s32 176, %v2112_v38 }
  0xc6   : > { %vm328_vm11 = vcmp.gt.s32.totalorder %v296_v53, 0 }
  0xc7   : > { %v488_v63 = vsel %vm328_vm11, %v1960_v5, %v2104_v33  ;;  %v506_v33 = vsel %vm346_vm13, %v1987_v10, %v2115_v40  ;;  %v2196_v40 = vld [vmem:[%s1936_s24 + $0xf8] sm:$0xff]  ;;  %v316_v34 = vand.u32 15, %v284_v56  ;;  %v275_v56 = vadd.s32 104, %v2112_v38 }
  0xc8   : > { %v808_v41 = vmax.f32 %v488_v63, %v715_v57  ;;  %v273_v57 = vadd.s32 88, %v2112_v38  ;;  %vm1350_vm13 = vcmask 7168  }
  0xc9   : > { %vm348_vm0 = vcmp.gt.s32.totalorder %v316_v34, 0 }
  0xca   : > { %v569_v54 = vpop.permute.xlu1 %568  ;;  %v508_v63 = vsel %vm348_vm0, %v2005_v14, %v2119_v48 }
  0xcb   : > { %v597_v44 = vpop.permute.xlu0 %596 }
  0xcc   : > { %870 = vrot.lane.b32.xlu0 %v806_v43, %s1887_s26  ;;  %v669_v46 = vsel %vm541_vm9, %v2065_v24, %v597_v44  ;;  %v298_v43 = vand.u32 15, %v266_v59  ;;  %v303_v44 = vand.u32 15, %v271_v62  ;;  %v268_v59 = vadd.s32 48, %v2112_v38 }
  0xcd   : > { %756 = vrot.lane.b32.xlu1 %v669_v46, %s1888_s27  ;;  %608 = vrot.lane.b32.xlu2 %v2156_v42, %s1887_s26  ;;  %v719_v46 = vpop.permute.xlu2 %718  ;;  %v289_v62 = vadd.s32 216, %v2112_v38  ;;  %vm1415_vm9 = vcmask 1040384  }
  0xce   : > { %vm330_vm14 = vcmp.gt.s32.totalorder %v298_v43, 0  ;;  %vm527_vm15 = vcmp.lt.s32.totalorder %v303_v44, 15 }
  0xcf   : > { %v490_v47 = vsel %vm330_vm14, %v1942_v1, %v2096_v29  ;;  %v655_v49 = vsel %vm527_vm15, %v2062_v23, %v569_v54  ;;  %v305_v29 = vand.u32 15, %v273_v57  ;;  %v321_v44 = vand.u32 15, %v289_v62 }
  0xd1   : > { %vm529_vm1 = vcmp.lt.s32.totalorder %v305_v29, 15  ;;  %vm545_vm3 = vcmp.lt.s32.totalorder %v321_v44, 15  ;;  %v286_v44 = vadd.s32 192, %v2112_v38 }
  0xd2   : > { %v751_v45 = vpop.permute.xlu1 %750 }
  0xd3   : > { %v601_v60 = vpop.permute.xlu0 %600  ;;  %v826_v30 = vmax.f32 %v506_v33, %v751_v45 }
  0xd4   : > { %758 = vrot.lane.b32.xlu0 %v1999_v12, %s1888_s27  ;;  %v671_v39 = vsel %vm543_vm12, %v2074_v25, %v601_v60 }
  0xd5   : > { %902 = vrot.lane.b32.xlu1 %v822_v50, %s1887_s26  ;;  %576 = vrot.lane.b32.xlu2 %v2168_v51, %s1887_s26  ;;  %v810_v50 = vmax.f32 %v490_v47, %v719_v46  ;;  %v755_v54 = vpop.permute.xlu2 %754 }
  0xd6   : > { %v828_v36 = vmax.f32 %v508_v63, %v755_v54  ;;  %v307_v54 = vand.u32 15, %v275_v56 }
  0xd8   : > { %vm531_vm5 = vcmp.lt.s32.totalorder %v307_v54, 15 }
  0xda   : > { %v605_v53 = vpop.permute.xlu1 %604 }
  0xdb   : > { %v673_v33 = vsel %vm545_vm3, %v2083_v26, %v605_v53  ;;  %vm1003_vm3 = vcmask 39936  }
  0xdc   : > { %726 = vrot.lane.b32.xlu0 %v1939_v0, %s1888_s27 }
  0xdd   : > { %874 = vrot.lane.b32.xlu1 %v808_v41, %s1887_s26  ;;  %760 = vrot.lane.b32.xlu2 %v671_v39, %s1888_s27  ;;  %v300_v39 = vand.u32 15, %v268_v59  ;;  %v2209_v41 = vld [vmem:[%s1936_s24 + $0x78] sm:$0xff]  ;;  %v723_v45 = vpop.permute.xlu2 %722 }
  0xdf   : > { %vm332_vm2 = vcmp.gt.s32.totalorder %v300_v39, 0 }
  0xe0   : > { %v492_v48 = vsel %vm332_vm2, %v1957_v4, %v2102_v32  ;;  %v291_v32 = vadd.s32 232, %v2112_v38  ;;  %vm1068_vm2 = vcmask 1044480  }
  0xe1   : > { %v812_v46 = vmax.f32 %v492_v48, %v723_v45 }
  0xe2   : > { %v573_v60 = vpop.permute.xlu1 %572  ;;  %v323_v53 = vand.u32 15, %v291_v32  ;;  %v270_v32 = vadd.s32 64, %v2112_v38 }
  0xe3   : > { %v657_v43 = vsel %vm529_vm1, %v2090_v27, %v573_v60 }
  0xe4   : > { %910 = vrot.lane.b32.xlu0 %v826_v30, %s1887_s26  ;;  %vm547_vm4 = vcmp.lt.s32.totalorder %v323_v53, 15  ;;  %v302_v54 = vand.u32 15, %v270_v32 }
  0xe5   : > { %728 = vrot.lane.b32.xlu1 %v655_v49, %s1888_s27  ;;  %878 = vrot.lane.b32.xlu2 %v810_v50, %s1887_s26 }
  0xe6   : > { %vm334_vm7 = vcmp.gt.s32.totalorder %v302_v54, 0 }
  0xec   : > { %612 = vrot.lane.b32.xlu0 %v2196_v40, %s1887_s26 }
  0xed   : > { %762 = vrot.lane.b32.xlu1 %v2020_v17, %s1888_s27  ;;  %730 = vrot.lane.b32.xlu2 %v1954_v3, %s1888_s27 }
  0xf4   : > { %914 = vrot.lane.b32.xlu0 %v828_v36, %s1887_s26 }
  0xf5   : > { %580 = vrot.lane.b32.xlu1 %v2209_v41, %s1887_s26  ;;  %732 = vrot.lane.b32.xlu2 %v657_v43, %s1888_s27  ;;  %v745_v63 = vpop.permute.xlu1 %744 }
  0xfc   : > { %882 = vrot.lane.b32.xlu0 %v812_v46, %s1887_s26 }
  0xfd   : > { %764 = vrot.lane.b32.xlu1 %v673_v33, %s1888_s27  ;;  %734 = vrot.lane.b32.xlu2 %v1975_v8, %s1888_s27  ;;  %v318_v33 = vand.u32 15, %v286_v44 }
  0xfe   : > { %v2225_v47 = vpop.permute.xlu2 %712 }
  0xff   : > { %vm350_vm6 = vcmp.gt.s32.totalorder %v318_v33, 0 }
 0x100   : > { %v510_v53 = vsel %vm350_vm6, %v1999_v12, %v2124_v52 }
 0x105   : > { %766 = vrot.lane.b32.xlu1 %v2014_v15, %s1888_s27 }
 0x10f   : > { %v717_v30 = vpop.permute.xlu2 %716 }
 0x110   : > { %v809_v48 = vmax.f32 %v2035_v20, %v717_v30 }
 0x117   : > { %v2227_v49 = vpop.permute.xlu2 %720 }
 0x11e   : > { %v749_v57 = vpop.permute.xlu0 %748 }
 0x11f   : > { %v2230_v50 = vpop.permute.xlu2 %906  ;;  %v825_v39 = vmax.f32 %v2017_v16, %v749_v57 }
 0x127   : > { %v609_v34 = vpop.permute.xlu2 %608 }
 0x128   : > { %v675_v29 = vsel %vm547_vm4, %v2156_v42, %v609_v34  ;;  %vm1217_vm4 = vcmask 228352  }
 0x129   : > { %768 = vrot.lane.b32.xlu1 %v675_v29, %s1888_s27 }
 0x12e   : > { %v753_v59 = vpop.permute.xlu0 %752 }
 0x12f   : > { %v577_v60 = vpop.permute.xlu2 %576  ;;  %v827_v43 = vmax.f32 %v2044_v21, %v753_v59  ;;  %v494_v59 = vsel %vm334_vm7, %v1939_v0, %v2094_v28 }
 0x130   : > { %v659_v62 = vsel %vm531_vm5, %v2168_v51, %v577_v60  ;;  %vm1692_vm5 = vcmask 261344  }
 0x131   : > { %770 = vrot.lane.b32.xlu1 %v2032_v19, %s1888_s27  ;;  %736 = vrot.lane.b32.xlu2 %v659_v62, %s1888_s27 }
 0x136   : > { %v725_v36 = vpop.permute.xlu0 %724 }
 0x137   : > { %v761_v30 = vpop.permute.xlu2 %760 }
 0x139   : > { %908 = vrot.lane.b32.xlu1 %v825_v39, %s1887_s26  ;;  %912 = vrot.lane.b32.xlu2 %v827_v43, %s1887_s26  ;;  %v293_v43 = vadd.s32 248, %v2112_v38 }
 0x13b   : > { %v325_v32 = vand.u32 15, %v293_v43 }
 0x13d   : > { %vm549_vm8 = vcmp.lt.s32.totalorder %v325_v32, 15 }
 0x13e   : > { %v871_v45 = vpop.permute.xlu0 %870 }
 0x13f   : > { %v757_v46 = vpop.permute.xlu1 %756  ;;  %v966_v57 = vmax.f32 %v1945_v2, %v871_v45  ;;  %v879_v44 = vpop.permute.xlu2 %878 }
 0x140   : > { %v970_v33 = vmax.f32 %v1942_v1, %v879_v44  ;;  %v829_v54 = vmax.f32 %v2065_v24, %v757_v46  ;;  %v998_v46 = vld [vmem:[%s2747_s2] sm:$0x1] }
 0x141   : > { %876 = vrot.lane.b32.xlu1 %v809_v48, %s1887_s26  ;;  %738 = vrot.lane.b32.xlu2 %v1972_v7, %s1888_s27  ;;  %v823_v48 = vmax.f32 %v1984_v9, %v745_v63  ;;  %v984_v63 = vmax.f32 %v1990_v11, %v2230_v50  ;;  %v813_v50 = vmax.f32 %v2047_v22, %v725_v36 }
 0x142   : > { %1823 = vmatpush.msk.msra.mxu1 %vm1415_vm9, %v998_v46  ;;  %1859 = vmatpush.msk.msra.mxu3 %vm1415_vm9, %v998_v46  ;;  %v831_v36 = vmax.f32 %v2074_v25, %v761_v30 }
 0x146   : > { %v759_v56 = vpop.permute.xlu0 %758 }
 0x147   : > { %v903_v34 = vpop.permute.xlu1 %902  ;;  %v830_v29 = vmax.f32 %v510_v53, %v759_v56  ;;  %v807_v53 = vmax.f32 %v2002_v13, %v2225_v47 }
 0x149   : > { %1286 = vrot.lane.b32.xlu2 %v966_v57, %s1888_s27  ;;  %918 = vrot.lane.b32.xlu0 %v830_v29, %s1887_s26  ;;  %v811_v57 = vmax.f32 %v2029_v18, %v2227_v49  ;;  %v982_v49 = vmax.f32 %v1969_v6, %v903_v34  ;;  %v288_v34 = vadd.s32 208, %v2112_v38 }
 0x14e   : > { %v727_v60 = vpop.permute.xlu0 %726 }
 0x14f   : > { %v875_v62 = vpop.permute.xlu1 %874  ;;  %v814_v39 = vmax.f32 %v494_v59, %v727_v60  ;;  %v731_v59 = vpop.permute.xlu2 %730 }
 0x150   : > { %v968_v52 = vmax.f32 %v1960_v5, %v875_v62 }
 0x151   : > { %886 = vrot.lane.b32.xlu0 %v814_v39, %s1887_s26 }
 0x152   : > { %1290 = vrot.lane.b32.xlu2 %v968_v52, %s1888_s27 }
 0x156   : > { %v911_v45 = vpop.permute.xlu0 %910 }
 0x157   : > { %v729_v29 = vpop.permute.xlu1 %728  ;;  %v986_v47 = vmax.f32 %v1987_v10, %v911_v45  ;;  %v2280_v62 = vpop.permute.xlu2 %732 }
 0x158   : > { %v815_v45 = vmax.f32 %v2062_v23, %v729_v29 }
 0x159   : > { %904 = vrot.lane.b32.xlu0 %v823_v48, %s1887_s26  ;;  %v320_v48 = vand.u32 15, %v288_v34 }
 0x15a   : > { %1294 = vrot.lane.b32.xlu2 %v970_v33, %s1888_s27  ;;  %v272_v33 = vadd.s32 80, %v2112_v38 }
 0x15b   : > { %vm352_vm10 = vcmp.gt.s32.totalorder %v320_v48, 0 }
 0x15c   : > { %v512_v30 = vsel %vm352_vm10, %v2020_v17, %v2128_v55  ;;  %v290_v55 = vadd.s32 224, %v2112_v38 }
 0x15e   : > { %v613_v28 = vpop.permute.xlu0 %612 }
 0x15f   : > { %v677_v56 = vsel %vm549_vm8, %v2196_v40, %v613_v28  ;;  %v763_v60 = vpop.permute.xlu1 %762  ;;  %v2290_v52 = vpop.permute.xlu2 %734 }
 0x160   : > { %772 = vrot.lane.b32.xlu1 %v677_v56, %s1888_s27  ;;  %v832_v56 = vmax.f32 %v512_v30, %v763_v60 }
 0x161   : > { %872 = vrot.lane.b32.xlu0 %v807_v53, %s1887_s26  ;;  %v304_v53 = vand.u32 15, %v272_v33 }
 0x163   : > { %vm336_vm11 = vcmp.gt.s32.totalorder %v304_v53, 0 }
 0x167   : > { %v2284_v39 = vpop.permute.xlu1 %580 }
 0x168   : > { %1322 = vrot.lane.b32.xlu1 %v984_v63, %s1888_s27  ;;  %v292_v63 = vadd.s32 240, %v2112_v38 }
 0x169   : > { %880 = vrot.lane.b32.xlu0 %v811_v57, %s1887_s26 }
 0x16f   : > { %v2293_v43 = vpop.permute.xlu1 %764 }
 0x170   : > { %1326 = vrot.lane.b32.xlu1 %v986_v47, %s1888_s27  ;;  %v496_v47 = vsel %vm336_vm11, %v1954_v3, %v2100_v31  ;;  %v322_v31 = vand.u32 15, %v290_v55 }
 0x171   : > { %916 = vrot.lane.b32.xlu0 %v829_v54, %s1887_s26  ;;  %v324_v54 = vand.u32 15, %v292_v63 }
 0x172   : > { %vm354_vm14 = vcmp.gt.s32.totalorder %v322_v31, 0 }
 0x173   : > { %vm356_vm12 = vcmp.gt.s32.totalorder %v324_v54, 0 }
 0x174   : > { %v516_v60 = vsel %vm356_vm12, %v2032_v19, %v2136_v61 }
 0x177   : > { %v767_v32 = vpop.permute.xlu1 %766 }
 0x179   : > { %884 = vrot.lane.b32.xlu0 %v813_v50, %s1887_s26  ;;  %v816_v50 = vmax.f32 %v496_v47, %v731_v59  ;;  %v514_v59 = vsel %vm354_vm14, %v2014_v15, %v2132_v58  ;;  %v277_v47 = vadd.s32 120, %v2112_v38 }
 0x17a   : > { %v834_v48 = vmax.f32 %v514_v59, %v767_v32 }
 0x181   : > { %1318 = vrot.lane.b32.xlu0 %v982_v49, %s1888_s27 }
 0x189   : > { %920 = vrot.lane.b32.xlu0 %v831_v36, %s1887_s26  ;;  %v915_v36 = vpop.permute.xlu0 %914 }
 0x18b   : > { %v737_v44 = vpop.permute.xlu2 %736 }
 0x18c   : > { %v819_v33 = vmax.f32 %v2168_v51, %v737_v44  ;;  %v309_v44 = vand.u32 15, %v277_v47 }
 0x18e   : > { %vm533_vm15 = vcmp.lt.s32.totalorder %v309_v44, 15 }
 0x191   : > { %888 = vrot.lane.b32.xlu0 %v815_v45, %s1887_s26  ;;  %v988_v45 = vmax.f32 %v2005_v14, %v915_v36  ;;  %v883_v61 = vpop.permute.xlu0 %882 }
 0x193   : > { %v913_v28 = vpop.permute.xlu2 %912 }
 0x199   : > { %922 = vrot.lane.b32.xlu0 %v832_v56, %s1887_s26 }
 0x19b   : > { %v2304_v57 = vpop.permute.xlu1 %768  ;;  %v2306_v29 = vpop.permute.xlu2 %738 }
 0x1a1   : > { %890 = vrot.lane.b32.xlu0 %v816_v50, %s1887_s26 }
 0x1a3   : > { %v771_v49 = vpop.permute.xlu1 %770  ;;  %v1287_v46 = vpop.permute.xlu2 %1286 }
 0x1a4   : > { %v2314_v34 = vmax.f32 %v516_v60, %v771_v49  ;;  %1824 = vmatmul.msk.f32.vlgmr.msra.gmra.mxu1 %vm1350_vm13, %v1287_v46  ;;  %v817_v60 = vmax.f32 %v2090_v27, %v2280_v62  ;;  %v661_v49 = vsel %vm533_vm15, %v2209_v41, %v2284_v39  ;;  %v833_v62 = vmax.f32 %v2083_v26, %v2293_v43 }
 0x1a9   : > { %1330 = vrot.lane.b32.xlu0 %v988_v45, %s1888_s27  ;;  %v987_v45 = vmax.f32 %v2044_v21, %v913_v28  ;;  %v274_v28 = vadd.s32 96, %v2112_v38 }
 0x1ab   : > { %v909_v54 = vpop.permute.xlu1 %908 }
 0x1ac   : > { %v985_v58 = vmax.f32 %v2017_v16, %v909_v54  ;;  %v835_v54 = vmax.f32 %v2156_v42, %v2304_v57  ;;  %v276_v57 = vadd.s32 112, %v2112_v38 }
 0x1b1   : > { %926 = vrot.lane.b32.xlu0 %v834_v48, %s1887_s26 }
 0x1b3   : > { %v877_v46 = vpop.permute.xlu1 %876 }
 0x1b4   : > { %v969_v31 = vmax.f32 %v2035_v20, %v877_v46 }
 0x1b9   : > { %896 = vrot.lane.b32.xlu0 %v819_v33, %s1887_s26 }
 0x1bb   : > { %v919_v30 = vpop.permute.xlu0 %918 }
 0x1c3   : > { %v887_v53 = vpop.permute.xlu0 %886 }
 0x1cb   : > { %v905_v56 = vpop.permute.xlu0 %904 }
 0x1cc   : > { %v983_v63 = vmax.f32 %v1984_v9, %v905_v56  ;;  %v306_v56 = vand.u32 15, %v274_v28 }
 0x1ce   : > { %1320 = vrot.lane.b32.xlu1 %v983_v63, %s1888_s27  ;;  %v972_v63 = vmax.f32 %v1957_v4, %v883_v61  ;;  %vm338_vm0 = vcmp.gt.s32.totalorder %v306_v56, 0 }
 0x1cf   : > { %v498_v43 = vsel %vm338_vm0, %v1975_v8, %v2110_v37  ;;  %v308_v37 = vand.u32 15, %v276_v57 }
 0x1d1   : > { %vm340_vm1 = vcmp.gt.s32.totalorder %v308_v37, 0  ;;  %v2449_v37 = vld [vmem:[%s2749_s4] ss:$0 sm:$0xff] }
 0x1d3   : > { %v873_v50 = vpop.permute.xlu0 %872 }
 0x1d4   : > { %v967_v32 = vmax.f32 %v2002_v13, %v873_v50  ;;  %v818_v50 = vmax.f32 %v498_v43, %v2290_v52  ;;  %v974_v52 = vmax.f32 %v1939_v0, %v887_v53 }
 0x1d6   : > { %1324 = vrot.lane.b32.xlu1 %v985_v58, %s1888_s27  ;;  %1288 = vrot.lane.b32.xlu2 %v967_v32, %s1888_s27  ;;  %v773_v32 = vpop.permute.xlu1 %772 }
 0x1d7   : > { %v837_v44 = vmax.f32 %v2196_v40, %v773_v32 }
 0x1db   : > { %v881_v55 = vpop.permute.xlu0 %880 }
 0x1dc   : > { %v971_v39 = vmax.f32 %v2029_v18, %v881_v55 }
 0x1de   : > { %892 = vrot.lane.b32.xlu1 %v817_v60, %s1887_s26  ;;  %740 = vrot.lane.b32.xlu2 %v661_v49, %s1888_s27  ;;  %v990_v60 = vmax.f32 %v1999_v12, %v919_v30  ;;  %v500_v49 = vsel %vm340_vm1, %v1972_v7, %v2108_v35 }
 0x1df   : > { %v820_v46 = vmax.f32 %v500_v49, %v2306_v29  ;;  %v1291_v29 = vpop.permute.xlu2 %1290 }
 0x1e3   : > { %v917_v36 = vpop.permute.xlu0 %916 }
 0x1e4   : > { %v989_v58 = vmax.f32 %v2065_v24, %v917_v36 }
 0x1e6   : > { %1328 = vrot.lane.b32.xlu1 %v987_v45, %s1888_s27  ;;  %1292 = vrot.lane.b32.xlu2 %v969_v31, %s1888_s27 }
 0x1e7   : > { %v1295_v31 = vpop.permute.xlu2 %1294 }
 0x1eb   : > { %v885_v59 = vpop.permute.xlu0 %884 }
 0x1ec   : > { %v973_v48 = vmax.f32 %v2047_v22, %v885_v59  ;;  %v1323_v59 = vpop.permute.xlu1 %1322 }
 0x1ee   : > { %924 = vrot.lane.b32.xlu2 %v833_v62, %s1887_s26  ;;  %1296 = vrot.lane.b32.xlu1 %v971_v39, %s1888_s27 }
 0x1ef   : > { %1300 = vrot.lane.b32.xlu0 %v973_v48, %s1888_s27 }
 0x1f3   : > { %v1319_v33 = vpop.permute.xlu0 %1318 }
 0x1f4   : > { %1840 = vmatmul.msk.f32.vlgmr.msra.gmra.mxu3 %vm1350_vm13, %v1319_v33  ;;  %v1327_v48 = vpop.permute.xlu1 %1326 }
 0x1f6   : > { %1298 = vrot.lane.b32.xlu2 %v972_v63, %s1888_s27  ;;  %928 = vrot.lane.b32.xlu1 %v835_v54, %s1887_s26  ;;  %v260_v54 = vld [vmem:[%s2746_s1] sm:$0x1f] }
 0x1f7   : > { %1790 = vmatpush.msk.msra.mxu0 %vm1068_vm2, %v260_v54  ;;  %1858 = vmatpush.msk.msra.mxu2 %vm1068_vm2, %v260_v54 }
 0x1f8   : > { %1791 = vmatmul.msk.f32.vlgmr.msra.gmra.mxu0 %vm1003_vm3, %v1945_v2  ;;  %1807 = vmatmul.msk.f32.vlgmr.msra.gmra.mxu2 %vm1003_vm3, %v1969_v6 }
 0x1fb   : > { %v921_v47 = vpop.permute.xlu0 %920 }
 0x1fc   : > { %v991_v61 = vmax.f32 %v2074_v25, %v921_v47 }
 0x1fe   : > { %894 = vrot.lane.b32.xlu2 %v818_v50, %s1887_s26  ;;  %1332 = vrot.lane.b32.xlu1 %v989_v58, %s1888_s27 }
 0x1ff   : > { %1336 = vrot.lane.b32.xlu0 %v991_v61, %s1888_s27 }
 0x200   : > { %1808 = vmatmul.msk.f32.gmra.mxu2 %vm1003_vm3, %v1984_v9  ;;  %1792 = vmatmul.msk.f32.gmra.mxu0 %vm1003_vm3, %v2002_v13 }
 0x203   : > { %v889_v55 = vpop.permute.xlu0 %888 }
 0x204   : > { %v975_v0 = vmax.f32 %v2062_v23, %v889_v55 }
 0x206   : > { %1334 = vrot.lane.b32.xlu2 %v990_v60, %s1888_s27  ;;  %1302 = vrot.lane.b32.xlu1 %v974_v52, %s1888_s27 }
 0x207   : > { %932 = vrot.lane.b32.xlu0 %v837_v44, %s1887_s26 }
 0x208   : > { %1809 = vmatmul.msk.f32.gmra.mxu2 %vm1003_vm3, %v1990_v11  ;;  %1793 = vmatmul.msk.f32.gmra.mxu0 %vm1003_vm3, %v1960_v5 }
 0x20b   : > { %v923_v38 = vpop.permute.xlu0 %922 }
 0x20c   : > { %v992_v53 = vmax.f32 %v2020_v17, %v923_v38 }
 0x20e   : > { %930 = vrot.lane.b32.xlu2 %v2314_v34, %s1887_s26  ;;  %898 = vrot.lane.b32.xlu1 %v820_v46, %s1887_s26 }
 0x210   : > { %1810 = vmatmul.msk.f32.gmra.mxu2 %vm1003_vm3, %v2017_v16  ;;  %1794 = vmatmul.msk.f32.gmra.mxu0 %vm1003_vm3, %v2035_v20 }
 0x213   : > { %v891_v30 = vpop.permute.xlu0 %890 }
 0x214   : > { %v976_v36 = vmax.f32 %v1954_v3, %v891_v30 }
 0x216   : > { %1304 = vrot.lane.b32.xlu2 %v975_v0, %s1888_s27  ;;  %1338 = vrot.lane.b32.xlu1 %v992_v53, %s1888_s27  ;;  %v1875_v0 = vld [vmem:[%s1936_s24 + $0x50] sm:$0xff] }
 0x217   : > { %1306 = vrot.lane.b32.xlu0 %v976_v36, %s1888_s27 }
 0x218   : > { %1811 = vmatmul.msk.f32.gmra.mxu2 %vm1003_vm3, %v1987_v10  ;;  %1795 = vmatmul.msk.f32.gmra.mxu0 %vm1003_vm3, %v1942_v1 }
 0x21b   : > { %v1331_v35 = vpop.permute.xlu0 %1330 }
 0x220   : > { %1812 = vmatmul.msk.f32.gmra.mxu2 %vm1003_vm3, %v2044_v21  ;;  %1796 = vmatmul.msk.f32.gmra.mxu0 %vm1003_vm3, %v2029_v18 }
 0x221   : > { %v1436_v49 = vpop.f32.mrf.mxu1 }
 0x223   : > { %v927_v45 = vpop.permute.xlu0 %926 }
 0x224   : > { %v994_v34 = vmax.f32 %v2014_v15, %v927_v45 }
 0x226   : > { %1342 = vrot.lane.b32.xlu0 %v994_v34, %s1888_s27 }
 0x228   : > { %1813 = vmatmul.msk.f32.gmra.mxu2 %vm1003_vm3, %v2005_v14  ;;  %1797 = vmatmul.msk.f32.gmra.mxu0 %vm1003_vm3, %v1957_v4 }
 0x22b   : > { %v897_v39 = vpop.permute.xlu0 %896 }
 0x22c   : > { %v979_v3 = vmax.f32 %v2168_v51, %v897_v39 }
 0x22e   : > { %1312 = vrot.lane.b32.xlu0 %v979_v3, %s1888_s27 }
 0x230   : > { %v1289_v62 = vpop.permute.xlu2 %1288  ;;  %1814 = vmatmul.msk.f32.gmra.mxu2 %vm1003_vm3, %v2065_v24  ;;  %1798 = vmatmul.msk.f32.gmra.mxu0 %vm1003_vm3, %v2047_v22  ;;  %v1437_v22 = vadd.f32 %v2449_v37, %v1436_v49  ;;  %v1874_v24 = vld [vmem:[%s1936_s24 + $0x40] sm:$0xff] }
 0x231   : > { %1825 = vmatmul.msk.f32.gmra.mxu1 %vm1350_vm13, %v1289_v62 }
 0x232   : > { %v1532_v46 = vmax.f32 %v1437_v22, 0.0 }
 0x238   : > { %v741_v28 = vpop.permute.xlu2 %740  ;;  %1815 = vmatmul.msk.f32.gmra.mxu2 %vm1003_vm3, %v1999_v12  ;;  %1799 = vmatmul.msk.f32.gmra.mxu0 %vm1003_vm3, %v1874_v24 }
 0x239   : > { %v821_v33 = vmax.f32 %v2209_v41, %v741_v28  ;;  %1826 = vmatmul.msk.f32.gmra.mxu1 %vm1350_vm13, %v1291_v29 }
 0x23b   : > { %900 = vrot.lane.b32.xlu2 %v821_v33, %s1887_s26 }
 0x240   : > { %v1321_v56 = vpop.permute.xlu1 %1320  ;;  %v1293_v63 = vpop.permute.xlu2 %1292  ;;  %1816 = vmatmul.msk.f32.gmra.mxu2 %vm1003_vm3, %v2074_v25  ;;  %1800 = vmatmul.msk.f32.gmra.mxu0 %vm1003_vm3, %v2062_v23  ;;  %v1876_v23 = vld [vmem:[%s1936_s24 + $0x60] sm:$0xff] }
 0x241   : > { %1827 = vmatmul.msk.f32.gmra.mxu1 %vm1350_vm13, %v1293_v63  ;;  %1841 = vmatmul.msk.f32.gmra.mxu3 %vm1350_vm13, %v1321_v56 }
 0x248   : > { %v1325_v43 = vpop.permute.xlu1 %1324  ;;  %v925_v47 = vpop.permute.xlu2 %924  ;;  %1817 = vmatmul.msk.f32.gmra.mxu2 %vm1003_vm3, %v2020_v17  ;;  %1801 = vmatmul.msk.f32.gmra.mxu0 %vm1003_vm3, %v1875_v0 }
 0x249   : > { %v993_v50 = vmax.f32 %v2083_v26, %v925_v47  ;;  %1828 = vmatmul.msk.f32.gmra.mxu1 %vm1350_vm13, %v1295_v31  ;;  %1842 = vmatmul.msk.f32.gmra.mxu3 %vm1350_vm13, %v1323_v59 }
 0x24b   : > { %1340 = vrot.lane.b32.xlu1 %v993_v50, %s1888_s27 }
 0x250   : > { %v893_v2 = vpop.permute.xlu1 %892  ;;  %v1299_v58 = vpop.permute.xlu2 %1298  ;;  %1818 = vmatmul.msk.f32.gmra.mxu2 %vm1003_vm3, %v2083_v26  ;;  %1802 = vmatmul.msk.f32.gmra.mxu0 %vm1003_vm3, %v2090_v27 }
 0x251   : > { %v977_v6 = vmax.f32 %v2090_v27, %v893_v2  ;;  %1843 = vmatmul.msk.f32.gmra.mxu3 %vm1350_vm13, %v1325_v43 }
 0x253   : > { %1308 = vrot.lane.b32.xlu2 %v977_v6, %s1888_s27 }
 0x258   : > { %v1329_v61 = vpop.permute.xlu1 %1328  ;;  %v895_v57 = vpop.permute.xlu2 %894  ;;  %1819 = vmatmul.msk.f32.gmra.mxu2 %vm1003_vm3, %v2014_v15  ;;  %1803 = vmatmul.msk.f32.gmra.mxu0 %vm1003_vm3, %v1876_v23  ;;  %v1877_v15 = vld [vmem:[%s1936_s24 + $0x70] sm:$0xff] }
 0x259   : > { %v978_v9 = vmax.f32 %v1975_v8, %v895_v57  ;;  %1844 = vmatmul.msk.f32.gmra.mxu3 %vm1350_vm13, %v1327_v48 }
 0x25b   : > { %1310 = vrot.lane.b32.xlu1 %v978_v9, %s1888_s27 }
 0x260   : > { %v1335_v13 = vpop.permute.xlu2 %1334  ;;  %v1297_v32 = vpop.permute.xlu1 %1296  ;;  %1820 = vmatmul.msk.f32.gmra.mxu2 %vm1003_vm3, %v2156_v42  ;;  %1804 = vmatmul.msk.f32.gmra.mxu0 %vm1003_vm3, %v2168_v51  ;;  %v2507_v51 = vld [vmem:[%s2748_s3] ss:$0 sm:$0xff] }
 0x261   : > { %1829 = vmatmul.msk.f32.gmra.mxu1 %vm1350_vm13, %v1297_v32  ;;  %1845 = vmatmul.msk.f32.gmra.mxu3 %vm1350_vm13, %v1329_v61  ;;  %v1301_v11 = vpop.permute.xlu0 %1300 }
 0x268   : > { %v931_v5 = vpop.permute.xlu2 %930  ;;  %v929_v8 = vpop.permute.xlu1 %928  ;;  %1821 = vmatmul.msk.f32.gmra.mxu2 %vm1003_vm3, %v2032_v19  ;;  %1805 = vmatmul.msk.f32.gmra.mxu0 %vm1003_vm3, %v1877_v15 }
 0x269   : > { %v996_v16 = vmax.f32 %v2032_v19, %v931_v5  ;;  %v995_v44 = vmax.f32 %v2156_v42, %v929_v8  ;;  %1830 = vmatmul.msk.f32.gmra.mxu1 %vm1350_vm13, %v1299_v58  ;;  %1846 = vmatmul.msk.f32.gmra.mxu3 %vm1350_vm13, %v1331_v35 }
 0x26b   : > { %1344 = vrot.lane.b32.xlu2 %v995_v44, %s1888_s27  ;;  %1346 = vrot.lane.b32.xlu1 %v996_v16, %s1888_s27 }
 0x270   : > { %v1333_v1 = vpop.permute.xlu1 %1332  ;;  %v1305_v14 = vpop.permute.xlu2 %1304  ;;  %1822 = vmatmul.msk.f32.gmra.mxu2 %vm1003_vm3, %v2196_v40  ;;  %1806 = vmatmul.msk.f32.gmra.mxu0 %vm1003_vm3, %v2209_v41 }
 0x271   : > { %v1337_v10 = vpop.permute.xlu0 %1336  ;;  %1831 = vmatmul.msk.f32.gmra.mxu1 %vm1350_vm13, %v1301_v11  ;;  %1847 = vmatmul.msk.f32.gmra.mxu3 %vm1350_vm13, %v1333_v1 }
 0x275   : > { %v1089_v36 = vpop.f32.mrf.mxu0 }
 0x276   : > { %v1090_v19 = vadd.f32 %v2507_v51, %v1089_v36 }
 0x277   : > { %v1484_v21 = vpop.f32.mrf.mxu3 }
 0x278   : > { %v1303_v20 = vpop.permute.xlu1 %1302  ;;  %v1485_v4 = vadd.f32 %v2449_v37, %v1484_v21 }
 0x279   : > { %v933_v55 = vpop.permute.xlu0 %932  ;;  %1832 = vmatmul.msk.f32.gmra.mxu1 %vm1350_vm13, %v1303_v20  ;;  %1848 = vmatmul.msk.f32.gmra.mxu3 %vm1350_vm13, %v1335_v13 }
 0x27a   : > { %v997_v18 = vmax.f32 %v2196_v40, %v933_v55  ;;  %v1548_v38 = vmax.f32 %v1485_v4, 0.0 }
 0x27b   : > { %v1137_v56 = vpop.f32.mrf.mxu2 }
 0x27c   : > { %1348 = vrot.lane.b32.xlu0 %v997_v18, %s1888_s27  ;;  %v1138_v63 = vadd.f32 %v2507_v51, %v1137_v56 }
 0x27d   : > { %v1092_v24 = vpop.f32.mrf.mxu0 }
 0x27e   : > { %v1201_v47 = vmax.f32 %v1138_v63, 0.0 }
 0x280   : > { %v899_v60 = vpop.permute.xlu1 %898  ;;  %1234 = vst.msk [vmem:[%s2515_s14 + $0x80] sm:$0xff] %vm1217_vm4, %v1201_v47 }
 0x281   : > { %v980_v52 = vmax.f32 %v1972_v7, %v899_v60  ;;  %1833 = vmatmul.msk.f32.gmra.mxu1 %vm1350_vm13, %v1305_v14  ;;  %1849 = vmatmul.msk.f32.gmra.mxu3 %vm1350_vm13, %v1337_v10 }
 0x283   : > { %1314 = vrot.lane.b32.xlu2 %v980_v52, %s1888_s27 }
 0x284   : > { %1628 = vrot.lane.b32.xlu0 %v1548_v38, %s1889_s9 }
 0x288   : > { %v1339_v7 = vpop.permute.xlu1 %1338 }
 0x289   : > { %v1307_v30 = vpop.permute.xlu0 %1306  ;;  %1850 = vmatmul.msk.f32.gmra.mxu3 %vm1350_vm13, %v1339_v7  ;;  %v1140_v7 = vpop.f32.mrf.mxu2 }
 0x28a   : > { %1834 = vmatmul.msk.f32.gmra.mxu1 %vm1350_vm13, %v1307_v30  ;;  %v1141_v30 = vadd.f32 %v2507_v51, %v1140_v7 }
 0x28b   : > { %1596 = vrot.lane.b32.xlu2 %v1532_v46, %s1889_s9  ;;  %v1093_v46 = vadd.f32 %v2507_v51, %v1092_v24 }
 0x28c   : > { %v1202_v23 = vmax.f32 %v1141_v30, 0.0 }
 0x28e   : > { %1235 = vst.msk [vmem:[%s2515_s14 + $0x88] sm:$0xff] %vm1217_vm4, %v1202_v23 }
 0x295   : > { %v901_v12 = vpop.permute.xlu2 %900 }
 0x296   : > { %v981_v53 = vmax.f32 %v2209_v41, %v901_v12  ;;  %v1185_v41 = vmax.f32 %v1090_v19, 0.0 }
 0x298   : > { %1316 = vrot.lane.b32.xlu1 %v981_v53, %s1888_s27  ;;  %v1343_v29 = vpop.permute.xlu0 %1342  ;;  %1218 = vst.msk [vmem:[%s2515_s14] sm:$0xff] %vm1217_vm4, %v1185_v41  ;;  %v1186_v53 = vmax.f32 %v1093_v46, 0.0 }
 0x29a   : > { %1219 = vst.msk [vmem:[%s2515_s14 + $0x8] sm:$0xff] %vm1217_vm4, %v1186_v53 }
 0x2a0   : > { %v1313_v50 = vpop.permute.xlu0 %1312 }
 0x2ad   : > { %v1309_v17 = vpop.permute.xlu2 %1308 }
 0x2ae   : > { %v1439_v25 = vpop.f32.mrf.mxu1  ;;  %1835 = vmatmul.msk.f32.gmra.mxu1 %vm1350_vm13, %v1309_v17 }
 0x2af   : > { %v1440_v26 = vadd.f32 %v2449_v37, %v1439_v25 }
 0x2b1   : > { %v1533_v27 = vmax.f32 %v1440_v26, 0.0 }
 0x2b3   : > { %1598 = vrot.lane.b32.xlu0 %v1533_v27, %s1889_s9 }
 0x2b6   : > { %v1442_v35 = vpop.f32.mrf.mxu1 }
 0x2b7   : > { %v1443_v31 = vadd.f32 %v2449_v37, %v1442_v35 }
 0x2b9   : > { %v1534_v28 = vmax.f32 %v1443_v31, 0.0  ;;  %v1095_v31 = vpop.f32.mrf.mxu0 }
 0x2bd   : > { %v1341_v42 = vpop.permute.xlu1 %1340 }
 0x2be   : > { %1851 = vmatmul.msk.f32.gmra.mxu3 %vm1350_vm13, %v1341_v42  ;;  %v1445_v59 = vpop.f32.mrf.mxu1 }
 0x2bf   : > { %v1446_v54 = vadd.f32 %v2449_v37, %v1445_v59  ;;  %v1143_v59 = vpop.f32.mrf.mxu2 }
 0x2c1   : > { %v1535_v6 = vmax.f32 %v1446_v54, 0.0 }
 0x2c4   : > { %v1487_v40 = vpop.f32.mrf.mxu3 }
 0x2c5   : > { %v1488_v45 = vadd.f32 %v2449_v37, %v1487_v40  ;;  %v1345_v39 = vpop.permute.xlu2 %1344 }
 0x2c6   : > { %1852 = vmatmul.msk.f32.gmra.mxu3 %vm1350_vm13, %v1343_v29  ;;  %v1448_v58 = vpop.f32.mrf.mxu1 }
 0x2c7   : > { %v1549_v34 = vmax.f32 %v1488_v45, 0.0  ;;  %v1449_v57 = vadd.f32 %v2449_v37, %v1448_v58 }
 0x2c9   : > { %1630 = vrot.lane.b32.xlu1 %v1549_v34, %s1889_s9  ;;  %v1536_v11 = vmax.f32 %v1449_v57, 0.0 }
 0x2cc   : > { %v1490_v62 = vpop.f32.mrf.mxu3 }
 0x2cd   : > { %v1491_v3 = vadd.f32 %v2449_v37, %v1490_v62  ;;  %v1311_v48 = vpop.permute.xlu1 %1310 }
 0x2ce   : > { %1836 = vmatmul.msk.f32.gmra.mxu1 %vm1350_vm13, %v1311_v48  ;;  %1853 = vmatmul.msk.f32.gmra.mxu3 %vm1350_vm13, %v1345_v39  ;;  %v1144_v48 = vadd.f32 %v2507_v51, %v1143_v59 }
 0x2cf   : > { %v1550_v33 = vmax.f32 %v1491_v3, 0.0  ;;  %v1096_v3 = vadd.f32 %v2507_v51, %v1095_v31 }
 0x2d0   : > { %v1203_v56 = vmax.f32 %v1144_v48, 0.0 }
 0x2d1   : > { %1632 = vrot.lane.b32.xlu2 %v1550_v33, %s1889_s9  ;;  %1600 = vrot.lane.b32.xlu1 %v1534_v28, %s1889_s9  ;;  %v1187_v33 = vmax.f32 %v1096_v3, 0.0 }
 0x2d2   : > { %1236 = vst.msk [vmem:[%s2515_s14 + $0x90] sm:$0xff] %vm1217_vm4, %v1203_v56 }
 0x2d3   : > { %1220 = vst.msk [vmem:[%s2515_s14 + $0x10] sm:$0xff] %vm1217_vm4, %v1187_v33 }
 0x2d4   : > { %v1493_v43 = vpop.f32.mrf.mxu3 }
 0x2d5   : > { %v1494_v2 = vadd.f32 %v2449_v37, %v1493_v43 }
 0x2d6   : > { %1837 = vmatmul.msk.f32.gmra.mxu1 %vm1350_vm13, %v1313_v50  ;;  %v1098_v50 = vpop.f32.mrf.mxu0 }
 0x2d7   : > { %v1551_v61 = vmax.f32 %v1494_v2, 0.0  ;;  %v1146_v2 = vpop.f32.mrf.mxu2 }
 0x2d8   : > { %v1147_v57 = vadd.f32 %v2507_v51, %v1146_v2 }
 0x2d9   : > { %1602 = vrot.lane.b32.xlu2 %v1535_v6, %s1889_s9  ;;  %1634 = vrot.lane.b32.xlu0 %v1551_v61, %s1889_s9  ;;  %v1099_v61 = vadd.f32 %v2507_v51, %v1098_v50 }
 0x2dc   : > { %v1496_v9 = vpop.f32.mrf.mxu3 }
 0x2dd   : > { %v1497_v13 = vadd.f32 %v2449_v37, %v1496_v9  ;;  %v1315_v32 = vpop.permute.xlu2 %1314  ;;  %v1347_v5 = vpop.permute.xlu1 %1346  ;;  %v1188_v9 = vmax.f32 %v1099_v61, 0.0 }
 0x2de   : > { %v1451_v8 = vpop.f32.mrf.mxu1  ;;  %1838 = vmatmul.msk.f32.gmra.mxu1 %vm1350_vm13, %v1315_v32  ;;  %1854 = vmatmul.msk.f32.gmra.mxu3 %vm1350_vm13, %v1347_v5  ;;  %v1101_v32 = vpop.f32.mrf.mxu0 }
 0x2df   : > { %v1552_v16 = vmax.f32 %v1497_v13, 0.0  ;;  %v1452_v44 = vadd.f32 %v2449_v37, %v1451_v8  ;;  %v1204_v13 = vmax.f32 %v1147_v57, 0.0  ;;  %1221 = vst.msk [vmem:[%s2515_s14 + $0x18] sm:$0xff] %vm1217_vm4, %v1188_v9  ;;  %v1149_v5 = vpop.f32.mrf.mxu2  ;;  %v1102_v8 = vadd.f32 %v2507_v51, %v1101_v32 }
 0x2e1   : > { %1636 = vrot.lane.b32.xlu1 %v1552_v16, %s1889_s9  ;;  %1604 = vrot.lane.b32.xlu0 %v1536_v11, %s1889_s9  ;;  %v1537_v18 = vmax.f32 %v1452_v44, 0.0  ;;  %1237 = vst.msk [vmem:[%s2515_s14 + $0x98] sm:$0xff] %vm1217_vm4, %v1204_v13  ;;  %v1150_v11 = vadd.f32 %v2507_v51, %v1149_v5  ;;  %v1189_v16 = vmax.f32 %v1102_v8, 0.0 }
 0x2e3   : > { %v1205_v44 = vmax.f32 %v1150_v11, 0.0  ;;  %1222 = vst.msk [vmem:[%s2515_s14 + $0x20] sm:$0xff] %vm1217_vm4, %v1189_v16 }
 0x2e4   : > { %v1499_v1 = vpop.f32.mrf.mxu3 }
 0x2e5   : > { %v1500_v10 = vadd.f32 %v2449_v37, %v1499_v1  ;;  %v1597_v20 = vpop.permute.xlu2 %1596  ;;  %1238 = vst.msk [vmem:[%s2515_s14 + $0xa0] sm:$0xff] %vm1217_vm4, %v1205_v44 }
 0x2e6   : > { %1693 = vst.msk [vmem:[%s2515_s14] sm:$0xff] %vm1692_vm5, %v1597_v20  ;;  %v1454_v55 = vpop.f32.mrf.mxu1  ;;  %v1104_v1 = vpop.f32.mrf.mxu0 }
 0x2e7   : > { %v1553_v21 = vmax.f32 %v1500_v10, 0.0  ;;  %v1455_v4 = vadd.f32 %v2449_v37, %v1454_v55  ;;  %v1152_v10 = vpop.f32.mrf.mxu2  ;;  %v1105_v20 = vadd.f32 %v2507_v51, %v1104_v1 }
 0x2e8   : > { %v1153_v55 = vadd.f32 %v2507_v51, %v1152_v10 }
 0x2e9   : > { %1638 = vrot.lane.b32.xlu2 %v1553_v21, %s1889_s9  ;;  %1606 = vrot.lane.b32.xlu1 %v1537_v18, %s1889_s9  ;;  %v1538_v38 = vmax.f32 %v1455_v4, 0.0  ;;  %v1190_v18 = vmax.f32 %v1105_v20, 0.0 }
 0x2ea   : > { %v1206_v21 = vmax.f32 %v1153_v55, 0.0 }
 0x2eb   : > { %1223 = vst.msk [vmem:[%s2515_s14 + $0x28] sm:$0xff] %vm1217_vm4, %v1190_v18 }
 0x2ec   : > { %v1502_v14 = vpop.f32.mrf.mxu3  ;;  %1239 = vst.msk [vmem:[%s2515_s14 + $0xa8] sm:$0xff] %vm1217_vm4, %v1206_v21 }
 0x2ed   : > { %v1503_v60 = vadd.f32 %v2449_v37, %v1502_v14 }
 0x2ee   : > { %v1349_v52 = vpop.permute.xlu0 %1348  ;;  %v1457_v49 = vpop.f32.mrf.mxu1 }
 0x2ef   : > { %v1554_v22 = vmax.f32 %v1503_v60, 0.0  ;;  %1855 = vmatmul.msk.f32.gmra.mxu3 %vm1350_vm13, %v1349_v52  ;;  %v1458_v12 = vadd.f32 %v2449_v37, %v1457_v49  ;;  %v1155_v14 = vpop.f32.mrf.mxu2  ;;  %v1107_v60 = vpop.f32.mrf.mxu0 }
 0x2f0   : > { %v1156_v52 = vadd.f32 %v2507_v51, %v1155_v14  ;;  %v1108_v49 = vadd.f32 %v2507_v51, %v1107_v60 }
 0x2f1   : > { %1608 = vrot.lane.b32.xlu2 %v1538_v38, %s1889_s9  ;;  %1640 = vrot.lane.b32.xlu0 %v1554_v22, %s1889_s9  ;;  %v1539_v27 = vmax.f32 %v1458_v12, 0.0 }
 0x2f2   : > { %v1207_v38 = vmax.f32 %v1156_v52, 0.0  ;;  %v1191_v22 = vmax.f32 %v1108_v49, 0.0 }
 0x2f4   : > { %v1505_v0 = vpop.f32.mrf.mxu3  ;;  %1240 = vst.msk [vmem:[%s2515_s14 + $0xb0] sm:$0xff] %vm1217_vm4, %v1207_v38 }
 0x2f5   : > { %v1506_v17 = vadd.f32 %v2449_v37, %v1505_v0  ;;  %1224 = vst.msk [vmem:[%s2515_s14 + $0x30] sm:$0xff] %vm1217_vm4, %v1191_v22 }
 0x2f6   : > { %v1629_v25 = vpop.permute.xlu0 %1628  ;;  %v1460_v26 = vpop.f32.mrf.mxu1 }
 0x2f7   : > { %v1555_v15 = vmax.f32 %v1506_v17, 0.0  ;;  %1709 = vst.msk [vmem:[%s2515_s14 + $0x80] sm:$0xff] %vm1692_vm5, %v1629_v25  ;;  %v1461_v42 = vadd.f32 %v2449_v37, %v1460_v26  ;;  %v1158_v12 = vpop.f32.mrf.mxu2  ;;  %v1110_v0 = vpop.f32.mrf.mxu0 }
 0x2f8   : > { %v1159_v53 = vadd.f32 %v2507_v51, %v1158_v12  ;;  %v1111_v23 = vadd.f32 %v2507_v51, %v1110_v0 }
 0x2f9   : > { %1642 = vrot.lane.b32.xlu1 %v1555_v15, %s1889_s9  ;;  %1610 = vrot.lane.b32.xlu0 %v1539_v27, %s1889_s9  ;;  %v1540_v40 = vmax.f32 %v1461_v42, 0.0 }
 0x2fa   : > { %v1208_v17 = vmax.f32 %v1159_v53, 0.0  ;;  %v1192_v25 = vmax.f32 %v1111_v23, 0.0 }
 0x2fc   : > { %v1508_v36 = vpop.f32.mrf.mxu3  ;;  %1241 = vst.msk [vmem:[%s2515_s14 + $0xb8] sm:$0xff] %vm1217_vm4, %v1208_v17 }
 0x2fd   : > { %v1509_v35 = vadd.f32 %v2449_v37, %v1508_v36  ;;  %1225 = vst.msk [vmem:[%s2515_s14 + $0x38] sm:$0xff] %vm1217_vm4, %v1192_v25 }
 0x2fe   : > { %v1463_v19 = vpop.f32.mrf.mxu1 }
 0x2ff   : > { %v1556_v41 = vmax.f32 %v1509_v35, 0.0  ;;  %v1464_v29 = vadd.f32 %v2449_v37, %v1463_v19  ;;  %v1113_v27 = vpop.f32.mrf.mxu0  ;;  %v1161_v15 = vpop.f32.mrf.mxu2 }
 0x300   : > { %v1114_v42 = vadd.f32 %v2507_v51, %v1113_v27  ;;  %v1162_v36 = vadd.f32 %v2507_v51, %v1161_v15 }
 0x301   : > { %1644 = vrot.lane.b32.xlu2 %v1556_v41, %s1889_s9  ;;  %1612 = vrot.lane.b32.xlu1 %v1540_v40, %s1889_s9  ;;  %v1541_v62 = vmax.f32 %v1464_v29, 0.0 }
 0x302   : > { %v1193_v35 = vmax.f32 %v1114_v42, 0.0  ;;  %v1209_v19 = vmax.f32 %v1162_v36, 0.0 }
 0x304   : > { %v1511_v45 = vpop.f32.mrf.mxu3  ;;  %1226 = vst.msk [vmem:[%s2515_s14 + $0x40] sm:$0xff] %vm1217_vm4, %v1193_v35 }
 0x305   : > { %v1512_v34 = vadd.f32 %v2449_v37, %v1511_v45  ;;  %1242 = vst.msk [vmem:[%s2515_s14 + $0xc0] sm:$0xff] %vm1217_vm4, %v1209_v19 }
 0x307   : > { %v1557_v39 = vmax.f32 %v1512_v34, 0.0  ;;  %v1466_v28 = vpop.f32.mrf.mxu1  ;;  %v1116_v41 = vpop.f32.mrf.mxu0 }
 0x308   : > { %v1467_v54 = vadd.f32 %v2449_v37, %v1466_v28  ;;  %v1117_v29 = vadd.f32 %v2507_v51, %v1116_v41 }
 0x309   : > { %1614 = vrot.lane.b32.xlu2 %v1541_v62, %s1889_s9  ;;  %1646 = vrot.lane.b32.xlu0 %v1557_v39, %s1889_s9 }
 0x30a   : > { %v1317_v63 = vpop.permute.xlu1 %1316  ;;  %v1542_v58 = vmax.f32 %v1467_v54, 0.0  ;;  %v1194_v31 = vmax.f32 %v1117_v29, 0.0 }
 0x30b   : > { %1839 = vmatmul.msk.f32.gmra.mxu1 %vm1350_vm13, %v1317_v63 }
 0x30c   : > { %v1514_v43 = vpop.f32.mrf.mxu3  ;;  %1227 = vst.msk [vmem:[%s2515_s14 + $0x48] sm:$0xff] %vm1217_vm4, %v1194_v31 }
 0x30d   : > { %v1515_v47 = vadd.f32 %v2449_v37, %v1514_v43 }
 0x30f   : > { %v1558_v6 = vmax.f32 %v1515_v47, 0.0  ;;  %v1119_v8 = vpop.f32.mrf.mxu0 }
 0x310   : > { %v1120_v16 = vadd.f32 %v2507_v51, %v1119_v8 }
 0x311   : > { %1648 = vrot.lane.b32.xlu1 %v1558_v6, %s1889_s9  ;;  %1616 = vrot.lane.b32.xlu0 %v1542_v58, %s1889_s9  ;;  %v1164_v6 = vpop.f32.mrf.mxu2 }
 0x312   : > { %v1165_v61 = vadd.f32 %v2507_v51, %v1164_v6  ;;  %v1195_v20 = vmax.f32 %v1120_v16, 0.0 }
 0x314   : > { %v1210_v9 = vmax.f32 %v1165_v61, 0.0  ;;  %1228 = vst.msk [vmem:[%s2515_s14 + $0x50] sm:$0xff] %vm1217_vm4, %v1195_v20 }
 0x316   : > { %1243 = vst.msk [vmem:[%s2515_s14 + $0xc8] sm:$0xff] %vm1217_vm4, %v1210_v9 }
 0x317   : > { %v1122_v12 = vpop.f32.mrf.mxu0 }
 0x318   : > { %v1123_v53 = vadd.f32 %v2507_v51, %v1122_v12 }
 0x319   : > { %v1167_v44 = vpop.f32.mrf.mxu2 }
 0x31a   : > { %v1168_v1 = vadd.f32 %v2507_v51, %v1167_v44  ;;  %v1196_v17 = vmax.f32 %v1123_v53, 0.0 }
 0x31c   : > { %v1211_v18 = vmax.f32 %v1168_v1, 0.0  ;;  %1229 = vst.msk [vmem:[%s2515_s14 + $0x58] sm:$0xff] %vm1217_vm4, %v1196_v17 }
 0x31e   : > { %1244 = vst.msk [vmem:[%s2515_s14 + $0xd0] sm:$0xff] %vm1217_vm4, %v1211_v18 }
 0x31f   : > { %v1125_v15 = vpop.f32.mrf.mxu0 }
 0x320   : > { %v1126_v42 = vadd.f32 %v2507_v51, %v1125_v15 }
 0x322   : > { %v1197_v36 = vmax.f32 %v1126_v42, 0.0 }
 0x324   : > { %1230 = vst.msk [vmem:[%s2515_s14 + $0x60] sm:$0xff] %vm1217_vm4, %v1197_v36 }
 0x325   : > { %v1599_v4 = vpop.permute.xlu0 %1598 }
 0x326   : > { %1694 = vst.msk [vmem:[%s2515_s14 + $0x8] sm:$0xff] %vm1692_vm5, %v1599_v4 }
 0x32b   : > { %v1633_v24 = vpop.permute.xlu2 %1632  ;;  %v1469_v7 = vpop.f32.mrf.mxu1 }
 0x32c   : > { %1711 = vst.msk [vmem:[%s2515_s14 + $0x90] sm:$0xff] %vm1692_vm5, %v1633_v24  ;;  %v1470_v46 = vadd.f32 %v2449_v37, %v1469_v7 }
 0x32e   : > { %v1543_v30 = vmax.f32 %v1470_v46, 0.0 }
 0x330   : > { %1618 = vrot.lane.b32.xlu1 %v1543_v30, %s1889_s9  ;;  %v1170_v30 = vpop.f32.mrf.mxu2 }
 0x331   : > { %v1171_v0 = vadd.f32 %v2507_v51, %v1170_v30 }
 0x333   : > { %v1603_v26 = vpop.permute.xlu2 %1602  ;;  %v1212_v23 = vmax.f32 %v1171_v0, 0.0 }
 0x334   : > { %1696 = vst.msk [vmem:[%s2515_s14 + $0x18] sm:$0xff] %vm1692_vm5, %v1603_v26 }
 0x335   : > { %1245 = vst.msk [vmem:[%s2515_s14 + $0xd8] sm:$0xff] %vm1217_vm4, %v1212_v23 }
 0x338   : > { %v1173_v41 = vpop.f32.mrf.mxu2 }
 0x339   : > { %v1174_v29 = vadd.f32 %v2507_v51, %v1173_v41 }
 0x33b   : > { %v1631_v40 = vpop.permute.xlu1 %1630 }
 0x33c   : > { %1710 = vst.msk [vmem:[%s2515_s14 + $0x88] sm:$0xff] %vm1692_vm5, %v1631_v40 }
 0x341   : > { %v1517_v45 = vpop.f32.mrf.mxu3 }
 0x342   : > { %v1518_v34 = vadd.f32 %v2449_v37, %v1517_v45  ;;  %v1213_v45 = vmax.f32 %v1174_v29, 0.0 }
 0x343   : > { %v1639_v59 = vpop.permute.xlu2 %1638  ;;  %v1601_v62 = vpop.permute.xlu1 %1600 }
 0x344   : > { %v1559_v39 = vmax.f32 %v1518_v34, 0.0  ;;  %1714 = vst.msk [vmem:[%s2515_s14 + $0xa8] sm:$0xff] %vm1692_vm5, %v1639_v59 }
 0x345   : > { %1695 = vst.msk [vmem:[%s2515_s14 + $0x10] sm:$0xff] %vm1692_vm5, %v1601_v62  ;;  %v1128_v62 = vpop.f32.mrf.mxu0 }
 0x346   : > { %1650 = vrot.lane.b32.xlu2 %v1559_v39, %s1889_s9  ;;  %1246 = vst.msk [vmem:[%s2515_s14 + $0xe0] sm:$0xff] %vm1217_vm4, %v1213_v45 }
 0x349   : > { %v1520_v3 = vpop.f32.mrf.mxu3 }
 0x34a   : > { %v1521_v48 = vadd.f32 %v2449_v37, %v1520_v3  ;;  %v1129_v3 = vadd.f32 %v2507_v51, %v1128_v62 }
 0x34b   : > { %v1609_v28 = vpop.permute.xlu2 %1608  ;;  %v1472_v33 = vpop.f32.mrf.mxu1 }
 0x34c   : > { %v1560_v56 = vmax.f32 %v1521_v48, 0.0  ;;  %1699 = vst.msk [vmem:[%s2515_s14 + $0x30] sm:$0xff] %vm1692_vm5, %v1609_v28  ;;  %v1473_v63 = vadd.f32 %v2449_v37, %v1472_v33  ;;  %v1635_v54 = vpop.permute.xlu0 %1634  ;;  %v1198_v48 = vmax.f32 %v1129_v3, 0.0 }
 0x34d   : > { %1712 = vst.msk [vmem:[%s2515_s14 + $0x98] sm:$0xff] %vm1692_vm5, %v1635_v54  ;;  %v1131_v28 = vpop.f32.mrf.mxu0 }
 0x34e   : > { %v1544_v43 = vmax.f32 %v1473_v63, 0.0  ;;  %1652 = vrot.lane.b32.xlu0 %v1560_v56, %s1889_s9  ;;  %1231 = vst.msk [vmem:[%s2515_s14 + $0x68] sm:$0xff] %vm1217_vm4, %v1198_v48  ;;  %v1132_v33 = vadd.f32 %v2507_v51, %v1131_v28  ;;  %v1176_v63 = vpop.f32.mrf.mxu2 }
 0x34f   : > { %v1177_v54 = vadd.f32 %v2507_v51, %v1176_v63 }
 0x350   : > { %1620 = vrot.lane.b32.xlu2 %v1544_v43, %s1889_s9  ;;  %v1199_v56 = vmax.f32 %v1132_v33, 0.0 }
 0x351   : > { %v1523_v55 = vpop.f32.mrf.mxu3  ;;  %v1214_v43 = vmax.f32 %v1177_v54, 0.0 }
 0x352   : > { %v1524_v21 = vadd.f32 %v2449_v37, %v1523_v55  ;;  %1232 = vst.msk [vmem:[%s2515_s14 + $0x70] sm:$0xff] %vm1217_vm4, %v1199_v56 }
 0x353   : > { %v1637_v47 = vpop.permute.xlu1 %1636  ;;  %v1475_v50 = vpop.f32.mrf.mxu1  ;;  %1247 = vst.msk [vmem:[%s2515_s14 + $0xe8] sm:$0xff] %vm1217_vm4, %v1214_v43 }
 0x354   : > { %1713 = vst.msk [vmem:[%s2515_s14 + $0xa0] sm:$0xff] %vm1692_vm5, %v1637_v47  ;;  %v1476_v2 = vadd.f32 %v2449_v37, %v1475_v50  ;;  %v1605_v58 = vpop.permute.xlu0 %1604  ;;  %v1561_v60 = vmax.f32 %v1524_v21, 0.0 }
 0x355   : > { %1697 = vst.msk [vmem:[%s2515_s14 + $0x20] sm:$0xff] %vm1692_vm5, %v1605_v58  ;;  %v1134_v47 = vpop.f32.mrf.mxu0 }
 0x356   : > { %v1545_v57 = vmax.f32 %v1476_v2, 0.0  ;;  %v1179_v50 = vpop.f32.mrf.mxu2  ;;  %v1135_v2 = vadd.f32 %v2507_v51, %v1134_v47 }
 0x357   : > { %v1180_v58 = vadd.f32 %v2507_v51, %v1179_v50 }
 0x358   : > { %1622 = vrot.lane.b32.xlu0 %v1545_v57, %s1889_s9  ;;  %v1200_v6 = vmax.f32 %v1135_v2, 0.0 }
 0x359   : > { %v1215_v61 = vmax.f32 %v1180_v58, 0.0 }
 0x35a   : > { %1233 = vst.msk [vmem:[%s2515_s14 + $0x78] sm:$0xff] %vm1217_vm4, %v1200_v6 }
 0x35b   : > { %v1607_v13 = vpop.permute.xlu1 %1606  ;;  %v1645_v32 = vpop.permute.xlu2 %1644  ;;  %1248 = vst.msk [vmem:[%s2515_s14 + $0xf0] sm:$0xff] %vm1217_vm4, %v1215_v61 }
 0x35c   : > { %1698 = vst.msk [vmem:[%s2515_s14 + $0x28] sm:$0xff] %vm1692_vm5, %v1607_v13  ;;  %v1478_v5 = vpop.f32.mrf.mxu1 }
 0x35d   : > { %1717 = vst.msk [vmem:[%s2515_s14 + $0xc0] sm:$0xff] %vm1692_vm5, %v1645_v32  ;;  %v1479_v11 = vadd.f32 %v2449_v37, %v1478_v5 }
 0x35e   : > { %v1182_v9 = vpop.f32.mrf.mxu2 }
 0x35f   : > { %v1546_v10 = vmax.f32 %v1479_v11, 0.0  ;;  %v1183_v13 = vadd.f32 %v2507_v51, %v1182_v9 }
 0x361   : > { %1624 = vrot.lane.b32.xlu1 %v1546_v10, %s1889_s9  ;;  %v1526_v52 = vpop.f32.mrf.mxu3  ;;  %v1216_v5 = vmax.f32 %v1183_v13, 0.0 }
 0x362   : > { %v1527_v34 = vadd.f32 %v2449_v37, %v1526_v52 }
 0x363   : > { %v1615_v4 = vpop.permute.xlu2 %1614  ;;  %v1641_v14 = vpop.permute.xlu0 %1640  ;;  %1249 = vst.msk [vmem:[%s2515_s14 + $0xf8] sm:$0xff] %vm1217_vm4, %v1216_v5 }
 0x364   : > { %1702 = vst.msk [vmem:[%s2515_s14 + $0x48] sm:$0xff] %vm1692_vm5, %v1615_v4  ;;  %v1562_v31 = vmax.f32 %v1527_v34, 0.0 }
 0x365   : > { %1715 = vst.msk [vmem:[%s2515_s14 + $0xb0] sm:$0xff] %vm1692_vm5, %v1641_v14 }
 0x369   : > { %1654 = vrot.lane.b32.xlu1 %v1561_v60, %s1889_s9 }
 0x36b   : > { %v1643_v49 = vpop.permute.xlu1 %1642  ;;  %v1611_v38 = vpop.permute.xlu0 %1610 }
 0x36c   : > { %1716 = vst.msk [vmem:[%s2515_s14 + $0xb8] sm:$0xff] %vm1692_vm5, %v1643_v49 }
 0x36d   : > { %1700 = vst.msk [vmem:[%s2515_s14 + $0x38] sm:$0xff] %vm1692_vm5, %v1611_v38 }
 0x372   : > { %v1529_v22 = vpop.f32.mrf.mxu3 }
 0x373   : > { %v1613_v24 = vpop.permute.xlu1 %1612  ;;  %v1530_v7 = vadd.f32 %v2449_v37, %v1529_v22 }
 0x374   : > { %1701 = vst.msk [vmem:[%s2515_s14 + $0x40] sm:$0xff] %vm1692_vm5, %v1613_v24 }
 0x375   : > { %v1563_v46 = vmax.f32 %v1530_v7, 0.0 }
 0x377   : > { %1658 = vrot.lane.b32.xlu0 %v1563_v46, %s1889_s9 }
 0x37b   : > { %v1647_v25 = vpop.permute.xlu0 %1646 }
 0x37c   : > { %1718 = vst.msk [vmem:[%s2515_s14 + $0xc8] sm:$0xff] %vm1692_vm5, %v1647_v25 }
 0x383   : > { %v1649_v26 = vpop.permute.xlu1 %1648  ;;  %v1617_v27 = vpop.permute.xlu0 %1616 }
 0x384   : > { %1719 = vst.msk [vmem:[%s2515_s14 + $0xd0] sm:$0xff] %vm1692_vm5, %v1649_v26 }
 0x385   : > { %1703 = vst.msk [vmem:[%s2515_s14 + $0x50] sm:$0xff] %vm1692_vm5, %v1617_v27 }
 0x388   : > { %v1481_v35 = vpop.f32.mrf.mxu1 }
 0x389   : > { %v1482_v19 = vadd.f32 %v2449_v37, %v1481_v35 }
 0x38b   : > { %v1547_v40 = vmax.f32 %v1482_v19, 0.0 }
 0x38d   : > { %1626 = vrot.lane.b32.xlu2 %v1547_v40, %s1889_s9 }
 0x395   : > { %1656 = vrot.lane.b32.xlu2 %v1562_v31, %s1889_s9 }
 0x3a0   : > { %v1651_v59 = vpop.permute.xlu2 %1650 }
 0x3a1   : > { %1720 = vst.msk [vmem:[%s2515_s14 + $0xd8] sm:$0xff] %vm1692_vm5, %v1651_v59 }
 0x3a2   : > { %v1619_v39 = vpop.permute.xlu1 %1618 }
 0x3a3   : > { %1704 = vst.msk [vmem:[%s2515_s14 + $0x58] sm:$0xff] %vm1692_vm5, %v1619_v39 }
 0x3aa   : > { %v1621_v37 = vpop.permute.xlu2 %1620 }
 0x3ab   : > { %1705 = vst.msk [vmem:[%s2515_s14 + $0x60] sm:$0xff] %vm1692_vm5, %v1621_v37 }
 0x3c0   : > { %v1653_v57 = vpop.permute.xlu0 %1652 }
 0x3c1   : > { %1721 = vst.msk [vmem:[%s2515_s14 + $0xe0] sm:$0xff] %vm1692_vm5, %v1653_v57 }
 0x3ca   : > { %v1623_v32 = vpop.permute.xlu0 %1622 }
 0x3cb   : > { %1706 = vst.msk [vmem:[%s2515_s14 + $0x68] sm:$0xff] %vm1692_vm5, %v1623_v32 }
 0x3d3   : > { %v1625_v8 = vpop.permute.xlu1 %1624 }
 0x3d4   : > { %1707 = vst.msk [vmem:[%s2515_s14 + $0x70] sm:$0xff] %vm1692_vm5, %v1625_v8 }
 0x3db   : > { %v1655_v11 = vpop.permute.xlu1 %1654 }
 0x3dc   : > { %1722 = vst.msk [vmem:[%s2515_s14 + $0xe8] sm:$0xff] %vm1692_vm5, %v1655_v11 }
 0x3e7   : > { %v1627_v16 = vpop.permute.xlu2 %1626 }
 0x3e8   : > { %1708 = vst.msk [vmem:[%s2515_s14 + $0x78] sm:$0xff] %vm1692_vm5, %v1627_v16 }
 0x3e9   : > { %v1659_v44 = vpop.permute.xlu0 %1658 }
 0x3ea   : > { %1724 = vst.msk [vmem:[%s2515_s14 + $0xf8] sm:$0xff] %vm1692_vm5, %v1659_v44 }
 0x3ef   : > { %v1657_v1 = vpop.permute.xlu2 %1656 }
 0x3f0   : > { %1723 = vst.msk [vmem:[%s2515_s14 + $0xf0] sm:$0xff] %vm1692_vm5, %v1657_v1 }
 0x3f1 PF: > { %s15_s18 = sadd.s32 1, %s1884_s18  }
 0x3f2   : > { %p12_p4 = scmp.ge.s32.totalorder %s15_s18, 4  }
 0x3f4   :  { %14 = sbr.rel (!%p12_p4) target bundleno = 1 (0x1), region = 70 }

// kernel: cdck2_forward.7
= control target key start
LH: loop header
LB: loop body
LE: loop exit
PB: predicated region body
PF: predicated region fallthrough
CT: control target
= control target key end

     0   :  { %s1299_s18 = smov 0   ;;  %s1964_s0 = inlined_call_operand.vmem [shape: f32[256,160], index: 0, kind: input, shape index: {}]   ;;  %s1965_s1 = inlined_call_operand.vmem [shape: f32[160,28], index: 1, kind: input, shape index: {}]   ;;  %s1966_s2 = inlined_call_operand.vmem [shape: f32[32,4], index: 2, kind: input, shape index: {}]   ;;  %s1967_s3 = inlined_call_operand.vmem [shape: f32[1,28], index: 3, kind: input, shape index: {}]   ;;  %s1968_s4 = inlined_call_operand.vmem [shape: f32[1,4], index: 4, kind: input, shape index: {}]   ;;  %s1969_s5 = inlined_call_operand.vmem [shape: f32[256,32], index: 5, kind: output, shape index: {}]  }
   0x1 LB: > { %s1174_s19 = sadd.s32 4294967295, %s1263_s18   ;;  %p1178_p0 = scmp.ge.s32.totalorder %s1263_s18, 1  ;;  %s1263_s18 = sphi %s1299_s18, %s15_s18  }
   0x2   : > { %p189_p1 = scmp.lt.s32.totalorder %s1263_s18, 3 }
   0x4   : > { %p190_p2 = pnand %p1178_p0, %p189_p1 }
   0x5   : > { %s1179_s20 = sshll.u32 (!%p190_p2), %s1174_s19, 4  ;;  %s1265_s25 = smov (!%p190_p2), 32  }
   0x6   : > { %193 = sbr.rel (%p190_p2) target bundleno = 906 (0x38a), region = 40  ;;  %p219_p3 = scmp.lt.s32.totalorder (!%p190_p2), %s1179_s20, 31 }
   0x7   : > { %s1266_s26 = smov (!%p190_p2), 96   ;;  %s1267_s27 = smov (!%p190_p2), 64  }
   0xb   : > { %s1973_s20 = smov (!%p219_p3, %s1179_s20), 31  ;;  %v283_v11 = vlaneseq }
   0xc   : > { %s1218_s21 = sshll.u32 %s1973_s20, 4 }
   0xd   : > { %s1313_s24 = scalar_lea.vmem %s1964_s0, %s1218_s21  ;;  %v1389_v13 = vshrl.u32 %v283_v11, 7 }
   0xe   : > { %v1316_v0 = vld [vmem:[%s1313_s24] sm:$0xff]  ;;  %v1331_v3 = vld [vmem:[%s1313_s24 + $0x10] sm:$0xff] }
   0xf   : > { %v1319_v1 = vld [vmem:[%s1313_s24 + $0x20] sm:$0xff]  ;;  %428 = vrot.lane.b32.xlu0 %v1316_v0, %s1265_s25  ;;  %v1334_v4 = vld [vmem:[%s1313_s24 + $0x30] sm:$0xff]  ;;  %v300_v14 = vand.u32 7, %v1389_v13  ;;  %v1400_v16 = vadd.s32 8, %v1389_v13  ;;  %v1408_v20 = vadd.s32 16, %v1389_v13  ;;  %v1423_v26 = vadd.s32 24, %v1389_v13 }
  0x10   : > { %432 = vrot.lane.b32.xlu1 %v1319_v1, %s1265_s25  ;;  %v1326_v2 = vld [vmem:[%s1313_s24 + $0x40] sm:$0xff]  ;;  %v1343_v5 = vld [vmem:[%s1313_s24 + $0x50] sm:$0xff]  ;;  %v1441_v32 = vadd.s32 32, %v1389_v13  ;;  %v1444_v34 = vadd.s32 48, %v1389_v13  ;;  %v1457_v39 = vadd.s32 40, %v1389_v13  ;;  %v291_v44 = vadd.s32 56, %v1389_v13 }
  0x11   : > { %436 = vrot.lane.b32.xlu2 %v1326_v2, %s1265_s25  ;;  %v1346_v6 = vld [vmem:[%s1313_s24 + $0xb0] sm:$0xff]  ;;  %v1355_v7 = vld [vmem:[%s1313_s24 + $0x60] sm:$0xff]  ;;  %vm412_vm0 = vcmp.lt.s32.totalorder %v300_v14, 7  ;;  %v301_v19 = vand.u32 7, %v1400_v16  ;;  %v302_v22 = vand.u32 7, %v1408_v20  ;;  %v303_v28 = vand.u32 7, %v1423_v26 }
  0x12   : > { %v1358_v8 = vld [vmem:[%s1313_s24 + $0x70] sm:$0xff]  ;;  %v1380_v10 = vld [vmem:[%s1313_s24 + $0x80] sm:$0xff]  ;;  %v304_v36 = vand.u32 7, %v1441_v32  ;;  %v306_v37 = vand.u32 7, %v1444_v34  ;;  %v305_v42 = vand.u32 7, %v1457_v39  ;;  %v307_v46 = vand.u32 7, %v291_v44 }
  0x13   : > { %v1367_v9 = vld [vmem:[%s1313_s24 + $0xd0] sm:$0xff]  ;;  %v1393_v15 = vld [vmem:[%s1313_s24 + $0xa0] sm:$0xff]  ;;  %vm413_vm1 = vcmp.lt.s32.totalorder %v301_v19, 7  ;;  %vm414_vm2 = vcmp.lt.s32.totalorder %v302_v22, 7  ;;  %vm415_vm3 = vcmp.lt.s32.totalorder %v303_v28, 7  ;;  %v1472_v48 = vadd.s32 88, %v1389_v13 }
  0x14   : > { %v1385_v12 = vld [vmem:[%s1313_s24 + $0x90] sm:$0xff]  ;;  %v1416_v25 = vld [vmem:[%s1313_s24 + $0xc0] sm:$0xff]  ;;  %vm416_vm4 = vcmp.lt.s32.totalorder %v304_v36, 7  ;;  %vm418_vm5 = vcmp.lt.s32.totalorder %v306_v37, 7  ;;  %vm417_vm6 = vcmp.lt.s32.totalorder %v305_v42, 7  ;;  %vm419_vm7 = vcmp.lt.s32.totalorder %v307_v46, 7 }
  0x15   : > { %v1429_v29 = vld [vmem:[%s1313_s24 + $0xe0] sm:$0xff]  ;;  %v1432_v30 = vld [vmem:[%s1313_s24 + $0xf0] sm:$0xff]  ;;  %v311_v50 = vand.u32 7, %v1472_v48  ;;  %vm1485_vm9 = vcmp.gt.s32.totalorder %v307_v46, 0  ;;  %v1494_v59 = vadd.s32 64, %v1389_v13  ;;  %vm316_vm11 = vcmp.gt.s32.totalorder %v300_v14, 0 }
  0x16   : > { %vm317_vm12 = vcmp.gt.s32.totalorder %v301_v19, 0  ;;  %vm318_vm13 = vcmp.gt.s32.totalorder %v302_v22, 0  ;;  %v1522_v16 = vadd.s32 80, %v1389_v13  ;;  %vm319_vm15 = vcmp.gt.s32.totalorder %v303_v28, 0 }
  0x17   : > { %430 = vrot.lane.b32.xlu0 %v1331_v3, %s1265_s25  ;;  %vm423_vm8 = vcmp.lt.s32.totalorder %v311_v50, 7  ;;  %v308_v60 = vand.u32 7, %v1494_v59  ;;  %v1560_v32 = vadd.s32 112, %v1389_v13 }
  0x18   : > { %434 = vrot.lane.b32.xlu1 %v1334_v4, %s1265_s25  ;;  %v310_v46 = vand.u32 7, %v1522_v16  ;;  %v1632_v16 = vld [vmem:[%s1966_s2 + $0x8] sm:$0xff] }
  0x19   : > { %348 = vrot.lane.b32.xlu2 %v1316_v0, %s1266_s26  ;;  %vm420_vm10 = vcmp.lt.s32.totalorder %v308_v60, 7  ;;  %v314_v39 = vand.u32 7, %v1560_v32 }
  0x1f   : > { %438 = vrot.lane.b32.xlu0 %v1343_v5, %s1265_s25 }
  0x20   : > { %450 = vrot.lane.b32.xlu1 %v1346_v6, %s1265_s25 }
  0x21   : > { %350 = vrot.lane.b32.xlu2 %v1331_v3, %s1266_s26 }
  0x27   : > { %440 = vrot.lane.b32.xlu0 %v1355_v7, %s1265_s25 }
  0x28   : > { %362 = vrot.lane.b32.xlu1 %v1358_v8, %s1266_s26 }
  0x29   : > { %352 = vrot.lane.b32.xlu2 %v1319_v1, %s1266_s26 }
  0x2f   : > { %442 = vrot.lane.b32.xlu0 %v1358_v8, %s1265_s25 }
  0x30   : > { %454 = vrot.lane.b32.xlu1 %v1367_v9, %s1265_s25 }
  0x31   : > { %354 = vrot.lane.b32.xlu2 %v1334_v4, %s1266_s26 }
  0x37   : > { %444 = vrot.lane.b32.xlu0 %v1380_v10, %s1265_s25 }
  0x39   : > { %356 = vrot.lane.b32.xlu2 %v1326_v2, %s1266_s26 }
  0x3f   : > { %446 = vrot.lane.b32.xlu0 %v1385_v12, %s1265_s25 }
  0x41   : > { %358 = vrot.lane.b32.xlu2 %v1343_v5, %s1266_s26 }
  0x47   : > { %448 = vrot.lane.b32.xlu0 %v1393_v15, %s1265_s25 }
  0x49   : > { %452 = vrot.lane.b32.xlu2 %v1416_v25, %s1265_s25 }
  0x4f   : > { %360 = vrot.lane.b32.xlu0 %v1355_v7, %s1266_s26 }
  0x51   : > { %458 = vrot.lane.b32.xlu2 %v1432_v30, %s1265_s25 }
  0x57   : > { %456 = vrot.lane.b32.xlu0 %v1429_v29, %s1265_s25 }
  0x59   : > { %366 = vrot.lane.b32.xlu2 %v1385_v12, %s1266_s26 }
  0x5f   : > { %364 = vrot.lane.b32.xlu0 %v1380_v10, %s1266_s26 }
  0x6b   : > { %v437_v38 = vpop.permute.xlu2 %436 }
  0x6c   : > { %v480_v40 = vsel %vm416_vm4, %v1326_v2, %v437_v38 }
  0x73   : > { %v349_v52 = vpop.permute.xlu2 %348 }
  0x7b   : > { %v351_v54 = vpop.permute.xlu2 %350 }
  0x81   : > { %v429_v17 = vpop.permute.xlu0 %428 }
  0x82   : > { %v476_v18 = vsel %vm412_vm0, %v1316_v0, %v429_v17  ;;  %v433_v24 = vpop.permute.xlu1 %432  ;;  %vm422_vm0 = vcmp.lt.s32.totalorder %v310_v46, 7 }
  0x83   : > { %508 = vrot.lane.b32.xlu1 %v476_v18, %s1267_s27  ;;  %v478_v27 = vsel %vm414_vm2, %v1319_v1, %v433_v24  ;;  %v353_v58 = vpop.permute.xlu2 %352  ;;  %vm320_vm2 = vcmp.gt.s32.totalorder %v304_v36, 0 }
  0x84   : > { %v398_v19 = vsel %vm318_vm13, %v1319_v1, %v353_v58 }
  0x89   : > { %v431_v21 = vpop.permute.xlu0 %430 }
  0x8a   : > { %v477_v23 = vsel %vm413_vm1, %v1331_v3, %v431_v21  ;;  %v435_v31 = vpop.permute.xlu1 %434  ;;  %v396_v21 = vsel %vm316_vm11, %v1316_v0, %v349_v52  ;;  %vm322_vm1 = vcmp.gt.s32.totalorder %v306_v37, 0  ;;  %vm327_vm11 = vcmp.gt.s32.totalorder %v311_v50, 0 }
  0x8b   : > { %510 = vrot.lane.b32.xlu1 %v477_v23, %s1267_s27  ;;  %v479_v35 = vsel %vm415_vm3, %v1334_v4, %v435_v31  ;;  %v355_v61 = vpop.permute.xlu2 %354  ;;  %v1510_v31 = vadd.s32 72, %v1389_v13  ;;  %vm321_vm3 = vcmp.gt.s32.totalorder %v305_v42, 0 }
  0x8c   : > { %v399_v22 = vsel %vm319_vm15, %v1334_v4, %v355_v61  ;;  %vm660_vm15 = vcmask 261120  }
  0x8d   : > { %v309_v14 = vand.u32 7, %v1510_v31 }
  0x8f   : > { %vm421_vm14 = vcmp.lt.s32.totalorder %v309_v14, 7 }
  0x91   : > { %v439_v33 = vpop.permute.xlu0 %438 }
  0x92   : > { %v481_v45 = vsel %vm417_vm6, %v1343_v5, %v439_v33  ;;  %v451_v51 = vpop.permute.xlu1 %450  ;;  %v397_v33 = vsel %vm317_vm12, %v1331_v3, %v351_v54  ;;  %v1547_v54 = vadd.s32 96, %v1389_v13  ;;  %vm330_vm12 = vcmp.gt.s32.totalorder %v314_v39, 0 }
  0x93   : > { %512 = vrot.lane.b32.xlu1 %v478_v27, %s1267_s27  ;;  %v487_v53 = vsel %vm423_vm8, %v1346_v6, %v451_v51  ;;  %v357_v11 = vpop.permute.xlu2 %356  ;;  %vm324_vm8 = vcmp.gt.s32.totalorder %v308_v60, 0 }
  0x94   : > { %v400_v58 = vsel %vm320_vm2, %v1326_v2, %v357_v11  ;;  %vm1101_vm2 = vcmask 261344  }
  0x99   : > { %v441_v41 = vpop.permute.xlu0 %440 }
  0x9a   : > { %v482_v43 = vsel %vm418_vm5, %v1355_v7, %v441_v41  ;;  %v1481_v55 = vpop.permute.xlu1 %362  ;;  %vm426_vm5 = vcmp.lt.s32.totalorder %v314_v39, 7 }
  0x9b   : > { %514 = vrot.lane.b32.xlu1 %v479_v35, %s1267_s27  ;;  %520 = vrot.lane.b32.xlu2 %v482_v43, %s1267_s27  ;;  %v403_v57 = vsel %vm1485_vm9, %v1358_v8, %v1481_v55  ;;  %v359_v17 = vpop.permute.xlu2 %358  ;;  %vm325_vm9 = vcmp.gt.s32.totalorder %v309_v14, 0 }
  0x9c   : > { %v401_v36 = vsel %vm321_vm3, %v1343_v5, %v359_v17 }
  0xa1   : > { %v443_v47 = vpop.permute.xlu0 %442 }
  0xa2   : > { %v483_v49 = vsel %vm419_vm7, %v1358_v8, %v443_v47  ;;  %v1501_v18 = vpop.permute.xlu1 %454 }
  0xa3   : > { %516 = vrot.lane.b32.xlu1 %v480_v40, %s1267_s27  ;;  %v453_v23 = vpop.permute.xlu2 %452 }
  0xa9   : > { %v445_v62 = vpop.permute.xlu0 %444 }
  0xaa   : > { %v484_v63 = vsel %vm420_vm10, %v1380_v10, %v445_v62  ;;  %v312_v62 = vand.u32 7, %v1547_v54  ;;  %vm326_vm10 = vcmp.gt.s32.totalorder %v310_v46, 0 }
  0xab   : > { %518 = vrot.lane.b32.xlu1 %v481_v45, %s1267_s27  ;;  %524 = vrot.lane.b32.xlu0 %v484_v63, %s1267_s27  ;;  %v459_v41 = vpop.permute.xlu2 %458  ;;  %v1564_v63 = vadd.s32 104, %v1389_v13 }
  0xac   : > { %vm424_vm4 = vcmp.lt.s32.totalorder %v312_v62, 7  ;;  %vm328_vm13 = vcmp.gt.s32.totalorder %v312_v62, 0 }
  0xad   : > { %v313_v42 = vand.u32 7, %v1564_v63 }
  0xaf   : > { %vm425_vm6 = vcmp.lt.s32.totalorder %v313_v42, 7 }
  0xb1   : > { %v447_v38 = vpop.permute.xlu0 %446 }
  0xb2   : > { %v485_v44 = vsel %vm421_vm14, %v1385_v12, %v447_v38  ;;  %vm329_vm14 = vcmp.gt.s32.totalorder %v313_v42, 0 }
  0xb3   : > { %522 = vrot.lane.b32.xlu1 %v483_v49, %s1267_s27  ;;  %v1531_v20 = vpop.permute.xlu2 %366 }
  0xb4   : > { %v405_v60 = vsel %vm325_vm9, %v1385_v12, %v1531_v20 }
  0xb9   : > { %v449_v47 = vpop.permute.xlu0 %448 }
  0xba   : > { %v486_v51 = vsel %vm422_vm0, %v1393_v15, %v449_v47 }
  0xbb   : > { %530 = vrot.lane.b32.xlu1 %v487_v53, %s1267_s27 }
  0xc1   : > { %v361_v53 = vpop.permute.xlu0 %360 }
  0xc2   : > { %v402_v28 = vsel %vm322_vm1, %v1355_v7, %v361_v53  ;;  %vm855_vm1 = vcmask 228352  }
  0xc3   : > { %372 = vrot.lane.b32.xlu1 %v1416_v25, %s1266_s26 }
  0xf5   : > { %v509_v24 = vpop.permute.xlu1 %508  ;;  %v521_v26 = vpop.permute.xlu2 %520 }
  0xf6   : > { %v556_v27 = vmax.f32 %v396_v21, %v509_v24  ;;  %v562_v37 = vmax.f32 %v402_v28, %v521_v26  ;;  %v488_v21 = vsel %vm424_vm4, %v1416_v25, %v453_v23  ;;  %v489_v23 = vsel %vm425_vm6, %v1367_v9, %v1501_v18  ;;  %v1621_v28 = vld [vmem:[%s1966_s2 + $0x18] sm:$0xff] }
  0xf7   : > { %968 = vmatpush.msra.mxu2 %v1621_v28 }
  0xf8   : > { %588 = vrot.lane.b32.xlu2 %v556_v27, %s1265_s25  ;;  %v457_v27 = vpop.permute.xlu0 %456 }
  0xf9   : > { %v490_v17 = vsel %vm426_vm5, %v1429_v29, %v457_v27 }
  0xfd   : > { %v511_v35 = vpop.permute.xlu1 %510 }
  0xfe   : > { %v557_v40 = vmax.f32 %v397_v33, %v511_v35  ;;  %v1581_v33 = vadd.s32 120, %v1389_v13 }
 0x100   : > { %368 = vrot.lane.b32.xlu2 %v1393_v15, %s1266_s26  ;;  %590 = vrot.lane.b32.xlu0 %v557_v40, %s1265_s25  ;;  %v315_v35 = vand.u32 7, %v1581_v33  ;;  %v277_v33 = vld [vmem:[%s1965_s1 + $0x70] sm:$0xff] }
 0x102   : > { %vm427_vm7 = vcmp.lt.s32.totalorder %v315_v35, 7  ;;  %vm331_vm0 = vcmp.gt.s32.totalorder %v315_v35, 0  ;;  %v276_v35 = vld [vmem:[%s1965_s1 + $0x68] sm:$0xff] }
 0x103   : > { %v491_v38 = vsel %vm427_vm7, %v1432_v30, %v459_v41 }
 0x105   : > { %v513_v43 = vpop.permute.xlu1 %512 }
 0x106   : > { %v558_v45 = vmax.f32 %v398_v19, %v513_v43  ;;  %v365_v43 = vpop.permute.xlu0 %364 }
 0x107   : > { %v404_v41 = vsel %vm324_vm8, %v1380_v10, %v365_v43 }
 0x108   : > { %592 = vrot.lane.b32.xlu2 %v558_v45, %s1265_s25  ;;  %526 = vrot.lane.b32.xlu0 %v485_v44, %s1267_s27 }
 0x10d   : > { %v515_v49 = vpop.permute.xlu1 %514 }
 0x10e   : > { %v559_v52 = vmax.f32 %v399_v22, %v515_v49 }
 0x110   : > { %594 = vrot.lane.b32.xlu1 %v559_v52, %s1265_s25  ;;  %528 = vrot.lane.b32.xlu0 %v486_v51, %s1267_s27 }
 0x111   : > { %376 = vrot.lane.b32.xlu2 %v1429_v29, %s1266_s26 }
 0x115   : > { %v517_v34 = vpop.permute.xlu1 %516 }
 0x116   : > { %v560_v61 = vmax.f32 %v400_v58, %v517_v34  ;;  %v1626_v58 = vld [vmem:[%s1966_s2 + $0x10] sm:$0xff] }
 0x117   : > { %969 = vmatpush.msra.mxu2 %v1626_v58 }
 0x118   : > { %596 = vrot.lane.b32.xlu1 %v560_v61, %s1265_s25  ;;  %370 = vrot.lane.b32.xlu0 %v1346_v6, %s1266_s26  ;;  %v1640_v61 = vld [vmem:[%s1966_s2] sm:$0xff] }
 0x119   : > { %600 = vrot.lane.b32.xlu2 %v562_v37, %s1265_s25  ;;  %970 = vmatpush.msra.mxu2 %v1632_v16 }
 0x11b   : > { %971 = vmatpush.msra.mxu2 %v1640_v61 }
 0x11d   : > { %v519_v11 = vpop.permute.xlu1 %518  ;;  %v525_v44 = vpop.permute.xlu0 %524 }
 0x11e   : > { %v561_v24 = vmax.f32 %v401_v36, %v519_v11  ;;  %v564_v45 = vmax.f32 %v404_v41, %v525_v44 }
 0x120   : > { %598 = vrot.lane.b32.xlu1 %v561_v24, %s1265_s25  ;;  %532 = vrot.lane.b32.xlu0 %v488_v21, %s1267_s27 }
 0x125   : > { %v523_v19 = vpop.permute.xlu1 %522 }
 0x126   : > { %v563_v13 = vmax.f32 %v403_v57, %v523_v19 }
 0x128   : > { %534 = vrot.lane.b32.xlu0 %v489_v23, %s1267_s27  ;;  %536 = vrot.lane.b32.xlu1 %v490_v17, %s1267_s27 }
 0x12d   : > { %v531_v47 = vpop.permute.xlu1 %530 }
 0x130   : > { %374 = vrot.lane.b32.xlu1 %v1367_v9, %s1266_s26 }
 0x135   : > { %v373_v59 = vpop.permute.xlu1 %372 }
 0x138   : > { %538 = vrot.lane.b32.xlu1 %v491_v38, %s1267_s27  ;;  %v408_v38 = vsel %vm328_vm13, %v1416_v25, %v373_v59  ;;  %v273_v59 = vld [vmem:[%s1965_s1 + $0x50] sm:$0xff] }
 0x152   : > { %v589_v18 = vpop.permute.xlu2 %588 }
 0x153   : > { %v636_v40 = vmax.f32 %v1316_v0, %v589_v18 }
 0x155   : > { %892 = vrot.lane.b32.xlu2 %v636_v40, %s1267_s27 }
 0x15a   : > { %v369_v56 = vpop.permute.xlu2 %368 }
 0x15b   : > { %v406_v20 = vsel %vm326_vm10, %v1393_v15, %v369_v56 }
 0x15d   : > { %602 = vrot.lane.b32.xlu2 %v563_v13, %s1265_s25 }
 0x162   : > { %v593_v57 = vpop.permute.xlu2 %592 }
 0x163   : > { %v638_v51 = vmax.f32 %v1319_v1, %v593_v57  ;;  %v274_v57 = vld [vmem:[%s1965_s1 + $0x58] sm:$0xff] }
 0x165   : > { %378 = vrot.lane.b32.xlu2 %v1432_v30, %s1266_s26 }
 0x16b   : > { %v377_v14 = vpop.permute.xlu2 %376 }
 0x16c   : > { %v410_v50 = vsel %vm330_vm12, %v1429_v29, %v377_v14  ;;  %v280_v14 = vld [vmem:[%s1965_s1 + $0x88] sm:$0xff] }
 0x16d   : > { %604 = vrot.lane.b32.xlu2 %v564_v45, %s1265_s25 }
 0x172   : > { %v591_v22 = vpop.permute.xlu0 %590 }
 0x173   : > { %v637_v55 = vmax.f32 %v1331_v3, %v591_v22  ;;  %v601_v11 = vpop.permute.xlu2 %600  ;;  %v278_v22 = vld [vmem:[%s1965_s1 + $0x78] sm:$0xff] }
 0x174   : > { %v642_v27 = vmax.f32 %v1355_v7, %v601_v11  ;;  %709 = vmatpush.msra.mxu0 %v278_v22  ;;  %1219 = vmatpush.msra.mxu3 %v278_v22 }
 0x175   : > { %894 = vrot.lane.b32.xlu0 %v637_v55, %s1267_s27  ;;  %v275_v55 = vld [vmem:[%s1965_s1 + $0x60] sm:$0xff] }
 0x176   : > { %710 = vmatpush.msra.mxu0 %v277_v33  ;;  %1220 = vmatpush.msra.mxu3 %v277_v33 }
 0x178   : > { %711 = vmatpush.msra.mxu0 %v276_v35  ;;  %1221 = vmatpush.msra.mxu3 %v276_v35 }
 0x17a   : > { %v527_v49 = vpop.permute.xlu0 %526  ;;  %712 = vmatpush.msra.mxu0 %v275_v55  ;;  %1222 = vmatpush.msra.mxu3 %v275_v55  ;;  %v1820_v55 = vld [vmem:[%s1967_s3] ss:$0 sm:$0xff] }
 0x17b   : > { %v565_v52 = vmax.f32 %v405_v60, %v527_v49  ;;  %v272_v60 = vld [vmem:[%s1965_s1 + $0x48] sm:$0xff]  ;;  %v282_v49 = vld [vmem:[%s1965_s1 + $0x98] sm:$0xff] }
 0x17c   : > { %713 = vmatpush.msra.mxu0 %v274_v57  ;;  %1223 = vmatpush.msra.mxu3 %v274_v57 }
 0x17d   : > { %896 = vrot.lane.b32.xlu0 %v638_v51, %s1267_s27  ;;  %606 = vrot.lane.b32.xlu1 %v565_v52, %s1265_s25  ;;  %v271_v51 = vld [vmem:[%s1965_s1 + $0x40] sm:$0xff]  ;;  %v270_v52 = vld [vmem:[%s1965_s1 + $0x38] sm:$0xff] }
 0x17e   : > { %714 = vmatpush.msra.mxu0 %v273_v59  ;;  %1224 = vmatpush.msra.mxu3 %v273_v59 }
 0x17f   : > { %786 = vmatpush.msra.mxu1 %v282_v49 }
 0x180   : > { %715 = vmatpush.msra.mxu0 %v272_v60  ;;  %1225 = vmatpush.msra.mxu3 %v272_v60 }
 0x182   : > { %v595_v53 = vpop.permute.xlu1 %594  ;;  %v529_v31 = vpop.permute.xlu0 %528  ;;  %716 = vmatpush.msra.mxu0 %v271_v51  ;;  %1226 = vmatpush.msra.mxu3 %v271_v51 }
 0x183   : > { %v639_v26 = vmax.f32 %v1334_v4, %v595_v53  ;;  %v566_v46 = vmax.f32 %v406_v20, %v529_v31  ;;  %v269_v53 = vld [vmem:[%s1965_s1 + $0x30] sm:$0xff]  ;;  %v268_v31 = vld [vmem:[%s1965_s1 + $0x28] sm:$0xff]  ;;  %v267_v20 = vld [vmem:[%s1965_s1 + $0x20] sm:$0xff] }
 0x184   : > { %717 = vmatpush.msra.mxu0 %v270_v52  ;;  %1227 = vmatpush.msra.mxu3 %v270_v52 }
 0x185   : > { %898 = vrot.lane.b32.xlu0 %v639_v26, %s1267_s27  ;;  %v281_v26 = vld [vmem:[%s1965_s1 + $0x90] sm:$0xff] }
 0x186   : > { %787 = vmatpush.msra.mxu1 %v281_v26  ;;  %718 = vmatpush.msra.mxu0 %v269_v53 }
 0x187   : > { %1228 = vmatpush.msra.mxu3 %v269_v53 }
 0x188   : > { %788 = vmatpush.msra.mxu1 %v280_v14  ;;  %719 = vmatpush.msra.mxu0 %v268_v31 }
 0x189   : > { %1229 = vmatpush.msra.mxu3 %v268_v31 }
 0x18a   : > { %v597_v34 = vpop.permute.xlu1 %596  ;;  %v371_v36 = vpop.permute.xlu0 %370  ;;  %720 = vmatpush.msra.mxu0 %v267_v20 }
 0x18b   : > { %v640_v37 = vmax.f32 %v1326_v2, %v597_v34  ;;  %v407_v21 = vsel %vm327_vm11, %v1346_v6, %v371_v36  ;;  %v232_v34 = vld [vmem:[%s1313_s24 + $0x8] sm:$0xff]  ;;  %1230 = vmatpush.msra.mxu3 %v267_v20 }
 0x18c   : > { %v567_v23 = vmax.f32 %v407_v21, %v531_v47  ;;  %v265_v21 = vld [vmem:[%s1965_s1 + $0x10] sm:$0xff] }
 0x18d   : > { %900 = vrot.lane.b32.xlu2 %v640_v37, %s1267_s27  ;;  %608 = vrot.lane.b32.xlu0 %v566_v46, %s1265_s25  ;;  %v279_v46 = vld [vmem:[%s1965_s1 + $0x80] sm:$0xff]  ;;  %v266_v37 = vld [vmem:[%s1965_s1 + $0x18] sm:$0xff] }
 0x18e   : > { %789 = vmatpush.msra.mxu1 %v279_v46  ;;  %721 = vmatpush.msra.mxu0 %v266_v37 }
 0x18f   : > { %1184 = vmatmul.msk.f32.vlgmr.msra.gmra.mxu1 %vm660_vm15, %v232_v34  ;;  %1231 = vmatpush.msra.mxu3 %v266_v37 }
 0x190   : > { %722 = vmatpush.msra.mxu0 %v265_v21 }
 0x191   : > { %1232 = vmatpush.msra.mxu3 %v265_v21 }
 0x192   : > { %v599_v24 = vpop.permute.xlu1 %598  ;;  %v533_v48 = vpop.permute.xlu0 %532 }
 0x193   : > { %v641_v17 = vmax.f32 %v1343_v5, %v599_v24  ;;  %v568_v40 = vmax.f32 %v408_v38, %v533_v48  ;;  %v264_v24 = vld [vmem:[%s1965_s1 + $0x8] sm:$0xff] }
 0x194   : > { %723 = vmatpush.msra.mxu0 %v264_v24  ;;  %1233 = vmatpush.msra.mxu3 %v264_v24 }
 0x195   : > { %902 = vrot.lane.b32.xlu1 %v641_v17, %s1267_s27  ;;  %904 = vrot.lane.b32.xlu0 %v642_v27, %s1267_s27  ;;  %v263_v27 = vld [vmem:[%s1965_s1] sm:$0xff]  ;;  %v234_v17 = vld [vmem:[%s1313_s24 + $0x18] sm:$0xff] }
 0x196   : > { %610 = vrot.lane.b32.xlu2 %v567_v23, %s1265_s25  ;;  %724 = vmatpush.msra.mxu0 %v263_v27 }
 0x197   : > { %1185 = vmatmul.msk.f32.gmra.mxu1 %vm660_vm15, %v234_v17  ;;  %725 = vmatmul.f32.vlgmr.msra.gmra.mxu0 %v1316_v0 }
 0x198   : > { %1234 = vmatpush.msra.mxu3 %v263_v27 }
 0x199   : > { %758 = vmatmul.f32.vlgmr.msra.gmra.mxu3 %v1346_v6 }
 0x19a   : > { %v537_v18 = vpop.permute.xlu1 %536  ;;  %v535_v39 = vpop.permute.xlu0 %534  ;;  %1235 = vmatpush.msrb.mxu3 %v282_v49 }
 0x19b   : > { %v570_v19 = vmax.f32 %v410_v50, %v537_v18 }
 0x19c   : > { %1236 = vmatpush.msrb.mxu3 %v281_v26 }
 0x19d   : > { %612 = vrot.lane.b32.xlu1 %v568_v40, %s1265_s25  ;;  %v236_v40 = vld [vmem:[%s1313_s24 + $0x28] sm:$0xff] }
 0x19e   : > { %616 = vrot.lane.b32.xlu2 %v570_v19, %s1265_s25  ;;  %1237 = vmatpush.msrb.mxu3 %v280_v14 }
 0x19f   : > { %1186 = vmatmul.msk.f32.gmra.mxu1 %vm660_vm15, %v236_v40  ;;  %728 = vmatmul.f32.gmra.mxu0 %v1331_v3 }
 0x1a0   : > { %1238 = vmatpush.msrb.mxu3 %v279_v46 }
 0x1a1   : > { %761 = vmatmul.f32.gmra.mxu3 %v1416_v25 }
 0x1a2   : > { %v375_v32 = vpop.permute.xlu1 %374  ;;  %1239 = vmatpush.msra.mxu3 %v1621_v28  ;;  %v240_v28 = vld [vmem:[%s1313_s24 + $0x48] sm:$0xff] }
 0x1a3   : > { %v409_v54 = vsel %vm329_vm14, %v1367_v9, %v375_v32 }
 0x1a4   : > { %v569_v62 = vmax.f32 %v409_v54, %v535_v39  ;;  %1240 = vmatpush.msra.mxu3 %v1626_v58 }
 0x1a6   : > { %614 = vrot.lane.b32.xlu1 %v569_v62, %s1265_s25  ;;  %1241 = vmatpush.msra.mxu3 %v1632_v16 }
 0x1a7   : > { %731 = vmatmul.f32.gmra.mxu0 %v1319_v1 }
 0x1a8   : > { %1242 = vmatpush.msra.mxu3 %v1640_v61  ;;  %v242_v61 = vld [vmem:[%s1313_s24 + $0x58] sm:$0xff] }
 0x1a9   : > { %764 = vmatmul.f32.gmra.mxu3 %v1367_v9 }
 0x1aa   : > { %v539_v63 = vpop.permute.xlu1 %538 }
 0x1af   : > { %v893_v13 = vpop.permute.xlu2 %892  ;;  %734 = vmatmul.f32.gmra.mxu0 %v1334_v4  ;;  %v244_v4 = vld [vmem:[%s1313_s24 + $0x68] sm:$0xff] }
 0x1b0   : > { %1200 = vmatmul.msk.f32.vlgmr.msra.gmra.mxu2 %vm660_vm15, %v893_v13  ;;  %v260_v13 = vld [vmem:[%s1313_s24 + $0xe8] sm:$0xff] }
 0x1b1   : > { %767 = vmatmul.f32.gmra.mxu3 %v1429_v29 }
 0x1b7   : > { %v603_v43 = vpop.permute.xlu2 %602  ;;  %737 = vmatmul.f32.gmra.mxu0 %v1326_v2  ;;  %v246_v2 = vld [vmem:[%s1313_s24 + $0x78] sm:$0xff] }
 0x1b8   : > { %v643_v41 = vmax.f32 %v1358_v8, %v603_v43 }
 0x1b9   : > { %770 = vmatmul.f32.gmra.mxu3 %v1432_v30 }
 0x1ba   : > { %906 = vrot.lane.b32.xlu0 %v643_v41, %s1267_s27  ;;  %v250_v41 = vld [vmem:[%s1313_s24 + $0x98] sm:$0xff] }
 0x1bf   : > { %v379_v42 = vpop.permute.xlu2 %378  ;;  %740 = vmatmul.f32.gmra.mxu0 %v1343_v5  ;;  %v248_v5 = vld [vmem:[%s1313_s24 + $0x88] sm:$0xff] }
 0x1c0   : > { %v411_v44 = vsel %vm331_vm0, %v1432_v30, %v379_v42 }
 0x1c1   : > { %v571_v45 = vmax.f32 %v411_v44, %v539_v63  ;;  %1198 = vmatmul.msk.f32.vlgmr.msrb.gmra.mxu3 %vm660_vm15, %v260_v13  ;;  %v262_v44 = vld [vmem:[%s1313_s24 + $0xf8] sm:$0xff] }
 0x1c3   : > { %618 = vrot.lane.b32.xlu2 %v571_v45, %s1265_s25  ;;  %v254_v45 = vld [vmem:[%s1313_s24 + $0xb8] sm:$0xff] }
 0x1c7   : > { %v605_v56 = vpop.permute.xlu2 %604  ;;  %743 = vmatmul.f32.gmra.mxu0 %v1355_v7  ;;  %v1798_v7 = vld [vmem:[%s1968_s4] ss:$0 sm:$0xff] }
 0x1c8   : > { %v644_v47 = vmax.f32 %v1380_v10, %v605_v56  ;;  %v256_v56 = vld [vmem:[%s1313_s24 + $0xc8] sm:$0xff] }
 0x1c9   : > { %1199 = vmatmul.msk.f32.gmra.mxu3 %vm660_vm15, %v262_v44 }
 0x1ca   : > { %908 = vrot.lane.b32.xlu0 %v644_v47, %s1267_s27  ;;  %v258_v47 = vld [vmem:[%s1313_s24 + $0xd8] sm:$0xff] }
 0x1cf   : > { %746 = vmatmul.f32.gmra.mxu0 %v1358_v8  ;;  %v252_v8 = vld [vmem:[%s1313_s24 + $0xa8] sm:$0xff] }
 0x1d7   : > { %749 = vmatmul.f32.gmra.mxu0 %v1380_v10 }
 0x1df   : > { %752 = vmatmul.f32.gmra.mxu0 %v1385_v12 }
 0x1e7   : > { %v901_v36 = vpop.permute.xlu2 %900  ;;  %v895_v11 = vpop.permute.xlu0 %894  ;;  %755 = vmatmul.f32.gmra.mxu0 %v1393_v15 }
 0x1e8   : > { %1201 = vmatmul.msk.f32.gmra.mxu2 %vm660_vm15, %v895_v11 }
 0x1ef   : > { %v607_v23 = vpop.permute.xlu1 %606  ;;  %v897_v48 = vpop.permute.xlu0 %896 }
 0x1f0   : > { %v645_v50 = vmax.f32 %v1385_v12, %v607_v23  ;;  %v611_v38 = vpop.permute.xlu2 %610  ;;  %1202 = vmatmul.msk.f32.gmra.mxu2 %vm660_vm15, %v897_v48 }
 0x1f1   : > { %v647_v18 = vmax.f32 %v1346_v6, %v611_v38  ;;  %v238_v6 = vld [vmem:[%s1313_s24 + $0x38] sm:$0xff]  ;;  %s1183_s24 = sshll.u32 %s1973_s20, 3 }
 0x1f2   : > { %910 = vrot.lane.b32.xlu1 %v645_v50, %s1267_s27  ;;  %1187 = vmatmul.msk.f32.gmra.mxu1 %vm660_vm15, %v238_v6  ;;  %s1830_s15 = scalar_lea.vmem %s1969_s5, %s1183_s24 }
 0x1f3   : > { %914 = vrot.lane.b32.xlu0 %v647_v18, %s1267_s27 }
 0x1f7   : > { %v899_v0 = vpop.permute.xlu0 %898 }
 0x1f8   : > { %1203 = vmatmul.msk.f32.gmra.mxu2 %vm660_vm15, %v899_v0  ;;  %v617_v58 = vpop.permute.xlu2 %616 }
 0x1f9   : > { %v650_v1 = vmax.f32 %v1429_v29, %v617_v58 }
 0x1fa   : > { %1188 = vmatmul.msk.f32.gmra.mxu1 %vm660_vm15, %v240_v28 }
 0x1ff   : > { %v609_v19 = vpop.permute.xlu0 %608 }
 0x200   : > { %v646_v3 = vmax.f32 %v1393_v15, %v609_v19  ;;  %1204 = vmatmul.msk.f32.gmra.mxu2 %vm660_vm15, %v901_v36 }
 0x202   : > { %912 = vrot.lane.b32.xlu2 %v646_v3, %s1267_s27  ;;  %1189 = vmatmul.msk.f32.gmra.mxu1 %vm660_vm15, %v242_v61 }
 0x207   : > { %v903_v16 = vpop.permute.xlu1 %902  ;;  %v905_v32 = vpop.permute.xlu0 %904 }
 0x208   : > { %1205 = vmatmul.msk.f32.gmra.mxu2 %vm660_vm15, %v903_v16 }
 0x20a   : > { %920 = vrot.lane.b32.xlu2 %v650_v1, %s1267_s27  ;;  %1190 = vmatmul.msk.f32.gmra.mxu1 %vm660_vm15, %v244_v4 }
 0x20c   : > { %v791_v22 = vpop.f32.mrf.mxu1 }
 0x20f   : > { %v613_v39 = vpop.permute.xlu1 %612 }
 0x210   : > { %v648_v54 = vmax.f32 %v1416_v25, %v613_v39  ;;  %1206 = vmatmul.msk.f32.gmra.mxu2 %vm660_vm15, %v905_v32 }
 0x212   : > { %916 = vrot.lane.b32.xlu1 %v648_v54, %s1267_s27  ;;  %1191 = vmatmul.msk.f32.gmra.mxu1 %vm660_vm15, %v246_v2 }
 0x214   : > { %v794_v57 = vpop.f32.mrf.mxu1  ;;  %v726_v60 = vpop.f32.mrf.mxu0 }
 0x215   : > { %v727_v49 = vadd.f32 %v1820_v55, %v726_v60 }
 0x217   : > { %v792_v52 = vadd.f32 %v791_v22, %v727_v49 }
 0x218   : > { %v615_v29 = vpop.permute.xlu1 %614 }
 0x219   : > { %v649_v62 = vmax.f32 %v1367_v9, %v615_v29  ;;  %v839_v53 = vmax.f32 %v792_v52, 0.0 }
 0x21a   : > { %1192 = vmatmul.msk.f32.gmra.mxu1 %vm660_vm15, %v248_v5 }
 0x21b   : > { %918 = vrot.lane.b32.xlu0 %v649_v62, %s1267_s27  ;;  %856 = vst.msk [vmem:[%s1830_s15] sm:$0xff] %vm855_vm1, %v839_v53 }
 0x21c   : > { %v797_v31 = vpop.f32.mrf.mxu1  ;;  %v759_v48 = vpop.f32.mrf.mxu3 }
 0x21d   : > { %v619_v25 = vpop.permute.xlu2 %618  ;;  %v729_v39 = vpop.f32.mrf.mxu0 }
 0x21e   : > { %v651_v43 = vmax.f32 %v1432_v30, %v619_v25  ;;  %v730_v54 = vadd.f32 %v1820_v55, %v729_v39 }
 0x220   : > { %922 = vrot.lane.b32.xlu1 %v651_v43, %s1267_s27  ;;  %s1268_s27 = smov 28   ;;  %v795_v62 = vadd.f32 %v794_v57, %v730_v54 }
 0x222   : > { %1193 = vmatmul.msk.f32.gmra.mxu1 %vm660_vm15, %v250_v41  ;;  %v840_v2 = vmax.f32 %v795_v62, 0.0 }
 0x224   : > { %v762_v16 = vpop.f32.mrf.mxu3  ;;  %857 = vst.msk [vmem:[%s1830_s15 + $0x8] sm:$0xff] %vm855_vm1, %v840_v2 }
 0x225   : > { %v732_v25 = vpop.f32.mrf.mxu0 }
 0x226   : > { %v733_v13 = vadd.f32 %v1820_v55, %v732_v25 }
 0x22a   : > { %1194 = vmatmul.msk.f32.gmra.mxu1 %vm660_vm15, %v252_v8 }
 0x22c   : > { %v907_v9 = vpop.permute.xlu0 %906  ;;  %v765_v32 = vpop.f32.mrf.mxu3 }
 0x22d   : > { %1207 = vmatmul.msk.f32.gmra.mxu2 %vm660_vm15, %v907_v9  ;;  %v798_v9 = vadd.f32 %v797_v31, %v733_v13 }
 0x232   : > { %1195 = vmatmul.msk.f32.gmra.mxu1 %vm660_vm15, %v254_v45 }
 0x233   : > { %v973_v30 = vpop.f32.mrf.mxu2 }
 0x234   : > { %v974_v63 = vadd.f32 %v1798_v7, %v973_v30  ;;  %v768_v29 = vpop.f32.mrf.mxu3  ;;  %v841_v30 = vmax.f32 %v798_v9, 0.0 }
 0x235   : > { %v769_v8 = vadd.f32 %v1820_v55, %v768_v29 }
 0x236   : > { %v1021_v42 = vmax.f32 %v974_v63, 0.0  ;;  %858 = vst.msk [vmem:[%s1830_s15 + $0x10] sm:$0xff] %vm855_vm1, %v841_v30 }
 0x238   : > { %1053 = vrot.lane.b32.xlu2 %v1021_v42, %s1268_s27 }
 0x23a   : > { %1196 = vmatmul.msk.f32.gmra.mxu1 %vm660_vm15, %v256_v56 }
 0x23c   : > { %v909_v10 = vpop.permute.xlu0 %908  ;;  %v771_v5 = vpop.f32.mrf.mxu3 }
 0x23d   : > { %1208 = vmatmul.msk.f32.gmra.mxu2 %vm660_vm15, %v909_v10  ;;  %v735_v10 = vpop.f32.mrf.mxu0  ;;  %v772_v60 = vadd.f32 %v1820_v55, %v771_v5 }
 0x23e   : > { %v736_v44 = vadd.f32 %v1820_v55, %v735_v10 }
 0x242   : > { %1197 = vmatmul.msk.f32.gmra.mxu1 %vm660_vm15, %v258_v47 }
 0x244   : > { %v833_v56 = vpop.f32.mrf.mxu3 }
 0x24c   : > { %v836_v31 = vpop.f32.mrf.mxu3 }
 0x25c   : > { %v913_v12 = vpop.permute.xlu2 %912 }
 0x264   : > { %v911_v33 = vpop.permute.xlu1 %910  ;;  %v921_v35 = vpop.permute.xlu2 %920 }
 0x265   : > { %1209 = vmatmul.msk.f32.gmra.mxu2 %vm660_vm15, %v911_v33  ;;  %1214 = vmatmul.msk.f32.vlgmr.msra.gmra.mxu3 %vm660_vm15, %v921_v35  ;;  %v915_v14 = vpop.permute.xlu0 %914  ;;  %v760_v35 = vadd.f32 %v1820_v55, %v759_v48  ;;  %v766_v48 = vadd.f32 %v1820_v55, %v765_v32 }
 0x26b   : > { %v976_v15 = vpop.f32.mrf.mxu2 }
 0x26c   : > { %v977_v59 = vadd.f32 %v1798_v7, %v976_v15  ;;  %v738_v15 = vpop.f32.mrf.mxu0 }
 0x26d   : > { %1210 = vmatmul.msk.f32.gmra.mxu2 %vm660_vm15, %v913_v12  ;;  %v834_v12 = vadd.f32 %v833_v56, %v769_v8  ;;  %v739_v57 = vadd.f32 %v1820_v55, %v738_v15 }
 0x26e   : > { %v1022_v51 = vmax.f32 %v977_v59, 0.0 }
 0x26f   : > { %v800_v37 = vpop.f32.mrf.mxu1  ;;  %v853_v33 = vmax.f32 %v834_v12, 0.0 }
 0x270   : > { %1055 = vrot.lane.b32.xlu0 %v1022_v51, %s1268_s27  ;;  %v801_v47 = vadd.f32 %v800_v37, %v736_v44 }
 0x271   : > { %870 = vst.msk [vmem:[%s1830_s15 + $0x70] sm:$0xff] %vm855_vm1, %v853_v33 }
 0x272   : > { %v842_v22 = vmax.f32 %v801_v47, 0.0 }
 0x273   : > { %v979_v26 = vpop.f32.mrf.mxu2 }
 0x274   : > { %v980_v20 = vadd.f32 %v1798_v7, %v979_v26  ;;  %859 = vst.msk [vmem:[%s1830_s15 + $0x18] sm:$0xff] %vm855_vm1, %v842_v22 }
 0x275   : > { %1211 = vmatmul.msk.f32.gmra.mxu2 %vm660_vm15, %v915_v14  ;;  %v763_v14 = vadd.f32 %v1820_v55, %v762_v16 }
 0x276   : > { %v1023_v46 = vmax.f32 %v980_v20, 0.0 }
 0x277   : > { %v803_v24 = vpop.f32.mrf.mxu1 }
 0x278   : > { %1057 = vrot.lane.b32.xlu1 %v1023_v46, %s1268_s27  ;;  %v804_v51 = vadd.f32 %v803_v24, %v739_v57  ;;  %v837_v46 = vadd.f32 %v836_v31, %v772_v60 }
 0x27a   : > { %v843_v26 = vmax.f32 %v804_v51, 0.0  ;;  %v854_v37 = vmax.f32 %v837_v46, 0.0 }
 0x27b   : > { %v982_v34 = vpop.f32.mrf.mxu2 }
 0x27c   : > { %v983_v36 = vadd.f32 %v1798_v7, %v982_v34  ;;  %860 = vst.msk [vmem:[%s1830_s15 + $0x20] sm:$0xff] %vm855_vm1, %v843_v26 }
 0x27d   : > { %871 = vst.msk [vmem:[%s1830_s15 + $0x78] sm:$0xff] %vm855_vm1, %v854_v37 }
 0x27e   : > { %v1024_v11 = vmax.f32 %v983_v36, 0.0  ;;  %v741_v36 = vpop.f32.mrf.mxu0 }
 0x27f   : > { %v1842_v38 = vpop.f32.mrf.mxu1 }
 0x280   : > { %1059 = vrot.lane.b32.xlu2 %v1024_v11, %s1268_s27  ;;  %v742_v11 = vadd.f32 %v1820_v55, %v741_v36 }
 0x283   : > { %v985_v21 = vpop.f32.mrf.mxu2 }
 0x284   : > { %v986_v27 = vadd.f32 %v1798_v7, %v985_v21  ;;  %v917_v17 = vpop.permute.xlu1 %916 }
 0x285   : > { %1212 = vmatmul.msk.f32.gmra.mxu2 %vm660_vm15, %v917_v17 }
 0x286   : > { %v1025_v23 = vmax.f32 %v986_v27, 0.0  ;;  %v807_v27 = vadd.f32 %v1842_v38, %v742_v11 }
 0x287   : > { %v1851_v58 = vpop.f32.mrf.mxu1 }
 0x288   : > { %1061 = vrot.lane.b32.xlu0 %v1025_v23, %s1268_s27  ;;  %v844_v23 = vmax.f32 %v807_v27, 0.0 }
 0x28a   : > { %861 = vst.msk [vmem:[%s1830_s15 + $0x28] sm:$0xff] %vm855_vm1, %v844_v23 }
 0x28b   : > { %v988_v50 = vpop.f32.mrf.mxu2 }
 0x28c   : > { %v989_v18 = vadd.f32 %v1798_v7, %v988_v50  ;;  %v744_v50 = vpop.f32.mrf.mxu0 }
 0x28d   : > { %v919_v40 = vpop.permute.xlu0 %918 }
 0x28e   : > { %v1026_v0 = vmax.f32 %v989_v18, 0.0  ;;  %1213 = vmatmul.msk.f32.gmra.mxu2 %vm660_vm15, %v919_v40  ;;  %v745_v18 = vadd.f32 %v1820_v55, %v744_v50 }
 0x28f   : > { %v1854_v61 = vpop.f32.mrf.mxu1 }
 0x290   : > { %1063 = vrot.lane.b32.xlu1 %v1026_v0, %s1268_s27 }
 0x292   : > { %v1054_v6 = vpop.permute.xlu2 %1053  ;;  %v923_v19 = vpop.permute.xlu1 %922 }
 0x293   : > { %1102 = vst.msk [vmem:[%s1830_s15] sm:$0xff] %vm1101_vm2, %v1054_v6  ;;  %v991_v3 = vpop.f32.mrf.mxu2  ;;  %1215 = vmatmul.msk.f32.gmra.mxu3 %vm660_vm15, %v923_v19  ;;  %v810_v6 = vadd.f32 %v1851_v58, %v745_v18 }
 0x294   : > { %v992_v28 = vadd.f32 %v1798_v7, %v991_v3  ;;  %v747_v9 = vpop.f32.mrf.mxu0 }
 0x295   : > { %v845_v38 = vmax.f32 %v810_v6, 0.0  ;;  %v748_v30 = vadd.f32 %v1820_v55, %v747_v9 }
 0x296   : > { %v1027_v1 = vmax.f32 %v992_v28, 0.0 }
 0x297   : > { %v1857_v4 = vpop.f32.mrf.mxu1  ;;  %862 = vst.msk [vmem:[%s1830_s15 + $0x30] sm:$0xff] %vm855_vm1, %v845_v38 }
 0x298   : > { %1065 = vrot.lane.b32.xlu2 %v1027_v1, %s1268_s27 }
 0x29c   : > { %v750_v47 = vpop.f32.mrf.mxu0 }
 0x29d   : > { %v751_v22 = vadd.f32 %v1820_v55, %v750_v47 }
 0x29f   : > { %v1862_v43 = vpop.f32.mrf.mxu1 }
 0x2a4   : > { %v753_v51 = vpop.f32.mrf.mxu0 }
 0x2a7   : > { %v1869_v45 = vpop.f32.mrf.mxu1 }
 0x2af   : > { %v824_v59 = vpop.f32.mrf.mxu1 }
 0x2b0   : > { %v994_v41 = vpop.f32.mrf.mxu2  ;;  %v825_v49 = vadd.f32 %v824_v59, %v760_v35 }
 0x2b1   : > { %v995_v63 = vadd.f32 %v1798_v7, %v994_v41 }
 0x2b2   : > { %v850_v52 = vmax.f32 %v825_v49, 0.0 }
 0x2b3   : > { %v1028_v42 = vmax.f32 %v995_v63, 0.0  ;;  %v813_v63 = vadd.f32 %v1854_v61, %v748_v30  ;;  %v816_v61 = vadd.f32 %v1857_v4, %v751_v22 }
 0x2b4   : > { %867 = vst.msk [vmem:[%s1830_s15 + $0x58] sm:$0xff] %vm855_vm1, %v850_v52  ;;  %v754_v52 = vadd.f32 %v1820_v55, %v753_v51 }
 0x2b5   : > { %1067 = vrot.lane.b32.xlu0 %v1028_v42, %s1268_s27  ;;  %v846_v42 = vmax.f32 %v813_v63, 0.0  ;;  %v847_v35 = vmax.f32 %v816_v61, 0.0 }
 0x2b7   : > { %v827_v21 = vpop.f32.mrf.mxu1  ;;  %863 = vst.msk [vmem:[%s1830_s15 + $0x38] sm:$0xff] %vm855_vm1, %v846_v42 }
 0x2b8   : > { %v828_v24 = vadd.f32 %v827_v21, %v763_v14  ;;  %864 = vst.msk [vmem:[%s1830_s15 + $0x40] sm:$0xff] %vm855_vm1, %v847_v35 }
 0x2ba   : > { %v851_v17 = vmax.f32 %v828_v24, 0.0 }
 0x2bc   : > { %868 = vst.msk [vmem:[%s1830_s15 + $0x60] sm:$0xff] %vm855_vm1, %v851_v17 }
 0x2bf   : > { %v830_v40 = vpop.f32.mrf.mxu1 }
 0x2c0   : > { %v997_v53 = vpop.f32.mrf.mxu2  ;;  %v831_v0 = vadd.f32 %v830_v40, %v766_v48 }
 0x2c1   : > { %v998_v20 = vadd.f32 %v1798_v7, %v997_v53  ;;  %v819_v53 = vadd.f32 %v1862_v43, %v754_v52 }
 0x2c2   : > { %v852_v19 = vmax.f32 %v831_v0, 0.0 }
 0x2c3   : > { %v1029_v34 = vmax.f32 %v998_v20, 0.0  ;;  %v848_v26 = vmax.f32 %v819_v53, 0.0 }
 0x2c4   : > { %869 = vst.msk [vmem:[%s1830_s15 + $0x68] sm:$0xff] %vm855_vm1, %v852_v19 }
 0x2c5   : > { %1069 = vrot.lane.b32.xlu1 %v1029_v34, %s1268_s27  ;;  %865 = vst.msk [vmem:[%s1830_s15 + $0x48] sm:$0xff] %vm855_vm1, %v848_v26 }
 0x2da   : > { %v1060_v3 = vpop.permute.xlu2 %1059 }
 0x2db   : > { %1105 = vst.msk [vmem:[%s1830_s15 + $0x18] sm:$0xff] %vm1101_vm2, %v1060_v3 }
 0x2e2   : > { %v1056_v28 = vpop.permute.xlu0 %1055 }
 0x2e3   : > { %1103 = vst.msk [vmem:[%s1830_s15 + $0x8] sm:$0xff] %vm1101_vm2, %v1056_v28 }
 0x2e8   : > { %v1000_v16 = vpop.f32.mrf.mxu2  ;;  %v1015_v41 = vpop.f32.mrf.mxu3 }
 0x2e9   : > { %v1001_v1 = vadd.f32 %v1798_v7, %v1000_v16  ;;  %v1016_v8 = vadd.f32 %v1798_v7, %v1015_v41 }
 0x2ea   : > { %v1058_v32 = vpop.permute.xlu1 %1057 }
 0x2eb   : > { %v1030_v39 = vmax.f32 %v1001_v1, 0.0  ;;  %1104 = vst.msk [vmem:[%s1830_s15 + $0x10] sm:$0xff] %vm1101_vm2, %v1058_v32  ;;  %v1035_v44 = vmax.f32 %v1016_v8, 0.0 }
 0x2ed   : > { %1071 = vrot.lane.b32.xlu2 %v1030_v39, %s1268_s27 }
 0x2f0   : > { %v1003_v58 = vpop.f32.mrf.mxu2 }
 0x2f1   : > { %v1004_v54 = vadd.f32 %v1798_v7, %v1003_v58 }
 0x2f2   : > { %v1066_v29 = vpop.permute.xlu2 %1065 }
 0x2f3   : > { %v1031_v62 = vmax.f32 %v1004_v54, 0.0  ;;  %1108 = vst.msk [vmem:[%s1830_s15 + $0x30] sm:$0xff] %vm1101_vm2, %v1066_v29 }
 0x2f5   : > { %1073 = vrot.lane.b32.xlu0 %v1031_v62, %s1268_s27 }
 0x2f8   : > { %v1006_v2 = vpop.f32.mrf.mxu2 }
 0x2f9   : > { %v1007_v25 = vadd.f32 %v1798_v7, %v1006_v2 }
 0x2fa   : > { %v1062_v13 = vpop.permute.xlu0 %1061 }
 0x2fb   : > { %v1032_v5 = vmax.f32 %v1007_v25, 0.0  ;;  %1106 = vst.msk [vmem:[%s1830_s15 + $0x20] sm:$0xff] %vm1101_vm2, %v1062_v13 }
 0x2fd   : > { %1075 = vrot.lane.b32.xlu1 %v1032_v5, %s1268_s27 }
 0x302   : > { %v1064_v10 = vpop.permute.xlu1 %1063 }
 0x303   : > { %1107 = vst.msk [vmem:[%s1830_s15 + $0x28] sm:$0xff] %vm1101_vm2, %v1064_v10 }
 0x305   : > { %1081 = vrot.lane.b32.xlu1 %v1035_v44, %s1268_s27 }
 0x308   : > { %v1009_v56 = vpop.f32.mrf.mxu2 }
 0x309   : > { %v1010_v12 = vadd.f32 %v1798_v7, %v1009_v56 }
 0x30b   : > { %v1033_v33 = vmax.f32 %v1010_v12, 0.0 }
 0x30d   : > { %1077 = vrot.lane.b32.xlu2 %v1033_v33, %s1268_s27 }
 0x311   : > { %v1012_v15 = vpop.f32.mrf.mxu2 }
 0x312   : > { %v1013_v57 = vadd.f32 %v1798_v7, %v1012_v15 }
 0x314   : > { %v1034_v59 = vmax.f32 %v1013_v57, 0.0 }
 0x316   : > { %1079 = vrot.lane.b32.xlu0 %v1034_v59, %s1268_s27  ;;  %v1018_v60 = vpop.f32.mrf.mxu3 }
 0x317   : > { %v1019_v49 = vadd.f32 %v1798_v7, %v1018_v60  ;;  %v756_v7 = vpop.f32.mrf.mxu0 }
 0x318   : > { %v757_v14 = vadd.f32 %v1820_v55, %v756_v7 }
 0x319   : > { %v1036_v4 = vmax.f32 %v1019_v49, 0.0 }
 0x31a   : > { %v822_v20 = vadd.f32 %v1869_v45, %v757_v14 }
 0x31b   : > { %1083 = vrot.lane.b32.xlu2 %v1036_v4, %s1268_s27 }
 0x31c   : > { %v849_v46 = vmax.f32 %v822_v20, 0.0 }
 0x31e   : > { %866 = vst.msk [vmem:[%s1830_s15 + $0x50] sm:$0xff] %vm855_vm1, %v849_v46 }
 0x327   : > { %v1068_v31 = vpop.permute.xlu0 %1067 }
 0x328   : > { %1109 = vst.msk [vmem:[%s1830_s15 + $0x38] sm:$0xff] %vm1101_vm2, %v1068_v31 }
 0x337   : > { %v1070_v43 = vpop.permute.xlu1 %1069 }
 0x338   : > { %1110 = vst.msk [vmem:[%s1830_s15 + $0x40] sm:$0xff] %vm1101_vm2, %v1070_v43 }
 0x347   : > { %v1072_v34 = vpop.permute.xlu2 %1071 }
 0x348   : > { %1111 = vst.msk [vmem:[%s1830_s15 + $0x48] sm:$0xff] %vm1101_vm2, %v1072_v34 }
 0x367   : > { %v1078_v37 = vpop.permute.xlu2 %1077  ;;  %v1074_v36 = vpop.permute.xlu0 %1073 }
 0x368   : > { %1114 = vst.msk [vmem:[%s1830_s15 + $0x60] sm:$0xff] %vm1101_vm2, %v1078_v37 }
 0x369   : > { %1112 = vst.msk [vmem:[%s1830_s15 + $0x50] sm:$0xff] %vm1101_vm2, %v1074_v36 }
 0x36f   : > { %v1076_v55 = vpop.permute.xlu1 %1075 }
 0x370   : > { %1113 = vst.msk [vmem:[%s1830_s15 + $0x58] sm:$0xff] %vm1101_vm2, %v1076_v55 }
 0x375   : > { %v1084_v45 = vpop.permute.xlu2 %1083 }
 0x376   : > { %1117 = vst.msk [vmem:[%s1830_s15 + $0x78] sm:$0xff] %vm1101_vm2, %v1084_v45 }
 0x377   : > { %v1082_v11 = vpop.permute.xlu1 %1081 }
 0x378   : > { %1116 = vst.msk [vmem:[%s1830_s15 + $0x70] sm:$0xff] %vm1101_vm2, %v1082_v11 }
 0x388   : > { %v1080_v21 = vpop.permute.xlu0 %1079 }
 0x389   : > { %1115 = vst.msk [vmem:[%s1830_s15 + $0x68] sm:$0xff] %vm1101_vm2, %v1080_v21 }
 0x38a PF: > { %s15_s18 = sadd.s32 1, %s1263_s18  }
 0x38b   : > { %p12_p4 = scmp.ge.s32.totalorder %s15_s18, 4  }
 0x38d   :  { %14 = sbr.rel (!%p12_p4) target bundleno = 1 (0x1), region = 70 }

// kernel: cdck2_forward.8
= control target key start
LH: loop header
LB: loop body
LE: loop exit
PB: predicated region body
PF: predicated region fallthrough
CT: control target
= control target key end

     0   :  { %s875_s18 = smov 0   ;;  %s1181_s0 = inlined_call_operand.vmem [shape: f32[128,160], index: 0, kind: input, shape index: {}]   ;;  %s1182_s1 = inlined_call_operand.vmem [shape: f32[160,14], index: 1, kind: input, shape index: {}]   ;;  %s1183_s2 = inlined_call_operand.vmem [shape: f32[32,2], index: 2, kind: input, shape index: {}]   ;;  %s1184_s3 = inlined_call_operand.vmem [shape: f32[1,14], index: 3, kind: input, shape index: {}]   ;;  %s1185_s4 = inlined_call_operand.vmem [shape: f32[1,2], index: 4, kind: input, shape index: {}]   ;;  %s1186_s5 = inlined_call_operand.vmem [shape: f32[128,16], index: 5, kind: output, shape index: {}]  }
   0x1 LB: > { %s774_s19 = sadd.s32 4294967295, %s839_s18   ;;  %p778_p0 = scmp.ge.s32.totalorder %s839_s18, 1  ;;  %s839_s18 = sphi %s875_s18, %s15_s18  }
   0x2   : > { %p189_p1 = scmp.lt.s32.totalorder %s839_s18, 3 }
   0x4   : > { %p190_p2 = pnand %p778_p0, %p189_p1 }
   0x5   : > { %s779_s20 = sshll.u32 (!%p190_p2), %s774_s19, 3  ;;  %s841_s25 = smov (!%p190_p2), 32  }
   0x6   : > { %193 = sbr.rel (%p190_p2) target bundleno = 809 (0x329), region = 40  ;;  %p219_p3 = scmp.lt.s32.totalorder (!%p190_p2), %s779_s20, 15 }
   0x7   : > { %s842_s26 = smov (!%p190_p2), 96   ;;  %s843_s27 = smov (!%p190_p2), 64  }
   0x8   : > { %s844_s9 = smov (!%p190_p2), 14  }
   0xb   : > { %s1188_s20 = smov (!%p219_p3, %s779_s20), 15  ;;  %v267_v8 = vlaneseq }
   0xc   : > { %s802_s21 = sshll.u32 %s1188_s20, 4  ;;  %s783_s12 = sshll.u32 %s1188_s20, 3 }
   0xd   : > { %s889_s24 = scalar_lea.vmem %s1181_s0, %s802_s21  ;;  %v268_v9 = vshrl.u32 %v267_v8, 7 }
   0xe   : > { %v892_v0 = vld [vmem:[%s889_s24] sm:$0xff]  ;;  %v907_v3 = vld [vmem:[%s889_s24 + $0x10] sm:$0xff] }
   0xf   : > { %v895_v1 = vld [vmem:[%s889_s24 + $0x20] sm:$0xff]  ;;  %340 = vrot.lane.b32.xlu0 %v892_v0, %s841_s25  ;;  %v910_v4 = vld [vmem:[%s889_s24 + $0x30] sm:$0xff]  ;;  %v276_v10 = vand.u32 3, %v268_v9  ;;  %v939_v11 = vadd.s32 32, %v268_v9  ;;  %v269_v14 = vadd.s32 8, %v268_v9  ;;  %v271_v15 = vadd.s32 24, %v268_v9 }
  0x10   : > { %344 = vrot.lane.b32.xlu1 %v895_v1, %s841_s25  ;;  %v902_v2 = vld [vmem:[%s889_s24 + $0x40] sm:$0xff]  ;;  %v919_v5 = vld [vmem:[%s889_s24 + $0x50] sm:$0xff]  ;;  %v270_v22 = vadd.s32 16, %v268_v9  ;;  %v273_v29 = vadd.s32 40, %v268_v9  ;;  %v274_v32 = vadd.s32 48, %v268_v9  ;;  %v275_v36 = vadd.s32 56, %v268_v9 }
  0x11   : > { %348 = vrot.lane.b32.xlu2 %v902_v2, %s841_s25  ;;  %v926_v6 = vld [vmem:[%s889_s24 + $0x60] sm:$0xff]  ;;  %v933_v7 = vld [vmem:[%s889_s24 + $0x70] sm:$0xff]  ;;  %v280_v13 = vand.u32 3, %v939_v11  ;;  %vm332_vm0 = vcmp.lt.s32.totalorder %v276_v10, 3  ;;  %v277_v20 = vand.u32 3, %v269_v14  ;;  %v279_v21 = vand.u32 3, %v271_v15 }
  0x12   : > { %v278_v24 = vand.u32 3, %v270_v22  ;;  %v281_v31 = vand.u32 3, %v273_v29  ;;  %v282_v34 = vand.u32 3, %v274_v32  ;;  %v283_v38 = vand.u32 3, %v275_v36  ;;  %v261_v36 = vld [vmem:[%s1182_s1 + $0x70] sm:$0xff] }
  0x13   : > { %vm336_vm1 = vcmp.lt.s32.totalorder %v280_v13, 3  ;;  %vm333_vm2 = vcmp.lt.s32.totalorder %v277_v20, 3  ;;  %vm335_vm3 = vcmp.lt.s32.totalorder %v279_v21, 3  ;;  %vm284_vm8 = vcmp.gt.s32.totalorder %v276_v10, 0 }
  0x14   : > { %vm334_vm4 = vcmp.lt.s32.totalorder %v278_v24, 3  ;;  %vm337_vm5 = vcmp.lt.s32.totalorder %v281_v31, 3  ;;  %vm338_vm6 = vcmp.lt.s32.totalorder %v282_v34, 3  ;;  %vm339_vm7 = vcmp.lt.s32.totalorder %v283_v38, 3 }
  0x15   : > { %vm285_vm9 = vcmp.gt.s32.totalorder %v277_v20, 0  ;;  %vm287_vm10 = vcmp.gt.s32.totalorder %v279_v21, 0  ;;  %vm286_vm11 = vcmp.gt.s32.totalorder %v278_v24, 0  ;;  %vm288_vm12 = vcmp.gt.s32.totalorder %v280_v13, 0  ;;  %v454_v24 = vld [vmem:[%s1183_s2 + $0x10] sm:$0xff] }
  0x16   : > { %vm289_vm13 = vcmp.gt.s32.totalorder %v281_v31, 0  ;;  %vm290_vm14 = vcmp.gt.s32.totalorder %v282_v34, 0  ;;  %vm291_vm15 = vcmp.gt.s32.totalorder %v283_v38, 0  ;;  %v259_v38 = vld [vmem:[%s1182_s1 + $0x60] sm:$0xff] }
  0x17   : > { %342 = vrot.lane.b32.xlu0 %v907_v3, %s841_s25 }
  0x18   : > { %346 = vrot.lane.b32.xlu1 %v910_v4, %s841_s25 }
  0x19   : > { %300 = vrot.lane.b32.xlu2 %v892_v0, %s842_s26 }
  0x1f   : > { %350 = vrot.lane.b32.xlu0 %v919_v5, %s841_s25 }
  0x21   : > { %302 = vrot.lane.b32.xlu2 %v907_v3, %s842_s26 }
  0x27   : > { %352 = vrot.lane.b32.xlu0 %v926_v6, %s841_s25 }
  0x29   : > { %304 = vrot.lane.b32.xlu2 %v895_v1, %s842_s26 }
  0x2f   : > { %354 = vrot.lane.b32.xlu0 %v933_v7, %s841_s25 }
  0x31   : > { %306 = vrot.lane.b32.xlu2 %v910_v4, %s842_s26 }
  0x6b   : > { %v349_v12 = vpop.permute.xlu2 %348 }
  0x6c   : > { %v368_v16 = vsel %vm336_vm1, %v902_v2, %v349_v12  ;;  %vm575_vm1 = vcmask 113664  }
  0x6d   : > { %388 = vrot.lane.b32.xlu2 %v368_v16, %s843_s27 }
  0x73   : > { %v301_v41 = vpop.permute.xlu2 %300 }
  0x74   : > { %v324_v44 = vsel %vm284_vm8, %v892_v0, %v301_v41 }
  0x7b   : > { %v303_v42 = vpop.permute.xlu2 %302 }
  0x7c   : > { %v325_v48 = vsel %vm285_vm9, %v907_v3, %v303_v42 }
  0x81   : > { %v341_v17 = vpop.permute.xlu0 %340 }
  0x82   : > { %v345_v18 = vpop.permute.xlu1 %344  ;;  %v364_v19 = vsel %vm332_vm0, %v892_v0, %v341_v17  ;;  %vm460_vm0 = vcmask 261120  }
  0x83   : > { %380 = vrot.lane.b32.xlu1 %v364_v19, %s843_s27  ;;  %v366_v28 = vsel %vm334_vm4, %v895_v1, %v345_v18  ;;  %v305_v43 = vpop.permute.xlu2 %304 }
  0x84   : > { %v326_v54 = vsel %vm286_vm11, %v895_v1, %v305_v43 }
  0x89   : > { %v343_v23 = vpop.permute.xlu0 %342 }
  0x8a   : > { %v347_v25 = vpop.permute.xlu1 %346  ;;  %v365_v26 = vsel %vm333_vm2, %v907_v3, %v343_v23  ;;  %v455_v23 = vld [vmem:[%s1183_s2 + $0x18] sm:$0xff]  ;;  %vm709_vm2 = vcmask 130160  }
  0x8b   : > { %v367_v27 = vsel %vm335_vm3, %v910_v4, %v347_v25  ;;  %382 = vrot.lane.b32.xlu1 %v365_v26, %s843_s27  ;;  %v307_v47 = vpop.permute.xlu2 %306  ;;  %640 = vmatpush.msra.mxu2 %v455_v23  ;;  %v453_v25 = vld [vmem:[%s1183_s2 + $0x8] sm:$0xff]  ;;  %v452_v26 = vld [vmem:[%s1183_s2] sm:$0xff] }
  0x8c   : > { %386 = vrot.lane.b32.xlu0 %v367_v27, %s843_s27  ;;  %v327_v49 = vsel %vm287_vm10, %v910_v4, %v307_v47  ;;  %v255_v47 = vld [vmem:[%s1182_s1 + $0x40] sm:$0xff] }
  0x8d   : > { %641 = vmatpush.msra.mxu2 %v454_v24 }
  0x8f   : > { %642 = vmatpush.msra.mxu2 %v453_v25 }
  0x91   : > { %v351_v30 = vpop.permute.xlu0 %350  ;;  %643 = vmatpush.msra.mxu2 %v452_v26 }
  0x92   : > { %v369_v33 = vsel %vm337_vm5, %v919_v5, %v351_v30 }
  0x93   : > { %384 = vrot.lane.b32.xlu1 %v366_v28, %s843_s27 }
  0x94   : > { %310 = vrot.lane.b32.xlu0 %v919_v5, %s842_s26 }
  0x99   : > { %v353_v35 = vpop.permute.xlu0 %352 }
  0x9a   : > { %v370_v37 = vsel %vm338_vm6, %v926_v6, %v353_v35  ;;  %v262_v35 = vld [vmem:[%s1182_s1 + $0x78] sm:$0xff] }
  0x9b   : > { %308 = vrot.lane.b32.xlu1 %v902_v2, %s842_s26  ;;  %485 = vmatpush.msra.mxu0 %v262_v35 }
  0x9c   : > { %312 = vrot.lane.b32.xlu0 %v926_v6, %s842_s26  ;;  %803 = vmatpush.msra.mxu3 %v262_v35 }
  0x9d   : > { %486 = vmatpush.msra.mxu0 %v261_v36 }
  0x9e   : > { %804 = vmatpush.msra.mxu3 %v261_v36 }
  0xa1   : > { %v355_v39 = vpop.permute.xlu0 %354 }
  0xa2   : > { %v371_v40 = vsel %vm339_vm7, %v933_v7, %v355_v39 }
  0xa3   : > { %390 = vrot.lane.b32.xlu1 %v369_v33, %s843_s27 }
  0xa4   : > { %314 = vrot.lane.b32.xlu0 %v933_v7, %s842_s26 }
  0xab   : > { %392 = vrot.lane.b32.xlu1 %v370_v37, %s843_s27  ;;  %v260_v37 = vld [vmem:[%s1182_s1 + $0x68] sm:$0xff] }
  0xac   : > { %487 = vmatpush.msra.mxu0 %v260_v37  ;;  %805 = vmatpush.msra.mxu3 %v260_v37 }
  0xae   : > { %488 = vmatpush.msra.mxu0 %v259_v38  ;;  %806 = vmatpush.msra.mxu3 %v259_v38 }
  0xb3   : > { %394 = vrot.lane.b32.xlu1 %v371_v40, %s843_s27 }
  0xc7   : > { %v389_v57 = vpop.permute.xlu2 %388 }
  0xf5   : > { %v381_v45 = vpop.permute.xlu1 %380 }
  0xf6   : > { %v404_v46 = vmax.f32 %v324_v44, %v381_v45  ;;  %v258_v44 = vld [vmem:[%s1182_s1 + $0x58] sm:$0xff]  ;;  %v257_v45 = vld [vmem:[%s1182_s1 + $0x50] sm:$0xff] }
  0xf7   : > { %489 = vmatpush.msra.mxu0 %v258_v44  ;;  %807 = vmatpush.msra.mxu3 %v258_v44 }
  0xf8   : > { %420 = vrot.lane.b32.xlu2 %v404_v46, %s841_s25  ;;  %v256_v46 = vld [vmem:[%s1182_s1 + $0x48] sm:$0xff] }
  0xf9   : > { %490 = vmatpush.msra.mxu0 %v257_v45  ;;  %808 = vmatpush.msra.mxu3 %v257_v45 }
  0xfb   : > { %491 = vmatpush.msra.mxu0 %v256_v46  ;;  %809 = vmatpush.msra.mxu3 %v256_v46 }
  0xfd   : > { %v383_v50 = vpop.permute.xlu1 %382  ;;  %492 = vmatpush.msra.mxu0 %v255_v47  ;;  %810 = vmatpush.msra.mxu3 %v255_v47 }
  0xfe   : > { %v387_v51 = vpop.permute.xlu0 %386  ;;  %v405_v52 = vmax.f32 %v325_v48, %v383_v50  ;;  %v253_v50 = vld [vmem:[%s1182_s1 + $0x30] sm:$0xff] }
  0xff   : > { %v407_v53 = vmax.f32 %v327_v49, %v387_v51  ;;  %v254_v49 = vld [vmem:[%s1182_s1 + $0x38] sm:$0xff]  ;;  %v252_v51 = vld [vmem:[%s1182_s1 + $0x28] sm:$0xff] }
 0x100   : > { %422 = vrot.lane.b32.xlu2 %v405_v52, %s841_s25  ;;  %493 = vmatpush.msra.mxu0 %v254_v49  ;;  %v251_v52 = vld [vmem:[%s1182_s1 + $0x20] sm:$0xff] }
 0x101   : > { %426 = vrot.lane.b32.xlu0 %v407_v53, %s841_s25  ;;  %811 = vmatpush.msra.mxu3 %v254_v49  ;;  %v250_v53 = vld [vmem:[%s1182_s1 + $0x18] sm:$0xff] }
 0x102   : > { %494 = vmatpush.msra.mxu0 %v253_v50 }
 0x103   : > { %812 = vmatpush.msra.mxu3 %v253_v50 }
 0x104   : > { %495 = vmatpush.msra.mxu0 %v252_v51 }
 0x105   : > { %v385_v55 = vpop.permute.xlu1 %384  ;;  %813 = vmatpush.msra.mxu3 %v252_v51 }
 0x106   : > { %v406_v56 = vmax.f32 %v326_v54, %v385_v55  ;;  %v311_v61 = vpop.permute.xlu0 %310  ;;  %496 = vmatpush.msra.mxu0 %v251_v52  ;;  %v249_v54 = vld [vmem:[%s1182_s1 + $0x10] sm:$0xff]  ;;  %v266_v55 = vld [vmem:[%s1182_s1 + $0x98] sm:$0xff] }
 0x107   : > { %v329_v62 = vsel %vm289_vm13, %v919_v5, %v311_v61  ;;  %814 = vmatpush.msra.mxu3 %v251_v52  ;;  %538 = vmatpush.msra.mxu1 %v266_v55  ;;  %v232_v61 = vld [vmem:[%s889_s24 + $0x8] sm:$0xff] }
 0x108   : > { %424 = vrot.lane.b32.xlu2 %v406_v56, %s841_s25  ;;  %497 = vmatpush.msra.mxu0 %v250_v53  ;;  %v248_v56 = vld [vmem:[%s1182_s1 + $0x8] sm:$0xff] }
 0x109   : > { %815 = vmatpush.msra.mxu3 %v250_v53 }
 0x10a   : > { %498 = vmatpush.msra.mxu0 %v249_v54 }
 0x10b   : > { %816 = vmatpush.msra.mxu3 %v249_v54 }
 0x10c   : > { %499 = vmatpush.msra.mxu0 %v248_v56 }
 0x10d   : > { %v309_v58 = vpop.permute.xlu1 %308  ;;  %817 = vmatpush.msra.mxu3 %v248_v56 }
 0x10e   : > { %v328_v59 = vsel %vm288_vm12, %v902_v2, %v309_v58  ;;  %v313_v9 = vpop.permute.xlu0 %312  ;;  %v264_v58 = vld [vmem:[%s1182_s1 + $0x88] sm:$0xff] }
 0x10f   : > { %v408_v60 = vmax.f32 %v328_v59, %v389_v57  ;;  %v330_v11 = vsel %vm290_vm14, %v926_v6, %v313_v9  ;;  %v265_v57 = vld [vmem:[%s1182_s1 + $0x90] sm:$0xff]  ;;  %v247_v59 = vld [vmem:[%s1182_s1] sm:$0xff] }
 0x110   : > { %539 = vmatpush.msra.mxu1 %v265_v57  ;;  %500 = vmatpush.msra.mxu0 %v247_v59 }
 0x111   : > { %428 = vrot.lane.b32.xlu1 %v408_v60, %s841_s25  ;;  %v263_v60 = vld [vmem:[%s1182_s1 + $0x80] sm:$0xff]  ;;  %818 = vmatpush.msra.mxu3 %v247_v59 }
 0x112   : > { %540 = vmatpush.msra.mxu1 %v264_v58  ;;  %501 = vmatmul.f32.vlgmr.msra.gmra.mxu0 %v892_v0 }
 0x113   : > { %516 = vmatmul.f32.vlgmr.msra.gmra.mxu3 %v919_v5 }
 0x114   : > { %541 = vmatpush.msra.mxu1 %v263_v60 }
 0x115   : > { %v391_v63 = vpop.permute.xlu1 %390  ;;  %784 = vmatmul.msk.f32.vlgmr.msra.gmra.mxu1 %vm460_vm0, %v232_v61 }
 0x116   : > { %v409_v8 = vmax.f32 %v329_v62, %v391_v63  ;;  %v315_v15 = vpop.permute.xlu0 %314  ;;  %v234_v62 = vld [vmem:[%s889_s24 + $0x18] sm:$0xff] }
 0x117   : > { %v331_v17 = vsel %vm291_vm15, %v933_v7, %v315_v15 }
 0x118   : > { %430 = vrot.lane.b32.xlu2 %v409_v8, %s841_s25 }
 0x11a   : > { %504 = vmatmul.f32.gmra.mxu0 %v907_v3 }
 0x11b   : > { %519 = vmatmul.f32.gmra.mxu3 %v926_v6 }
 0x11d   : > { %v393_v10 = vpop.permute.xlu1 %392  ;;  %785 = vmatmul.msk.f32.gmra.mxu1 %vm460_vm0, %v234_v62 }
 0x11e   : > { %v410_v12 = vmax.f32 %v330_v11, %v393_v10  ;;  %v242_v10 = vld [vmem:[%s889_s24 + $0x58] sm:$0xff] }
 0x120   : > { %432 = vrot.lane.b32.xlu1 %v410_v12, %s841_s25 }
 0x122   : > { %507 = vmatmul.f32.gmra.mxu0 %v895_v1 }
 0x123   : > { %522 = vmatmul.f32.gmra.mxu3 %v933_v7 }
 0x125   : > { %v395_v16 = vpop.permute.xlu1 %394 }
 0x126   : > { %v411_v18 = vmax.f32 %v331_v17, %v395_v16  ;;  %v244_v17 = vld [vmem:[%s889_s24 + $0x68] sm:$0xff] }
 0x12a   : > { %510 = vmatmul.f32.gmra.mxu0 %v910_v4 }
 0x132   : > { %513 = vmatmul.f32.gmra.mxu0 %v902_v2 }
 0x152   : > { %v421_v13 = vpop.permute.xlu2 %420 }
 0x153   : > { %v444_v14 = vmax.f32 %v892_v0, %v421_v13 }
 0x155   : > { %596 = vrot.lane.b32.xlu0 %v444_v14, %s843_s27 }
 0x15a   : > { %v423_v19 = vpop.permute.xlu2 %422 }
 0x15b   : > { %v445_v20 = vmax.f32 %v907_v3, %v423_v19  ;;  %v236_v3 = vld [vmem:[%s889_s24 + $0x28] sm:$0xff] }
 0x15c   : > { %786 = vmatmul.msk.f32.gmra.mxu1 %vm460_vm0, %v236_v3 }
 0x15d   : > { %434 = vrot.lane.b32.xlu0 %v411_v18, %s841_s25  ;;  %598 = vrot.lane.b32.xlu2 %v445_v20, %s843_s27 }
 0x162   : > { %v425_v21 = vpop.permute.xlu2 %424 }
 0x163   : > { %v446_v22 = vmax.f32 %v895_v1, %v425_v21  ;;  %v240_v1 = vld [vmem:[%s889_s24 + $0x48] sm:$0xff]  ;;  %v246_v21 = vld [vmem:[%s889_s24 + $0x78] sm:$0xff] }
 0x165   : > { %600 = vrot.lane.b32.xlu1 %v446_v22, %s843_s27  ;;  %v1122_v22 = vld [vmem:[%s1184_s3] ss:$0 sm:$0xff] }
 0x172   : > { %v431_v28 = vpop.permute.xlu2 %430 }
 0x173   : > { %v427_v27 = vpop.permute.xlu0 %426  ;;  %v449_v30 = vmax.f32 %v919_v5, %v431_v28  ;;  %v238_v5 = vld [vmem:[%s889_s24 + $0x38] sm:$0xff]  ;;  %s1129_s24 = scalar_lea.vmem %s1186_s5, %s783_s12 }
 0x174   : > { %v447_v29 = vmax.f32 %v910_v4, %v427_v27  ;;  %787 = vmatmul.msk.f32.gmra.mxu1 %vm460_vm0, %v238_v5 }
 0x175   : > { %606 = vrot.lane.b32.xlu1 %v449_v30, %s843_s27 }
 0x176   : > { %602 = vrot.lane.b32.xlu2 %v447_v29, %s843_s27 }
 0x17c   : > { %788 = vmatmul.msk.f32.gmra.mxu1 %vm460_vm0, %v240_v1 }
 0x183   : > { %v429_v31 = vpop.permute.xlu1 %428 }
 0x184   : > { %v448_v32 = vmax.f32 %v902_v2, %v429_v31  ;;  %789 = vmatmul.msk.f32.gmra.mxu1 %vm460_vm0, %v242_v10 }
 0x186   : > { %604 = vrot.lane.b32.xlu0 %v448_v32, %s843_s27 }
 0x18c   : > { %790 = vmatmul.msk.f32.gmra.mxu1 %vm460_vm0, %v244_v17 }
 0x18f   : > { %v502_v23 = vpop.f32.mrf.mxu0 }
 0x190   : > { %v503_v25 = vadd.f32 %v1122_v22, %v502_v23 }
 0x192   : > { %v433_v33 = vpop.permute.xlu1 %432  ;;  %v543_v24 = vpop.f32.mrf.mxu1 }
 0x193   : > { %v450_v34 = vmax.f32 %v926_v6, %v433_v33  ;;  %v544_v26 = vadd.f32 %v543_v24, %v503_v25 }
 0x194   : > { %791 = vmatmul.msk.f32.gmra.mxu1 %vm460_vm0, %v246_v21 }
 0x195   : > { %608 = vrot.lane.b32.xlu2 %v450_v34, %s843_s27  ;;  %v567_v27 = vmax.f32 %v544_v26, 0.0 }
 0x196   : > { %v517_v59 = vpop.f32.mrf.mxu3 }
 0x197   : > { %576 = vst.msk [vmem:[%s1129_s24] sm:$0xff] %vm575_vm1, %v567_v27  ;;  %v505_v28 = vpop.f32.mrf.mxu0 }
 0x198   : > { %v506_v30 = vadd.f32 %v1122_v22, %v505_v28 }
 0x19a   : > { %v546_v29 = vpop.f32.mrf.mxu1 }
 0x19b   : > { %v547_v31 = vadd.f32 %v546_v29, %v506_v30 }
 0x19d   : > { %v568_v33 = vmax.f32 %v547_v31, 0.0 }
 0x19f   : > { %577 = vst.msk [vmem:[%s1129_s24 + $0x8] sm:$0xff] %vm575_vm1, %v568_v33 }
 0x1b7   : > { %v599_v40 = vpop.permute.xlu2 %598 }
 0x1c7   : > { %v597_v39 = vpop.permute.xlu0 %596 }
 0x1c8   : > { %792 = vmatmul.msk.f32.vlgmr.msra.gmra.mxu2 %vm460_vm0, %v597_v39 }
 0x1cf   : > { %v435_v41 = vpop.permute.xlu0 %434 }
 0x1d0   : > { %v451_v42 = vmax.f32 %v933_v7, %v435_v41  ;;  %793 = vmatmul.msk.f32.gmra.mxu2 %vm460_vm0, %v599_v40  ;;  %v603_v48 = vpop.permute.xlu2 %602  ;;  %v1102_v7 = vld [vmem:[%s1185_s4] ss:$0 sm:$0xff] }
 0x1d2   : > { %610 = vrot.lane.b32.xlu0 %v451_v42, %s843_s27  ;;  %v508_v42 = vpop.f32.mrf.mxu0 }
 0x1d3   : > { %v509_v44 = vadd.f32 %v1122_v22, %v508_v42 }
 0x1d7   : > { %v601_v43 = vpop.permute.xlu1 %600 }
 0x1d8   : > { %794 = vmatmul.msk.f32.gmra.mxu2 %vm460_vm0, %v601_v43 }
 0x1d9   : > { %v549_v45 = vpop.f32.mrf.mxu1 }
 0x1da   : > { %v511_v46 = vpop.f32.mrf.mxu0  ;;  %v550_v47 = vadd.f32 %v549_v45, %v509_v44 }
 0x1db   : > { %v512_v49 = vadd.f32 %v1122_v22, %v511_v46 }
 0x1e0   : > { %795 = vmatmul.msk.f32.gmra.mxu2 %vm460_vm0, %v603_v48  ;;  %v569_v48 = vmax.f32 %v550_v47, 0.0 }
 0x1e2   : > { %578 = vst.msk [vmem:[%s1129_s24 + $0x10] sm:$0xff] %vm575_vm1, %v569_v48  ;;  %v514_v52 = vpop.f32.mrf.mxu0 }
 0x1e3   : > { %v515_v55 = vadd.f32 %v1122_v22, %v514_v52 }
 0x1e7   : > { %v607_v8 = vpop.permute.xlu1 %606 }
 0x1ef   : > { %v609_v0 = vpop.permute.xlu2 %608 }
 0x1f1   : > { %v552_v50 = vpop.f32.mrf.mxu1 }
 0x1f2   : > { %v553_v51 = vadd.f32 %v552_v50, %v512_v49 }
 0x1f4   : > { %v570_v53 = vmax.f32 %v553_v51, 0.0 }
 0x1f6   : > { %579 = vst.msk [vmem:[%s1129_s24 + $0x18] sm:$0xff] %vm575_vm1, %v570_v53 }
 0x1f8   : > { %v605_v63 = vpop.permute.xlu0 %604 }
 0x1f9   : > { %796 = vmatmul.msk.f32.gmra.mxu2 %vm460_vm0, %v605_v63  ;;  %v555_v56 = vpop.f32.mrf.mxu1  ;;  %v518_v63 = vadd.f32 %v1122_v22, %v517_v59 }
 0x1fa   : > { %v556_v57 = vadd.f32 %v555_v56, %v515_v55 }
 0x1fc   : > { %v571_v61 = vmax.f32 %v556_v57, 0.0 }
 0x1fe   : > { %580 = vst.msk [vmem:[%s1129_s24 + $0x20] sm:$0xff] %vm575_vm1, %v571_v61 }
 0x201   : > { %797 = vmatmul.msk.f32.gmra.mxu2 %vm460_vm0, %v607_v8  ;;  %v558_v8 = vpop.f32.mrf.mxu1 }
 0x209   : > { %798 = vmatmul.msk.f32.gmra.mxu2 %vm460_vm0, %v609_v0  ;;  %v559_v0 = vadd.f32 %v558_v8, %v518_v63 }
 0x20b   : > { %v572_v3 = vmax.f32 %v559_v0, 0.0 }
 0x20d   : > { %581 = vst.msk [vmem:[%s1129_s24 + $0x28] sm:$0xff] %vm575_vm1, %v572_v3 }
 0x244   : > { %v611_v6 = vpop.permute.xlu0 %610 }
 0x245   : > { %799 = vmatmul.msk.f32.gmra.mxu2 %vm460_vm0, %v611_v6 }
 0x24b   : > { %v645_v4 = vpop.f32.mrf.mxu2 }
 0x24c   : > { %v646_v2 = vadd.f32 %v1102_v7, %v645_v4 }
 0x24e   : > { %v669_v9 = vmax.f32 %v646_v2, 0.0  ;;  %v561_v2 = vpop.f32.mrf.mxu1 }
 0x250   : > { %685 = vrot.lane.b32.xlu1 %v669_v9, %s844_s9 }
 0x253   : > { %v648_v11 = vpop.f32.mrf.mxu2 }
 0x254   : > { %v649_v12 = vadd.f32 %v1102_v7, %v648_v11 }
 0x256   : > { %v670_v13 = vmax.f32 %v649_v12, 0.0 }
 0x258   : > { %687 = vrot.lane.b32.xlu2 %v670_v13, %s844_s9  ;;  %v564_v13 = vpop.f32.mrf.mxu1 }
 0x25b   : > { %v651_v14 = vpop.f32.mrf.mxu2 }
 0x25c   : > { %v652_v15 = vadd.f32 %v1102_v7, %v651_v14 }
 0x25e   : > { %v671_v16 = vmax.f32 %v652_v15, 0.0 }
 0x260   : > { %689 = vrot.lane.b32.xlu0 %v671_v16, %s844_s9 }
 0x263   : > { %v654_v18 = vpop.f32.mrf.mxu2 }
 0x264   : > { %v655_v19 = vadd.f32 %v1102_v7, %v654_v18 }
 0x266   : > { %v672_v20 = vmax.f32 %v655_v19, 0.0 }
 0x268   : > { %691 = vrot.lane.b32.xlu1 %v672_v20, %s844_s9 }
 0x27c   : > { %v657_v32 = vpop.f32.mrf.mxu2 }
 0x27d   : > { %v658_v34 = vadd.f32 %v1102_v7, %v657_v32 }
 0x27f   : > { %v673_v35 = vmax.f32 %v658_v34, 0.0 }
 0x281   : > { %693 = vrot.lane.b32.xlu2 %v673_v35, %s844_s9 }
 0x284   : > { %v660_v36 = vpop.f32.mrf.mxu2 }
 0x285   : > { %v661_v37 = vadd.f32 %v1102_v7, %v660_v36 }
 0x287   : > { %v674_v38 = vmax.f32 %v661_v37, 0.0 }
 0x289   : > { %695 = vrot.lane.b32.xlu0 %v674_v38, %s844_s9 }
 0x28c   : > { %v663_v39 = vpop.f32.mrf.mxu2 }
 0x28d   : > { %v664_v40 = vadd.f32 %v1102_v7, %v663_v39 }
 0x28f   : > { %v675_v41 = vmax.f32 %v664_v40, 0.0 }
 0x291   : > { %697 = vrot.lane.b32.xlu1 %v675_v41, %s844_s9 }
 0x2b2   : > { %v688_v43 = vpop.permute.xlu2 %687 }
 0x2b3   : > { %711 = vst.msk [vmem:[%s1129_s24 + $0x8] sm:$0xff] %vm709_vm2, %v688_v43 }
 0x2c2   : > { %v686_v54 = vpop.permute.xlu1 %685 }
 0x2c3   : > { %710 = vst.msk [vmem:[%s1129_s24] sm:$0xff] %vm709_vm2, %v686_v54 }
 0x2c8   : > { %v666_v58 = vpop.f32.mrf.mxu2 }
 0x2c9   : > { %v667_v60 = vadd.f32 %v1102_v7, %v666_v58  ;;  %v520_v7 = vpop.f32.mrf.mxu3 }
 0x2ca   : > { %v521_v4 = vadd.f32 %v1122_v22, %v520_v7 }
 0x2cb   : > { %v676_v62 = vmax.f32 %v667_v60, 0.0 }
 0x2cc   : > { %v562_v9 = vadd.f32 %v561_v2, %v521_v4 }
 0x2cd   : > { %699 = vrot.lane.b32.xlu2 %v676_v62, %s844_s9 }
 0x2ce   : > { %v573_v10 = vmax.f32 %v562_v9, 0.0 }
 0x2d0   : > { %582 = vst.msk [vmem:[%s1129_s24 + $0x30] sm:$0xff] %vm575_vm1, %v573_v10 }
 0x2d1   : > { %v523_v11 = vpop.f32.mrf.mxu3 }
 0x2d2   : > { %v690_v5 = vpop.permute.xlu0 %689  ;;  %v524_v12 = vadd.f32 %v1122_v22, %v523_v11 }
 0x2d3   : > { %712 = vst.msk [vmem:[%s1129_s24 + $0x10] sm:$0xff] %vm709_vm2, %v690_v5 }
 0x2d4   : > { %v565_v14 = vadd.f32 %v564_v13, %v524_v12 }
 0x2d6   : > { %v574_v15 = vmax.f32 %v565_v14, 0.0 }
 0x2d8   : > { %583 = vst.msk [vmem:[%s1129_s24 + $0x38] sm:$0xff] %vm575_vm1, %v574_v15 }
 0x2da   : > { %v692_v6 = vpop.permute.xlu1 %691 }
 0x2db   : > { %713 = vst.msk [vmem:[%s1129_s24 + $0x18] sm:$0xff] %vm709_vm2, %v692_v6  ;;  %v694_v1 = vpop.permute.xlu2 %693 }
 0x2dc   : > { %714 = vst.msk [vmem:[%s1129_s24 + $0x20] sm:$0xff] %vm709_vm2, %v694_v1 }
 0x2fb   : > { %v696_v16 = vpop.permute.xlu0 %695 }
 0x2fc   : > { %715 = vst.msk [vmem:[%s1129_s24 + $0x28] sm:$0xff] %vm709_vm2, %v696_v16 }
 0x303   : > { %v698_v17 = vpop.permute.xlu1 %697 }
 0x304   : > { %716 = vst.msk [vmem:[%s1129_s24 + $0x30] sm:$0xff] %vm709_vm2, %v698_v17 }
 0x327   : > { %v700_v18 = vpop.permute.xlu2 %699 }
 0x328   : > { %717 = vst.msk [vmem:[%s1129_s24 + $0x38] sm:$0xff] %vm709_vm2, %v700_v18 }
 0x329 PF: > { %s15_s18 = sadd.s32 1, %s839_s18  }
 0x32a   : > { %p12_p4 = scmp.ge.s32.totalorder %s15_s18, 4  }
 0x32c   :  { %14 = sbr.rel (!%p12_p4) target bundleno = 1 (0x1), region = 70 }

// kernel: cdck2_forward.9
= control target key start
LH: loop header
LB: loop body
LE: loop exit
PB: predicated region body
PF: predicated region fallthrough
CT: control target
= control target key end

     0   :  { %s623_s20 = smov 0   ;;  %s746_s0 = inlined_call_operand.vmem [shape: f32[64,80], index: 0, kind: input, shape index: {}]   ;;  %s747_s1 = inlined_call_operand.vmem [shape: f32[80,7], index: 1, kind: input, shape index: {}]   ;;  %s748_s2 = inlined_call_operand.vmem [shape: f32[16,1], index: 2, kind: input, shape index: {}]   ;;  %s749_s3 = inlined_call_operand.vmem [shape: f32[1,7], index: 3, kind: input, shape index: {}]   ;;  %s750_s4 = inlined_call_operand.<no memory space> [shape: f32[1,1], index: 4, kind: input, shape index: {}]   ;;  %s751_s5 = inlined_call_operand.vmem [shape: f32[64,8], index: 5, kind: output, shape index: {}]  }
   0x1   :  { %v10_v0 = vstv %s750_s4 }
   0x2   :  { %11 = vst [vmem:[#allocation2] sm:$0x1] %v10_v0 }
   0x3 LB: > { %s525_s21 = sadd.s32 4294967295, %s584_s20   ;;  %p529_p0 = scmp.ge.s32.totalorder %s584_s20, 1  ;;  %s584_s20 = sphi %s623_s20, %s17_s20  }
   0x4   : > { %p190_p1 = scmp.lt.s32.totalorder %s584_s20, 3 }
   0x6   : > { %p191_p2 = pnand %p529_p0, %p190_p1 }
   0x7   : > { %s530_s22 = sshll.u32 (!%p191_p2), %s525_s21, 2  ;;  %s586_s26 = smov (!%p191_p2), 16  }
   0x8   : > { %194 = sbr.rel (%p191_p2) target bundleno = 721 (0x2d1), region = 40  ;;  %p219_p3 = scmp.lt.s32.totalorder (!%p191_p2), %s530_s22, 7 }
   0x9   : > { %s587_s27 = smov (!%p191_p2), 112   ;;  %s588_s28 = smov (!%p191_p2), 96  }
   0xa   : > { %s589_s30 = smov (!%p191_p2), 7  }
   0xd   : > { %s753_s22 = smov (!%p219_p3, %s530_s22), 7  ;;  %v244_v5 = vlaneseq  ;;  %v338_v42 = vld [vmem:[%s748_s2 + $0x8] sm:$0xff]  ;;  %v337_v43 = vld [vmem:[%s748_s2] sm:$0xff]  ;;  %vm406_vm8 = vcmask 130048   ;;  %v241_v52 = vld [vmem:[%s747_s1 + $0x38] sm:$0xff]  ;;  %vm343_vm9 = vcmask 654336  }
   0xe   : > { %s531_s4 = sshll.u32 %s753_s22, 3  ;;  %429 = vmatpush.msra.mxu1 %v338_v42  ;;  %v243_v50 = vld [vmem:[%s747_s1 + $0x48] sm:$0xff]  ;;  %v242_v51 = vld [vmem:[%s747_s1 + $0x40] sm:$0xff]  ;;  %v240_v53 = vld [vmem:[%s747_s1 + $0x30] sm:$0xff]  ;;  %vm385_vm10 = vcmask 56320   ;;  %vm464_vm11 = vcmask 64568  }
   0xf   : > { %s222_s25 = scalar_lea.vmem %s746_s0, %s531_s4  ;;  %v245_v6 = vshrl.u32 %v244_v5, 7  ;;  %545 = vmatpush.msra.mxu3 %v243_v50  ;;  %544 = vmatpush.msra.mxu2 %v243_v50  ;;  %v239_v55 = vld [vmem:[%s747_s1 + $0x28] sm:$0xff]  ;;  %v238_v56 = vld [vmem:[%s747_s1 + $0x20] sm:$0xff]  ;;  %v237_v57 = vld [vmem:[%s747_s1 + $0x18] sm:$0xff]  ;;  %s228_s10 = scalar_lea.vmem %s751_s5, %s531_s4 }
  0x10   : > { %v639_v1 = vld [vmem:[%s222_s25] sm:$0xff]  ;;  %v641_v2 = vld [vmem:[%s222_s25 + $0x10] sm:$0xff]  ;;  %v649_v3 = vld [vmem:[%s222_s25 + $0x8] sm:$0xff]  ;;  %430 = vmatpush.msra.mxu1 %v337_v43  ;;  %358 = vmatpush.msra.mxu0 %v243_v50 }
  0x11   : > { %281 = vrot.lane.b32.xlu0 %v639_v1, %s586_s26  ;;  %285 = vrot.lane.b32.xlu1 %v641_v2, %s586_s26  ;;  %v651_v4 = vld [vmem:[%s222_s25 + $0x18] sm:$0xff]  ;;  %v247_v7 = vadd.s32 16, %v245_v6  ;;  %v249_v8 = vand.u32 1, %v245_v6  ;;  %v246_v10 = vadd.s32 8, %v245_v6  ;;  %v248_v16 = vadd.s32 24, %v245_v6  ;;  %v236_v58 = vld [vmem:[%s747_s1 + $0x10] sm:$0xff] }
  0x12   : > { %261 = vrot.lane.b32.xlu2 %v639_v1, %s587_s27  ;;  %547 = vmatpush.msra.mxu3 %v242_v51  ;;  %v235_v59 = vld [vmem:[%s747_s1 + $0x8] sm:$0xff]  ;;  %v234_v60 = vld [vmem:[%s747_s1] sm:$0xff] }
  0x13   : > { %v251_v9 = vand.u32 1, %v247_v7  ;;  %vm277_vm0 = vcmp.lt.s32.totalorder %v249_v8, 1  ;;  %v250_v15 = vand.u32 1, %v246_v10  ;;  %v252_v18 = vand.u32 1, %v248_v16  ;;  %546 = vmatpush.msra.mxu2 %v242_v51  ;;  %359 = vmatpush.msra.mxu0 %v242_v51  ;;  %v576_v62 = vld [vmem:[#allocation2] ss:$0 sm:$0xff] }
  0x14   : > { %vm253_vm4 = vcmp.gt.s32.totalorder %v249_v8, 0  ;;  %549 = vmatpush.msra.mxu3 %v241_v52 }
  0x15   : > { %vm279_vm1 = vcmp.lt.s32.totalorder %v251_v9, 1  ;;  %vm278_vm2 = vcmp.lt.s32.totalorder %v250_v15, 1  ;;  %vm280_vm3 = vcmp.lt.s32.totalorder %v252_v18, 1  ;;  %vm255_vm5 = vcmp.gt.s32.totalorder %v251_v9, 0  ;;  %548 = vmatpush.msra.mxu2 %v241_v52  ;;  %360 = vmatpush.msra.mxu0 %v241_v52 }
  0x16   : > { %vm254_vm6 = vcmp.gt.s32.totalorder %v250_v15, 0  ;;  %vm256_vm7 = vcmp.gt.s32.totalorder %v252_v18, 0  ;;  %551 = vmatpush.msra.mxu3 %v240_v53 }
  0x17   : > { %550 = vmatpush.msra.mxu2 %v240_v53  ;;  %361 = vmatpush.msra.mxu0 %v240_v53 }
  0x18   : > { %553 = vmatpush.msra.mxu3 %v239_v55 }
  0x19   : > { %283 = vrot.lane.b32.xlu0 %v649_v3, %s586_s26  ;;  %287 = vrot.lane.b32.xlu1 %v651_v4, %s586_s26 }
  0x1a   : > { %552 = vmatpush.msra.mxu2 %v239_v55  ;;  %362 = vmatpush.msra.mxu0 %v239_v55 }
  0x1b   : > { %555 = vmatpush.msra.mxu3 %v238_v56 }
  0x1c   : > { %554 = vmatpush.msra.mxu2 %v238_v56  ;;  %363 = vmatpush.msra.mxu0 %v238_v56 }
  0x1d   : > { %557 = vmatpush.msra.mxu3 %v237_v57 }
  0x1e   : > { %556 = vmatpush.msra.mxu2 %v237_v57  ;;  %364 = vmatpush.msra.mxu0 %v237_v57 }
  0x1f   : > { %559 = vmatpush.msra.mxu3 %v236_v58 }
  0x20   : > { %558 = vmatpush.msra.mxu2 %v236_v58  ;;  %365 = vmatpush.msra.mxu0 %v236_v58 }
  0x21   : > { %263 = vrot.lane.b32.xlu0 %v649_v3, %s587_s27  ;;  %561 = vmatpush.msra.mxu3 %v235_v59 }
  0x22   : > { %560 = vmatpush.msra.mxu2 %v235_v59  ;;  %366 = vmatpush.msra.mxu0 %v235_v59 }
  0x23   : > { %563 = vmatpush.msra.mxu3 %v234_v60 }
  0x24   : > { %536 = vmatmul.msk.f32.vlgmr.msra.gmra.mxu3 %vm343_vm9, %v641_v2  ;;  %562 = vmatpush.msra.mxu2 %v234_v60 }
  0x25   : > { %535 = vmatmul.msk.f32.vlgmr.msra.gmra.mxu2 %vm343_vm9, %v649_v3  ;;  %367 = vmatpush.msra.mxu0 %v234_v60 }
  0x26   : > { %534 = vmatmul.msk.f32.vlgmr.msra.gmra.mxu0 %vm343_vm9, %v639_v1 }
  0x2c   : > { %537 = vmatmul.msk.f32.gmra.mxu3 %vm343_vm9, %v651_v4 }
  0x6c   : > { %v262_v22 = vpop.permute.xlu2 %261 }
  0x6d   : > { %v273_v23 = vsel %vm253_vm4, %v639_v1, %v262_v22 }
  0x83   : > { %v282_v11 = vpop.permute.xlu0 %281  ;;  %v286_v12 = vpop.permute.xlu1 %285 }
  0x84   : > { %v293_v13 = vsel %vm277_vm0, %v639_v1, %v282_v11  ;;  %v295_v14 = vsel %vm279_vm1, %v641_v2, %v286_v12 }
  0x85   : > { %301 = vrot.lane.b32.xlu2 %v293_v13, %s588_s28  ;;  %305 = vrot.lane.b32.xlu0 %v295_v14, %s588_s28 }
  0x8b   : > { %v284_v17 = vpop.permute.xlu0 %283  ;;  %v288_v20 = vpop.permute.xlu1 %287 }
  0x8c   : > { %v294_v19 = vsel %vm278_vm2, %v649_v3, %v284_v17  ;;  %v296_v21 = vsel %vm280_vm3, %v651_v4, %v288_v20 }
  0x8d   : > { %303 = vrot.lane.b32.xlu1 %v294_v19, %s588_s28  ;;  %265 = vrot.lane.b32.xlu2 %v641_v2, %s587_s27 }
  0x93   : > { %v264_v26 = vpop.permute.xlu0 %263 }
  0x94   : > { %v274_v31 = vsel %vm254_vm6, %v649_v3, %v264_v26 }
  0x95   : > { %267 = vrot.lane.b32.xlu1 %v651_v4, %s587_s27  ;;  %307 = vrot.lane.b32.xlu2 %v296_v21, %s588_s28 }
  0xa7   : > { %v375_v12 = vpop.f32.mrf.mxu3 }
  0xa8   : > { %v372_v14 = vpop.f32.mrf.mxu2 }
  0xaf   : > { %v378_v20 = vpop.f32.mrf.mxu3 }
  0xdf   : > { %v302_v24 = vpop.permute.xlu2 %301 }
  0xe0   : > { %v313_v25 = vmax.f32 %v273_v23, %v302_v24 }
  0xe2   : > { %321 = vrot.lane.b32.xlu0 %v313_v25, %s586_s26 }
  0xe7   : > { %v266_v27 = vpop.permute.xlu2 %265 }
  0xe8   : > { %v275_v28 = vsel %vm255_vm5, %v641_v2, %v266_v27 }
  0xef   : > { %v308_v34 = vpop.permute.xlu2 %307 }
  0xf7   : > { %v306_v29 = vpop.permute.xlu0 %305 }
  0xf8   : > { %v315_v30 = vmax.f32 %v275_v28, %v306_v29 }
  0xfa   : > { %325 = vrot.lane.b32.xlu2 %v315_v30, %s586_s26 }
  0xff   : > { %v304_v32 = vpop.permute.xlu1 %303 }
 0x100   : > { %v314_v33 = vmax.f32 %v274_v31, %v304_v32 }
 0x102   : > { %323 = vrot.lane.b32.xlu1 %v314_v33, %s586_s26 }
 0x107   : > { %v268_v35 = vpop.permute.xlu1 %267 }
 0x108   : > { %v276_v36 = vsel %vm256_vm7, %v651_v4, %v268_v35 }
 0x109   : > { %v316_v37 = vmax.f32 %v276_v36, %v308_v34 }
 0x10b   : > { %327 = vrot.lane.b32.xlu0 %v316_v37, %s586_s26 }
 0x154   : > { %v322_v38 = vpop.permute.xlu0 %321  ;;  %v326_v39 = vpop.permute.xlu2 %325 }
 0x155   : > { %v333_v40 = vmax.f32 %v639_v1, %v322_v38  ;;  %v335_v41 = vmax.f32 %v641_v2, %v326_v39  ;;  %v577_v1 = vld [vmem:[%s749_s3] ss:$0 sm:$0xff] }
 0x156   : > { %v376_v13 = vadd.f32 %v577_v1, %v375_v12  ;;  %v373_v15 = vadd.f32 %v577_v1, %v372_v14  ;;  %v379_v22 = vadd.f32 %v577_v1, %v378_v20 }
 0x157   : > { %398 = vrot.lane.b32.xlu1 %v333_v40, %s588_s28  ;;  %402 = vrot.lane.b32.xlu0 %v335_v41, %s588_s28 }
 0x158   : > { %v383_v16 = vmax.f32 %v376_v13, 0.0  ;;  %v382_v17 = vmax.f32 %v373_v15, 0.0  ;;  %v384_v23 = vmax.f32 %v379_v22, 0.0 }
 0x15a   : > { %387 = vst.msk [vmem:[%s228_s10 + $0x8] sm:$0xff] %vm385_vm10, %v382_v17 }
 0x15b   : > { %388 = vst.msk [vmem:[%s228_s10 + $0x10] sm:$0xff] %vm385_vm10, %v383_v16 }
 0x15c   : > { %389 = vst.msk [vmem:[%s228_s10 + $0x18] sm:$0xff] %vm385_vm10, %v384_v23 }
 0x174   : > { %v324_v44 = vpop.permute.xlu1 %323 }
 0x175   : > { %v334_v45 = vmax.f32 %v649_v3, %v324_v44 }
 0x177   : > { %400 = vrot.lane.b32.xlu2 %v334_v45, %s588_s28 }
 0x17d   : > { %v328_v46 = vpop.permute.xlu0 %327 }
 0x17e   : > { %v336_v47 = vmax.f32 %v651_v4, %v328_v46  ;;  %v369_v4 = vpop.f32.mrf.mxu0 }
 0x17f   : > { %v370_v10 = vadd.f32 %v577_v1, %v369_v4 }
 0x180   : > { %404 = vrot.lane.b32.xlu1 %v336_v47, %s588_s28 }
 0x181   : > { %v381_v11 = vmax.f32 %v370_v10, 0.0 }
 0x183   : > { %386 = vst.msk [vmem:[%s228_s10] sm:$0xff] %vm385_vm10, %v381_v11 }
 0x1c9   : > { %v399_v48 = vpop.permute.xlu1 %398  ;;  %v403_v54 = vpop.permute.xlu0 %402 }
 0x1ca   : > { %538 = vmatmul.msk.f32.vlgmr.msra.gmra.mxu1 %vm406_vm8, %v399_v48 }
 0x1d1   : > { %v401_v49 = vpop.permute.xlu2 %400 }
 0x1d2   : > { %539 = vmatmul.msk.f32.gmra.mxu1 %vm406_vm8, %v401_v49 }
 0x1da   : > { %540 = vmatmul.msk.f32.gmra.mxu1 %vm406_vm8, %v403_v54 }
 0x1f2   : > { %v405_v61 = vpop.permute.xlu1 %404 }
 0x1f3   : > { %541 = vmatmul.msk.f32.gmra.mxu1 %vm406_vm8, %v405_v61 }
 0x247   : > { %v432_v63 = vpop.f32.mrf.mxu1 }
 0x248   : > { %v433_v0 = vadd.f32 %v576_v62, %v432_v63 }
 0x24a   : > { %v444_v5 = vmax.f32 %v433_v0, 0.0 }
 0x24c   : > { %452 = vrot.lane.b32.xlu2 %v444_v5, %s589_s30 }
 0x24f   : > { %v435_v6 = vpop.f32.mrf.mxu1 }
 0x250   : > { %v436_v2 = vadd.f32 %v576_v62, %v435_v6 }
 0x252   : > { %v445_v7 = vmax.f32 %v436_v2, 0.0 }
 0x254   : > { %454 = vrot.lane.b32.xlu0 %v445_v7, %s589_s30 }
 0x257   : > { %v438_v3 = vpop.f32.mrf.mxu1 }
 0x258   : > { %v439_v8 = vadd.f32 %v576_v62, %v438_v3 }
 0x25a   : > { %v446_v9 = vmax.f32 %v439_v8, 0.0 }
 0x25c   : > { %456 = vrot.lane.b32.xlu1 %v446_v9, %s589_s30 }
 0x270   : > { %v441_v18 = vpop.f32.mrf.mxu1 }
 0x271   : > { %v442_v19 = vadd.f32 %v576_v62, %v441_v18 }
 0x273   : > { %v447_v21 = vmax.f32 %v442_v19, 0.0 }
 0x275   : > { %458 = vrot.lane.b32.xlu2 %v447_v21, %s589_s30 }
 0x2a6   : > { %v453_v24 = vpop.permute.xlu2 %452 }
 0x2a7   : > { %465 = vst.msk [vmem:[%s228_s10] sm:$0xff] %vm464_vm11, %v453_v24 }
 0x2c6   : > { %v455_v25 = vpop.permute.xlu0 %454 }
 0x2c7   : > { %466 = vst.msk [vmem:[%s228_s10 + $0x8] sm:$0xff] %vm464_vm11, %v455_v25 }
 0x2ce   : > { %v457_v26 = vpop.permute.xlu1 %456 }
 0x2cf   : > { %467 = vst.msk [vmem:[%s228_s10 + $0x10] sm:$0xff] %vm464_vm11, %v457_v26  ;;  %v459_v27 = vpop.permute.xlu2 %458 }
 0x2d0   : > { %468 = vst.msk [vmem:[%s228_s10 + $0x18] sm:$0xff] %vm464_vm11, %v459_v27 }
 0x2d1 PF: > { %s17_s20 = sadd.s32 1, %s584_s20  }
 0x2d2   : > { %p14_p4 = scmp.ge.s32.totalorder %s17_s20, 4  }
 0x2d4   :  { %16 = sbr.rel (!%p14_p4) target bundleno = 3 (0x3), region = 70 }

// kernel: cdck2_forward.10
= control target key start
LH: loop header
LB: loop body
LE: loop exit
PB: predicated region body
PF: predicated region fallthrough
CT: control target
= control target key end

     0   :  { %s791_s20 = smov 0   ;;  %s1012_s0 = inlined_call_operand.vmem [shape: f32[128,40], index: 0, kind: input, shape index: {}]   ;;  %s1013_s1 = inlined_call_operand.vmem [shape: f32[40,7], index: 1, kind: input, shape index: {}]   ;;  %s1014_s2 = inlined_call_operand.vmem [shape: f32[8,1], index: 2, kind: input, shape index: {}]   ;;  %s1015_s3 = inlined_call_operand.vmem [shape: f32[1,7], index: 3, kind: input, shape index: {}]   ;;  %s1016_s4 = inlined_call_operand.<no memory space> [shape: f32[1,1], index: 4, kind: input, shape index: {}]   ;;  %s1017_s5 = inlined_call_operand.vmem [shape: f32[128,8], index: 5, kind: output, shape index: {}]  }
   0x1   :  { %v10_v0 = vstv %s1016_s4 }
   0x2   :  { %11 = vst [vmem:[#allocation2] sm:$0x1] %v10_v0 }
   0x3 LB: > { %s699_s21 = sadd.s32 4294967295, %s752_s20   ;;  %p703_p0 = scmp.ge.s32.totalorder %s752_s20, 1  ;;  %s752_s20 = sphi %s791_s20, %s17_s20  }
   0x4   : > { %p190_p1 = scmp.lt.s32.totalorder %s752_s20, 3 }
   0x6   : > { %p191_p2 = pnand %p703_p0, %p190_p1 }
   0x7   : > { %s704_s22 = sshll.u32 (!%p191_p2), %s699_s21, 3  ;;  %s754_s26 = smov (!%p191_p2), 8  }
   0x8   : > { %194 = sbr.rel (%p191_p2) target bundleno = 743 (0x2e7), region = 40  ;;  %p219_p3 = scmp.lt.s32.totalorder (!%p191_p2), %s704_s22, 15 }
   0x9   : > { %s755_s27 = smov (!%p191_p2), 120   ;;  %s756_s28 = smov (!%p191_p2), 112  }
   0xa   : > { %s757_s16 = smov (!%p191_p2), 7  }
   0xd   : > { %s1019_s22 = smov (!%p219_p3, %s704_s22), 15  ;;  %v243_v9 = vlaneseq }
   0xe   : > { %s705_s4 = sshll.u32 %s1019_s22, 3 }
   0xf   : > { %s222_s25 = scalar_lea.vmem %s1012_s0, %s705_s4  ;;  %v244_v10 = vshrl.u32 %v243_v9, 7  ;;  %s972_s23 = scalar_lea.vmem %s1017_s5, %s705_s4 }
  0x10   : > { %v807_v1 = vld [vmem:[%s222_s25 + $0x28] sm:$0xff]  ;;  %v809_v2 = vld [vmem:[%s222_s25] sm:$0xff]  ;;  %v815_v3 = vld [vmem:[%s222_s25 + $0x30] sm:$0xff] }
  0x11   : > { %326 = vrot.lane.b32.xlu1 %v807_v1, %s754_s26  ;;  %316 = vrot.lane.b32.xlu0 %v809_v2, %s754_s26  ;;  %v819_v4 = vld [vmem:[%s222_s25 + $0x8] sm:$0xff]  ;;  %v821_v5 = vld [vmem:[%s222_s25 + $0x10] sm:$0xff]  ;;  %v845_v11 = vadd.s32 40, %v244_v10  ;;  %v252_v13 = vand.u32 3, %v244_v10  ;;  %v245_v14 = vadd.s32 8, %v244_v10  ;;  %v854_v21 = vadd.s32 24, %v244_v10 }
  0x12   : > { %328 = vrot.lane.b32.xlu2 %v815_v3, %s754_s26  ;;  %v823_v6 = vld [vmem:[%s222_s25 + $0x18] sm:$0xff]  ;;  %v833_v8 = vld [vmem:[%s222_s25 + $0x20] sm:$0xff]  ;;  %v246_v22 = vadd.s32 16, %v244_v10  ;;  %v250_v23 = vadd.s32 48, %v244_v10  ;;  %v251_v34 = vadd.s32 56, %v244_v10  ;;  %v248_v35 = vadd.s32 32, %v244_v10 }
  0x13   : > { %v831_v7 = vld [vmem:[%s222_s25 + $0x38] sm:$0xff]  ;;  %v257_v12 = vand.u32 3, %v845_v11  ;;  %vm308_vm1 = vcmp.lt.s32.totalorder %v252_v13, 3  ;;  %v253_v20 = vand.u32 3, %v245_v14  ;;  %v255_v25 = vand.u32 3, %v854_v21 }
  0x14   : > { %v254_v26 = vand.u32 3, %v246_v22  ;;  %v258_v28 = vand.u32 3, %v250_v23  ;;  %v259_v36 = vand.u32 3, %v251_v34  ;;  %v256_v37 = vand.u32 3, %v248_v35 }
  0x15   : > { %vm313_vm0 = vcmp.lt.s32.totalorder %v257_v12, 3  ;;  %vm309_vm2 = vcmp.lt.s32.totalorder %v253_v20, 3  ;;  %vm311_vm3 = vcmp.lt.s32.totalorder %v255_v25, 3  ;;  %vm261_vm8 = vcmp.gt.s32.totalorder %v253_v20, 0 }
  0x16   : > { %vm310_vm4 = vcmp.lt.s32.totalorder %v254_v26, 3  ;;  %vm314_vm5 = vcmp.lt.s32.totalorder %v258_v28, 3  ;;  %vm315_vm6 = vcmp.lt.s32.totalorder %v259_v36, 3  ;;  %vm312_vm7 = vcmp.lt.s32.totalorder %v256_v37, 3 }
  0x17   : > { %vm260_vm9 = vcmp.gt.s32.totalorder %v252_v13, 0  ;;  %vm266_vm10 = vcmp.gt.s32.totalorder %v258_v28, 0  ;;  %vm265_vm11 = vcmp.gt.s32.totalorder %v257_v12, 0  ;;  %vm262_vm12 = vcmp.gt.s32.totalorder %v254_v26, 0  ;;  %v428_v26 = vld [vmem:[%s1014_s2] sm:$0xff] }
  0x18   : > { %vm263_vm13 = vcmp.gt.s32.totalorder %v255_v25, 0  ;;  %vm264_vm14 = vcmp.gt.s32.totalorder %v256_v37, 0  ;;  %vm267_vm15 = vcmp.gt.s32.totalorder %v259_v36, 0  ;;  %568 = vmatpush.msra.mxu1 %v428_v26  ;;  %731 = vmatpush.msra.mxu3 %v428_v26 }
  0x19   : > { %318 = vrot.lane.b32.xlu0 %v819_v4, %s754_s26  ;;  %320 = vrot.lane.b32.xlu1 %v821_v5, %s754_s26 }
  0x1a   : > { %322 = vrot.lane.b32.xlu2 %v823_v6, %s754_s26 }
  0x21   : > { %330 = vrot.lane.b32.xlu0 %v831_v7, %s754_s26  ;;  %324 = vrot.lane.b32.xlu1 %v833_v8, %s754_s26 }
  0x22   : > { %276 = vrot.lane.b32.xlu2 %v809_v2, %s755_s27 }
  0x29   : > { %278 = vrot.lane.b32.xlu1 %v819_v4, %s755_s27 }
  0x2a   : > { %280 = vrot.lane.b32.xlu2 %v821_v5, %s755_s27 }
  0x6c   : > { %v329_v19 = vpop.permute.xlu2 %328 }
  0x6d   : > { %v346_v33 = vsel %vm314_vm5, %v815_v3, %v329_v19 }
  0x74   : > { %v323_v29 = vpop.permute.xlu2 %322 }
  0x75   : > { %v343_v31 = vsel %vm311_vm3, %v823_v6, %v323_v29  ;;  %vm634_vm3 = vcmask 64568  }
  0x7c   : > { %v277_v42 = vpop.permute.xlu2 %276 }
  0x7d   : > { %v300_v49 = vsel %vm260_vm9, %v809_v2, %v277_v42  ;;  %v239_v42 = vld [vmem:[%s1013_s1 + $0x8] sm:$0xff] }
  0x83   : > { %v327_v15 = vpop.permute.xlu1 %326  ;;  %v317_v16 = vpop.permute.xlu0 %316 }
  0x84   : > { %v345_v17 = vsel %vm313_vm0, %v807_v1, %v327_v15  ;;  %v340_v18 = vsel %vm308_vm1, %v809_v2, %v317_v16  ;;  %v281_v43 = vpop.permute.xlu2 %280  ;;  %vm536_vm0 = vcmask 64512   ;;  %vm433_vm1 = vcmask 326656  }
  0x85   : > { %366 = vrot.lane.b32.xlu1 %v345_v17, %s756_s28  ;;  %356 = vrot.lane.b32.xlu0 %v340_v18, %s756_s28  ;;  %v302_v61 = vsel %vm262_vm12, %v821_v5, %v281_v43  ;;  %v238_v43 = vld [vmem:[%s1013_s1] sm:$0xff] }
  0x8b   : > { %v319_v24 = vpop.permute.xlu0 %318  ;;  %v321_v30 = vpop.permute.xlu1 %320 }
  0x8c   : > { %v341_v27 = vsel %vm309_vm2, %v819_v4, %v319_v24  ;;  %v342_v32 = vsel %vm310_vm4, %v821_v5, %v321_v30  ;;  %vm499_vm2 = vcmask 56320  }
  0x8d   : > { %288 = vrot.lane.b32.xlu1 %v815_v3, %s755_s27  ;;  %286 = vrot.lane.b32.xlu0 %v807_v1, %s755_s27 }
  0x8e   : > { %358 = vrot.lane.b32.xlu2 %v341_v27, %s756_s28 }
  0x93   : > { %v331_v38 = vpop.permute.xlu0 %330  ;;  %v325_v39 = vpop.permute.xlu1 %324 }
  0x94   : > { %v347_v40 = vsel %vm315_vm6, %v831_v7, %v331_v38  ;;  %v344_v41 = vsel %vm312_vm7, %v833_v8, %v325_v39  ;;  %v242_v39 = vld [vmem:[%s1013_s1 + $0x20] sm:$0xff] }
  0x95   : > { %362 = vrot.lane.b32.xlu1 %v343_v31, %s756_s28  ;;  %360 = vrot.lane.b32.xlu0 %v342_v32, %s756_s28 }
  0x96   : > { %368 = vrot.lane.b32.xlu2 %v346_v33, %s756_s28  ;;  %461 = vmatpush.msra.mxu0 %v242_v39 }
  0x97   : > { %726 = vmatpush.msra.mxu2 %v242_v39 }
  0x9b   : > { %v279_v44 = vpop.permute.xlu1 %278 }
  0x9c   : > { %v301_v45 = vsel %vm261_vm8, %v819_v4, %v279_v44 }
  0x9d   : > { %284 = vrot.lane.b32.xlu1 %v833_v8, %s755_s27  ;;  %282 = vrot.lane.b32.xlu0 %v823_v6, %s755_s27 }
  0x9e   : > { %290 = vrot.lane.b32.xlu2 %v831_v7, %s755_s27 }
  0xa5   : > { %370 = vrot.lane.b32.xlu0 %v347_v40, %s756_s28  ;;  %v241_v40 = vld [vmem:[%s1013_s1 + $0x18] sm:$0xff] }
  0xa6   : > { %364 = vrot.lane.b32.xlu2 %v344_v41, %s756_s28  ;;  %v240_v41 = vld [vmem:[%s1013_s1 + $0x10] sm:$0xff]  ;;  %462 = vmatpush.msra.mxu0 %v241_v40 }
  0xa7   : > { %727 = vmatpush.msra.mxu2 %v241_v40 }
  0xa8   : > { %463 = vmatpush.msra.mxu0 %v240_v41 }
  0xa9   : > { %728 = vmatpush.msra.mxu2 %v240_v41 }
  0xaa   : > { %464 = vmatpush.msra.mxu0 %v239_v42 }
  0xab   : > { %729 = vmatpush.msra.mxu2 %v239_v42 }
  0xac   : > { %465 = vmatpush.msra.mxu0 %v238_v43 }
  0xad   : > { %730 = vmatpush.msra.mxu2 %v238_v43  ;;  %708 = vmatmul.msk.f32.vlgmr.msra.gmra.mxu0 %vm433_vm1, %v809_v2 }
  0xae   : > { %712 = vmatmul.msk.f32.vlgmr.msra.gmra.mxu2 %vm433_vm1, %v833_v8 }
  0xb5   : > { %709 = vmatmul.msk.f32.gmra.mxu0 %vm433_vm1, %v819_v4 }
  0xb6   : > { %713 = vmatmul.msk.f32.gmra.mxu2 %vm433_vm1, %v807_v1 }
  0xbd   : > { %710 = vmatmul.msk.f32.gmra.mxu0 %vm433_vm1, %v821_v5 }
  0xbe   : > { %714 = vmatmul.msk.f32.gmra.mxu2 %vm433_vm1, %v815_v3 }
  0xc5   : > { %711 = vmatmul.msk.f32.gmra.mxu0 %vm433_vm1, %v823_v6 }
  0xc6   : > { %715 = vmatmul.msk.f32.gmra.mxu2 %vm433_vm1, %v831_v7 }
  0xe8   : > { %v359_v46 = vpop.permute.xlu2 %358 }
  0xe9   : > { %v381_v47 = vmax.f32 %v301_v45, %v359_v46 }
  0xeb   : > { %398 = vrot.lane.b32.xlu1 %v381_v47, %s754_s26 }
  0xf0   : > { %v369_v52 = vpop.permute.xlu2 %368 }
  0xf7   : > { %v367_v48 = vpop.permute.xlu1 %366  ;;  %v357_v50 = vpop.permute.xlu0 %356 }
  0xf8   : > { %v380_v51 = vmax.f32 %v300_v49, %v357_v50  ;;  %v291_v59 = vpop.permute.xlu2 %290 }
  0xf9   : > { %v307_v15 = vsel %vm267_vm15, %v831_v7, %v291_v59 }
  0xfa   : > { %396 = vrot.lane.b32.xlu0 %v380_v51, %s754_s26 }
  0xff   : > { %v289_v53 = vpop.permute.xlu1 %288  ;;  %v287_v54 = vpop.permute.xlu0 %286 }
 0x100   : > { %v306_v55 = vsel %vm266_vm10, %v815_v3, %v289_v53  ;;  %v305_v56 = vsel %vm265_vm11, %v807_v1, %v287_v54  ;;  %v365_v0 = vpop.permute.xlu2 %364 }
 0x101   : > { %v386_v57 = vmax.f32 %v306_v55, %v369_v52  ;;  %v385_v58 = vmax.f32 %v305_v56, %v367_v48  ;;  %v745_v56 = vld [vmem:[%s1015_s3] ss:$0 sm:$0xff] }
 0x103   : > { %408 = vrot.lane.b32.xlu1 %v386_v57, %s754_s26  ;;  %406 = vrot.lane.b32.xlu2 %v385_v58, %s754_s26 }
 0x107   : > { %v363_v60 = vpop.permute.xlu1 %362  ;;  %v361_v62 = vpop.permute.xlu0 %360 }
 0x108   : > { %v382_v63 = vmax.f32 %v302_v61, %v361_v62 }
 0x10a   : > { %400 = vrot.lane.b32.xlu0 %v382_v63, %s754_s26 }
 0x10f   : > { %v285_v9 = vpop.permute.xlu1 %284  ;;  %v283_v10 = vpop.permute.xlu0 %282 }
 0x110   : > { %v303_v11 = vsel %vm263_vm13, %v823_v6, %v283_v10  ;;  %v304_v12 = vsel %vm264_vm14, %v833_v8, %v285_v9 }
 0x111   : > { %v383_v13 = vmax.f32 %v303_v11, %v363_v60  ;;  %v384_v14 = vmax.f32 %v304_v12, %v365_v0 }
 0x113   : > { %404 = vrot.lane.b32.xlu1 %v384_v14, %s754_s26  ;;  %402 = vrot.lane.b32.xlu2 %v383_v13, %s754_s26 }
 0x117   : > { %v371_v16 = vpop.permute.xlu0 %370 }
 0x118   : > { %v387_v17 = vmax.f32 %v307_v15, %v371_v16 }
 0x11a   : > { %410 = vrot.lane.b32.xlu0 %v387_v17, %s754_s26 }
 0x12a   : > { %v467_v57 = vpop.f32.mrf.mxu0 }
 0x12b   : > { %v468_v58 = vadd.f32 %v745_v56, %v467_v57 }
 0x12d   : > { %v491_v59 = vmax.f32 %v468_v58, 0.0 }
 0x12f   : > { %500 = vst.msk [vmem:[%s972_s23] sm:$0xff] %vm499_vm2, %v491_v59 }
 0x131   : > { %v479_v16 = vpop.f32.mrf.mxu2 }
 0x132   : > { %v470_v60 = vpop.f32.mrf.mxu0 }
 0x133   : > { %v471_v62 = vadd.f32 %v745_v56, %v470_v60 }
 0x135   : > { %v492_v0 = vmax.f32 %v471_v62, 0.0 }
 0x137   : > { %501 = vst.msk [vmem:[%s972_s23 + $0x8] sm:$0xff] %vm499_vm2, %v492_v0 }
 0x13a   : > { %v473_v17 = vpop.f32.mrf.mxu0 }
 0x142   : > { %v476_v26 = vpop.f32.mrf.mxu0 }
 0x15d   : > { %v399_v18 = vpop.permute.xlu1 %398  ;;  %v407_v19 = vpop.permute.xlu2 %406 }
 0x15e   : > { %v421_v20 = vmax.f32 %v819_v4, %v399_v18  ;;  %v425_v21 = vmax.f32 %v807_v1, %v407_v19  ;;  %v744_v4 = vld [vmem:[#allocation2] ss:$0 sm:$0xff]  ;;  %v480_v18 = vadd.f32 %v745_v56, %v479_v16  ;;  %v474_v19 = vadd.f32 %v745_v56, %v473_v17 }
 0x160   : > { %522 = vrot.lane.b32.xlu0 %v421_v20, %s756_s28  ;;  %530 = vrot.lane.b32.xlu1 %v425_v21, %s756_s28  ;;  %v495_v20 = vmax.f32 %v480_v18, 0.0  ;;  %v493_v21 = vmax.f32 %v474_v19, 0.0 }
 0x162   : > { %504 = vst.msk [vmem:[%s972_s23 + $0x20] sm:$0xff] %vm499_vm2, %v495_v20 }
 0x163   : > { %502 = vst.msk [vmem:[%s972_s23 + $0x10] sm:$0xff] %vm499_vm2, %v493_v21 }
 0x16c   : > { %v397_v22 = vpop.permute.xlu0 %396 }
 0x16d   : > { %v420_v23 = vmax.f32 %v809_v2, %v397_v22  ;;  %v403_v24 = vpop.permute.xlu2 %402  ;;  %v482_v22 = vpop.f32.mrf.mxu2 }
 0x16e   : > { %v423_v25 = vmax.f32 %v823_v6, %v403_v24 }
 0x16f   : > { %520 = vrot.lane.b32.xlu2 %v420_v23, %s756_s28  ;;  %v483_v23 = vadd.f32 %v745_v56, %v482_v22 }
 0x170   : > { %526 = vrot.lane.b32.xlu1 %v423_v25, %s756_s28 }
 0x171   : > { %v496_v24 = vmax.f32 %v483_v23, 0.0 }
 0x173   : > { %505 = vst.msk [vmem:[%s972_s23 + $0x28] sm:$0xff] %vm499_vm2, %v496_v24 }
 0x175   : > { %v409_v27 = vpop.permute.xlu1 %408 }
 0x176   : > { %v426_v28 = vmax.f32 %v815_v3, %v409_v27  ;;  %v485_v27 = vpop.f32.mrf.mxu2 }
 0x178   : > { %532 = vrot.lane.b32.xlu0 %v426_v28, %s756_s28  ;;  %v477_v28 = vadd.f32 %v745_v56, %v476_v26 }
 0x17c   : > { %v401_v29 = vpop.permute.xlu0 %400 }
 0x17d   : > { %v422_v30 = vmax.f32 %v821_v5, %v401_v29  ;;  %v486_v29 = vadd.f32 %v745_v56, %v485_v27 }
 0x17f   : > { %524 = vrot.lane.b32.xlu2 %v422_v30, %s756_s28  ;;  %v494_v30 = vmax.f32 %v477_v28, 0.0 }
 0x181   : > { %503 = vst.msk [vmem:[%s972_s23 + $0x18] sm:$0xff] %vm499_vm2, %v494_v30 }
 0x185   : > { %v405_v31 = vpop.permute.xlu1 %404 }
 0x186   : > { %v424_v32 = vmax.f32 %v833_v8, %v405_v31  ;;  %v497_v31 = vmax.f32 %v486_v29, 0.0 }
 0x188   : > { %528 = vrot.lane.b32.xlu0 %v424_v32, %s756_s28  ;;  %506 = vst.msk [vmem:[%s972_s23 + $0x30] sm:$0xff] %vm499_vm2, %v497_v31  ;;  %v488_v32 = vpop.f32.mrf.mxu2 }
 0x18c   : > { %v411_v33 = vpop.permute.xlu0 %410 }
 0x18d   : > { %v427_v34 = vmax.f32 %v831_v7, %v411_v33  ;;  %v489_v33 = vadd.f32 %v745_v56, %v488_v32 }
 0x18f   : > { %534 = vrot.lane.b32.xlu2 %v427_v34, %s756_s28  ;;  %v498_v34 = vmax.f32 %v489_v33, 0.0 }
 0x191   : > { %507 = vst.msk [vmem:[%s972_s23 + $0x38] sm:$0xff] %vm499_vm2, %v498_v34 }
 0x1c9   : > { %v521_v35 = vpop.permute.xlu2 %520 }
 0x1ca   : > { %716 = vmatmul.msk.f32.vlgmr.msra.gmra.mxu1 %vm536_vm0, %v521_v35 }
 0x1d2   : > { %v523_v36 = vpop.permute.xlu0 %522  ;;  %v531_v37 = vpop.permute.xlu1 %530 }
 0x1d3   : > { %717 = vmatmul.msk.f32.gmra.mxu1 %vm536_vm0, %v523_v36  ;;  %721 = vmatmul.msk.f32.vlgmr.msra.gmra.mxu3 %vm536_vm0, %v531_v37 }
 0x1d9   : > { %v525_v38 = vpop.permute.xlu2 %524 }
 0x1db   : > { %718 = vmatmul.msk.f32.gmra.mxu1 %vm536_vm0, %v525_v38 }
 0x1e2   : > { %v527_v44 = vpop.permute.xlu1 %526 }
 0x1e3   : > { %719 = vmatmul.msk.f32.gmra.mxu1 %vm536_vm0, %v527_v44 }
 0x1e9   : > { %v535_v46 = vpop.permute.xlu2 %534 }
 0x1ea   : > { %v533_v45 = vpop.permute.xlu0 %532 }
 0x1eb   : > { %722 = vmatmul.msk.f32.gmra.mxu3 %vm536_vm0, %v533_v45 }
 0x1f3   : > { %723 = vmatmul.msk.f32.gmra.mxu3 %vm536_vm0, %v535_v46 }
 0x1fa   : > { %v529_v2 = vpop.permute.xlu0 %528 }
 0x1fb   : > { %720 = vmatmul.msk.f32.gmra.mxu1 %vm536_vm0, %v529_v2 }
 0x247   : > { %v570_v1 = vpop.f32.mrf.mxu1 }
 0x248   : > { %v571_v8 = vadd.f32 %v744_v4, %v570_v1 }
 0x24a   : > { %v594_v47 = vmax.f32 %v571_v8, 0.0 }
 0x24c   : > { %610 = vrot.lane.b32.xlu1 %v594_v47, %s757_s16 }
 0x250   : > { %v573_v5 = vpop.f32.mrf.mxu1 }
 0x251   : > { %v574_v48 = vadd.f32 %v744_v4, %v573_v5 }
 0x253   : > { %v595_v49 = vmax.f32 %v574_v48, 0.0 }
 0x255   : > { %612 = vrot.lane.b32.xlu2 %v595_v49, %s757_s16 }
 0x256   : > { %v585_v6 = vpop.f32.mrf.mxu3 }
 0x257   : > { %v586_v7 = vadd.f32 %v744_v4, %v585_v6 }
 0x258   : > { %v576_v3 = vpop.f32.mrf.mxu1 }
 0x259   : > { %v577_v50 = vadd.f32 %v744_v4, %v576_v3  ;;  %v599_v54 = vmax.f32 %v586_v7, 0.0 }
 0x25b   : > { %v596_v51 = vmax.f32 %v577_v50, 0.0 }
 0x25d   : > { %614 = vrot.lane.b32.xlu0 %v596_v51, %s757_s16 }
 0x260   : > { %v579_v52 = vpop.f32.mrf.mxu1 }
 0x261   : > { %v580_v53 = vadd.f32 %v744_v4, %v579_v52 }
 0x263   : > { %v597_v55 = vmax.f32 %v580_v53, 0.0 }
 0x265   : > { %620 = vrot.lane.b32.xlu0 %v599_v54, %s757_s16  ;;  %616 = vrot.lane.b32.xlu1 %v597_v55, %s757_s16 }
 0x26e   : > { %v588_v61 = vpop.f32.mrf.mxu3 }
 0x26f   : > { %v589_v63 = vadd.f32 %v744_v4, %v588_v61 }
 0x271   : > { %v600_v9 = vmax.f32 %v589_v63, 0.0 }
 0x273   : > { %622 = vrot.lane.b32.xlu1 %v600_v9, %s757_s16 }
 0x276   : > { %v591_v13 = vpop.f32.mrf.mxu3 }
 0x277   : > { %v592_v14 = vadd.f32 %v744_v4, %v591_v13 }
 0x278   : > { %v582_v10 = vpop.f32.mrf.mxu1 }
 0x279   : > { %v583_v11 = vadd.f32 %v744_v4, %v582_v10  ;;  %v601_v15 = vmax.f32 %v592_v14, 0.0 }
 0x27b   : > { %v598_v12 = vmax.f32 %v583_v11, 0.0 }
 0x27d   : > { %618 = vrot.lane.b32.xlu2 %v598_v12, %s757_s16 }
 0x285   : > { %624 = vrot.lane.b32.xlu2 %v601_v15, %s757_s16 }
 0x2af   : > { %v613_v25 = vpop.permute.xlu2 %612 }
 0x2b0   : > { %636 = vst.msk [vmem:[%s972_s23 + $0x8] sm:$0xff] %vm634_vm3, %v613_v25 }
 0x2be   : > { %v611_v35 = vpop.permute.xlu1 %610 }
 0x2bf   : > { %635 = vst.msk [vmem:[%s972_s23] sm:$0xff] %vm634_vm3, %v611_v35 }
 0x2cf   : > { %v615_v36 = vpop.permute.xlu0 %614 }
 0x2d0   : > { %637 = vst.msk [vmem:[%s972_s23 + $0x10] sm:$0xff] %vm634_vm3, %v615_v36 }
 0x2d7   : > { %v621_v37 = vpop.permute.xlu0 %620  ;;  %v617_v38 = vpop.permute.xlu1 %616 }
 0x2d8   : > { %640 = vst.msk [vmem:[%s972_s23 + $0x28] sm:$0xff] %vm634_vm3, %v621_v37  ;;  %v619_v39 = vpop.permute.xlu2 %618 }
 0x2d9   : > { %638 = vst.msk [vmem:[%s972_s23 + $0x18] sm:$0xff] %vm634_vm3, %v617_v38 }
 0x2da   : > { %639 = vst.msk [vmem:[%s972_s23 + $0x20] sm:$0xff] %vm634_vm3, %v619_v39 }
 0x2e0   : > { %v625_v40 = vpop.permute.xlu2 %624 }
 0x2e1   : > { %642 = vst.msk [vmem:[%s972_s23 + $0x38] sm:$0xff] %vm634_vm3, %v625_v40 }
 0x2e5   : > { %v623_v41 = vpop.permute.xlu1 %622 }
 0x2e6   : > { %641 = vst.msk [vmem:[%s972_s23 + $0x30] sm:$0xff] %vm634_vm3, %v623_v41 }
 0x2e7 PF: > { %s17_s20 = sadd.s32 1, %s752_s20  }
 0x2e8   : > { %p14_p4 = scmp.ge.s32.totalorder %s17_s20, 4  }
 0x2ea   :  { %16 = sbr.rel (!%p14_p4) target bundleno = 3 (0x3), region = 70 }

// kernel: cdck2_forward.11
= control target key start
LH: loop header
LB: loop body
LE: loop exit
PB: predicated region body
PF: predicated region fallthrough
CT: control target
= control target key end

     0   :  { %v700_v2 = vmov 0.0   ;;  %s701_s17 = smov 96   ;;  %s702_s20 = smov 32   ;;  %vm88_vm4 = vcmask 123904   ;;  %vm21_vm5 = vcmask 130048   ;;  %s849_s1 = inlined_call_operand.vmem [shape: f32[16,48], index: 1, kind: input, shape index: {}]   ;;  %s850_s2 = inlined_call_operand.vmem [shape: f32[1,48], index: 2, kind: input, shape index: {}]   ;;  %s851_s0 = inlined_call_operand.vmem [shape: f32[8,2,48], index: 0, kind: input, shape index: {}]   ;;  %s852_s3 = inlined_call_operand.vmem [shape: f32[8,2,16], index: 3, kind: output, shape index: {}]  }
   0x1   :  { %v16_v0 = vld [vmem:[%s849_s1 + $0x8] sm:$0xff]  ;;  %v15_v1 = vld [vmem:[%s849_s1] sm:$0xff]  ;;  %s703_s21 = smov 112  }
   0x2   :  { %39 = vmatpush.msra.mxu0 %v16_v0  ;;  %114 = vmatpush.msra.mxu1 %v16_v0  ;;  %v644_v3 = vld [vmem:[%s850_s2] ss:$0 sm:$0xff]  ;;  %v619_v36 = vld [vmem:[%s851_s0 + $0x2] sm:$0x3] }
   0x3   :  { %189 = vmatpush.msra.mxu2 %v16_v0  ;;  %264 = vmatpush.msra.mxu3 %v16_v0  ;;  %v14_v6 = vld [vmem:[%s851_s0] sm:$0x3] }
   0x4   :  { %40 = vmatpush.msra.mxu0 %v15_v1  ;;  %115 = vmatpush.msra.mxu1 %v15_v1  ;;  %v645_v33 = vld [vmem:[%s850_s2] ss:$0 sm:$0xff] }
   0x5   :  { %41 = vmatmul.f32.vlgmr.msra.gmra.mxu0 %v700_v2  ;;  %190 = vmatpush.msra.mxu2 %v15_v1  ;;  %v646_v63 = vld [vmem:[%s850_s2] ss:$0 sm:$0xff]  ;;  %v622_v2 = vld [vmem:[%s851_s0 + $0x4] sm:$0x3] }
   0x6   :  { %265 = vmatpush.msra.mxu3 %v15_v1  ;;  %339 = vmatpush.msrb.mxu0 %v16_v0 }
   0x7   :  { %414 = vmatpush.msrb.mxu1 %v16_v0  ;;  %489 = vmatpush.msrb.mxu2 %v16_v0 }
   0x8   :  { %340 = vmatpush.msrb.mxu0 %v15_v1  ;;  %564 = vmatpush.msrb.mxu3 %v16_v0 }
   0x9   :  { %415 = vmatpush.msrb.mxu1 %v15_v1  ;;  %490 = vmatpush.msrb.mxu2 %v15_v1 }
   0xa   :  { %565 = vmatpush.msrb.mxu3 %v15_v1 }
  0x82   :  { %v42_v4 = vpop.f32.mrf.mxu0 }
  0x83   :  { %v43_v5 = vadd.f32 %v644_v3, %v42_v4 }
  0x85   :  { %66 = vrot.lane.b32.xlu0 %v43_v5, %s701_s17  ;;  %v45_v7 = vadd.f32 %v43_v5, %v14_v6 }
  0x87   :  { %v46_v8 = vsub.f32 0.0, %v45_v7 }
  0x89   :  { %v47_v9 = vmul.f32 1.442695, %v46_v8 }
  0x8b   :  { %652 = vpow2.f32 %v47_v9 }
  0x91   :  { %v653_v10 = vpop.eup %652 }
  0x92   :  { %v49_v11 = vadd.f32 1.0, %v653_v10 }
  0x94   :  { %654 = vrcp.f32 %v49_v11  ;;  %v61_v17 = vand.u32 2147483648, %v49_v11  ;;  %vm55_vm1 = vweird.f32 %v49_v11  ;;  %v59_v18 = vand.u32 2147483647, %v49_v11 }
  0x96   :  { %v62_v20 = vor.u32 1.1754944e-38, %v61_v17  ;;  %vm60_vm3 = vcmp.eq.f32.partialorder %v59_v18, 8.507059e+37 }
  0x9a   :  { %v655_v12 = vpop.eup %654 }
  0x9b   :  { %v51_v13 = vmul.f32 %v655_v12, %v49_v11  ;;  %vm56_vm0 = vweird.f32 %v655_v12 }
  0x9c   :  { %vm57_vm2 = vmor %vm55_vm1, %vm56_vm0 }
  0x9d   :  { %v52_v14 = vsub.f32 1.0, %v51_v13 }
  0x9f   :  { %v53_v15 = vmul.f32 %v655_v12, %v52_v14 }
  0xa1   :  { %v54_v16 = vadd.f32 %v655_v12, %v53_v15 }
  0xa3   :  { %v58_v19 = vsel %vm57_vm2, %v655_v12, %v54_v16 }
  0xa4   :  { %v63_v22 = vsel %vm60_vm3, %v62_v20, %v58_v19 }
  0xa5   :  { %v76_v27 = vsub.f32 1.0, %v63_v22  ;;  %v82_v29 = vmul.f32 0.0, %v63_v22 }
  0xf7   :  { %v67_v21 = vpop.permute.xlu0 %66 }
  0xf8   :  { %v69_v23 = vmul.f32 %v67_v21, %v63_v22 }
  0xfa   :  { %71 = vrot.lane.b32.xlu0 %v69_v23, %s702_s20 }
 0x16c   :  { %v72_v24 = vpop.permute.xlu0 %71 }
 0x16d   :  { %v74_v25 = vadd.f32 %v72_v24, %v14_v6 }
 0x16f   :  { %656 = vtanh.f32 %v74_v25 }
 0x175   :  { %v657_v26 = vpop.eup %656 }
 0x176   :  { %78 = vrot.lane.b32.xlu1 %v657_v26, %s703_s21 }
 0x1e8   :  { %v79_v28 = vpop.permute.xlu1 %78 }
 0x1e9   :  { %v81_v30 = vmul.f32 %v79_v28, %v76_v27 }
 0x1eb   :  { %v83_v31 = vadd.f32 %v82_v29, %v81_v30  ;;  %v647_v29 = vld [vmem:[%s850_s2] ss:$0 sm:$0xff] }
 0x1ed   :  { %85 = vrot.lane.b32.xlu1 %v83_v31, %s703_s21 }
 0x25f   :  { %v86_v32 = vpop.permute.xlu1 %85 }
 0x260   :  { %89 = vst.msk [vmem:[%s852_s3] sm:$0x3] %vm88_vm4, %v86_v32  ;;  %620 = vmatmul.msk.f32.vlgmr.msra.gmra.mxu1 %vm21_vm5, %v86_v32  ;;  %v625_v32 = vld [vmem:[%s851_s0 + $0x6] sm:$0x3] }
 0x2dd   :  { %v117_v34 = vpop.f32.mrf.mxu1 }
 0x2de   :  { %v118_v35 = vadd.f32 %v645_v33, %v117_v34 }
 0x2e0   :  { %141 = vrot.lane.b32.xlu2 %v118_v35, %s701_s17  ;;  %v120_v37 = vadd.f32 %v619_v36, %v118_v35 }
 0x2e2   :  { %v121_v38 = vsub.f32 0.0, %v120_v37 }
 0x2e4   :  { %v122_v39 = vmul.f32 1.442695, %v121_v38 }
 0x2e6   :  { %658 = vpow2.f32 %v122_v39 }
 0x2ec   :  { %v659_v40 = vpop.eup %658 }
 0x2ed   :  { %v124_v41 = vadd.f32 1.0, %v659_v40 }
 0x2ef   :  { %660 = vrcp.f32 %v124_v41  ;;  %v136_v47 = vand.u32 2147483648, %v124_v41  ;;  %vm130_vm7 = vweird.f32 %v124_v41  ;;  %v134_v48 = vand.u32 2147483647, %v124_v41 }
 0x2f1   :  { %v137_v50 = vor.u32 1.1754944e-38, %v136_v47  ;;  %vm135_vm9 = vcmp.eq.f32.partialorder %v134_v48, 8.507059e+37 }
 0x2f5   :  { %v661_v42 = vpop.eup %660 }
 0x2f6   :  { %v126_v43 = vmul.f32 %v661_v42, %v124_v41  ;;  %vm131_vm6 = vweird.f32 %v661_v42 }
 0x2f7   :  { %vm132_vm8 = vmor %vm130_vm7, %vm131_vm6 }
 0x2f8   :  { %v127_v44 = vsub.f32 1.0, %v126_v43 }
 0x2fa   :  { %v128_v45 = vmul.f32 %v661_v42, %v127_v44 }
 0x2fc   :  { %v129_v46 = vadd.f32 %v661_v42, %v128_v45 }
 0x2fe   :  { %v133_v49 = vsel %vm132_vm8, %v661_v42, %v129_v46 }
 0x2ff   :  { %v138_v52 = vsel %vm135_vm9, %v137_v50, %v133_v49 }
 0x300   :  { %v151_v57 = vsub.f32 1.0, %v138_v52  ;;  %v157_v59 = vmul.f32 %v138_v52, %v83_v31 }
 0x33a   :  { %v142_v51 = vpop.permute.xlu2 %141 }
 0x33b   :  { %v144_v53 = vmul.f32 %v142_v51, %v138_v52 }
 0x33d   :  { %146 = vrot.lane.b32.xlu2 %v144_v53, %s702_s20 }
 0x397   :  { %v147_v54 = vpop.permute.xlu2 %146 }
 0x398   :  { %v149_v55 = vadd.f32 %v619_v36, %v147_v54 }
 0x39a   :  { %662 = vtanh.f32 %v149_v55 }
 0x3a0   :  { %v663_v56 = vpop.eup %662 }
 0x3a1   :  { %153 = vrot.lane.b32.xlu0 %v663_v56, %s703_s21 }
 0x413   :  { %v154_v58 = vpop.permute.xlu0 %153 }
 0x414   :  { %v156_v60 = vmul.f32 %v154_v58, %v151_v57 }
 0x416   :  { %v158_v61 = vadd.f32 %v157_v59, %v156_v60  ;;  %v648_v59 = vld [vmem:[%s850_s2] ss:$0 sm:$0xff] }
 0x418   :  { %160 = vrot.lane.b32.xlu1 %v158_v61, %s703_s21 }
 0x48a   :  { %v161_v62 = vpop.permute.xlu1 %160 }
 0x48b   :  { %621 = vst.msk [vmem:[%s852_s3 + $0x2] sm:$0x3] %vm88_vm4, %v161_v62  ;;  %623 = vmatmul.msk.f32.vlgmr.msra.gmra.mxu2 %vm21_vm5, %v161_v62  ;;  %v628_v62 = vld [vmem:[%s851_s0 + $0x8] sm:$0x3] }
 0x50e   :  { %v192_v0 = vpop.f32.mrf.mxu2 }
 0x50f   :  { %v193_v1 = vadd.f32 %v646_v63, %v192_v0 }
 0x511   :  { %216 = vrot.lane.b32.xlu2 %v193_v1, %s701_s17  ;;  %v195_v3 = vadd.f32 %v622_v2, %v193_v1 }
 0x513   :  { %v196_v4 = vsub.f32 0.0, %v195_v3 }
 0x515   :  { %v197_v5 = vmul.f32 1.442695, %v196_v4 }
 0x517   :  { %664 = vpow2.f32 %v197_v5 }
 0x51d   :  { %v665_v6 = vpop.eup %664 }
 0x51e   :  { %v199_v7 = vadd.f32 1.0, %v665_v6 }
 0x520   :  { %666 = vrcp.f32 %v199_v7  ;;  %v211_v13 = vand.u32 2147483648, %v199_v7  ;;  %vm205_vm11 = vweird.f32 %v199_v7  ;;  %v209_v14 = vand.u32 2147483647, %v199_v7 }
 0x522   :  { %v212_v16 = vor.u32 1.1754944e-38, %v211_v13  ;;  %vm210_vm13 = vcmp.eq.f32.partialorder %v209_v14, 8.507059e+37 }
 0x526   :  { %v667_v8 = vpop.eup %666 }
 0x527   :  { %v201_v9 = vmul.f32 %v667_v8, %v199_v7  ;;  %vm206_vm10 = vweird.f32 %v667_v8 }
 0x528   :  { %vm207_vm12 = vmor %vm205_vm11, %vm206_vm10 }
 0x529   :  { %v202_v10 = vsub.f32 1.0, %v201_v9 }
 0x52b   :  { %v203_v11 = vmul.f32 %v667_v8, %v202_v10 }
 0x52d   :  { %v204_v12 = vadd.f32 %v667_v8, %v203_v11 }
 0x52f   :  { %v208_v15 = vsel %vm207_vm12, %v667_v8, %v204_v12 }
 0x530   :  { %v213_v18 = vsel %vm210_vm13, %v212_v16, %v208_v15 }
 0x531   :  { %v226_v23 = vsub.f32 1.0, %v213_v18  ;;  %v232_v25 = vmul.f32 %v213_v18, %v158_v61 }
 0x56b   :  { %v217_v17 = vpop.permute.xlu2 %216 }
 0x56c   :  { %v219_v19 = vmul.f32 %v217_v17, %v213_v18 }
 0x56e   :  { %221 = vrot.lane.b32.xlu0 %v219_v19, %s702_s20 }
 0x5e0   :  { %v222_v20 = vpop.permute.xlu0 %221 }
 0x5e1   :  { %v224_v21 = vadd.f32 %v622_v2, %v222_v20 }
 0x5e3   :  { %668 = vtanh.f32 %v224_v21 }
 0x5e9   :  { %v669_v22 = vpop.eup %668 }
 0x5ea   :  { %228 = vrot.lane.b32.xlu1 %v669_v22, %s703_s21 }
 0x65c   :  { %v229_v24 = vpop.permute.xlu1 %228 }
 0x65d   :  { %v231_v26 = vmul.f32 %v229_v24, %v226_v23 }
 0x65f   :  { %v233_v27 = vadd.f32 %v232_v25, %v231_v26  ;;  %v649_v25 = vld [vmem:[%s850_s2] ss:$0 sm:$0xff] }
 0x661   :  { %235 = vrot.lane.b32.xlu2 %v233_v27, %s703_s21 }
 0x6bb   :  { %v236_v28 = vpop.permute.xlu2 %235 }
 0x6bc   :  { %624 = vst.msk [vmem:[%s852_s3 + $0x4] sm:$0x3] %vm88_vm4, %v236_v28  ;;  %626 = vmatmul.msk.f32.vlgmr.msra.gmra.mxu3 %vm21_vm5, %v236_v28  ;;  %v631_v28 = vld [vmem:[%s851_s0 + $0xa] sm:$0x3] }
 0x73f   :  { %v267_v30 = vpop.f32.mrf.mxu3 }
 0x740   :  { %v268_v31 = vadd.f32 %v647_v29, %v267_v30 }
 0x742   :  { %291 = vrot.lane.b32.xlu0 %v268_v31, %s701_s17  ;;  %v270_v33 = vadd.f32 %v625_v32, %v268_v31 }
 0x744   :  { %v271_v34 = vsub.f32 0.0, %v270_v33 }
 0x746   :  { %v272_v35 = vmul.f32 1.442695, %v271_v34 }
 0x748   :  { %670 = vpow2.f32 %v272_v35 }
 0x74e   :  { %v671_v36 = vpop.eup %670 }
 0x74f   :  { %v274_v37 = vadd.f32 1.0, %v671_v36 }
 0x751   :  { %672 = vrcp.f32 %v274_v37  ;;  %v286_v43 = vand.u32 2147483648, %v274_v37  ;;  %vm280_vm15 = vweird.f32 %v274_v37  ;;  %v284_v44 = vand.u32 2147483647, %v274_v37 }
 0x753   :  { %v287_v46 = vor.u32 1.1754944e-38, %v286_v43  ;;  %vm285_vm1 = vcmp.eq.f32.partialorder %v284_v44, 8.507059e+37 }
 0x757   :  { %v673_v38 = vpop.eup %672 }
 0x758   :  { %v276_v39 = vmul.f32 %v673_v38, %v274_v37  ;;  %vm281_vm14 = vweird.f32 %v673_v38 }
 0x759   :  { %vm282_vm0 = vmor %vm280_vm15, %vm281_vm14 }
 0x75a   :  { %v277_v40 = vsub.f32 1.0, %v276_v39 }
 0x75c   :  { %v278_v41 = vmul.f32 %v673_v38, %v277_v40 }
 0x75e   :  { %v279_v42 = vadd.f32 %v673_v38, %v278_v41 }
 0x760   :  { %v283_v45 = vsel %vm282_vm0, %v673_v38, %v279_v42 }
 0x761   :  { %v288_v48 = vsel %vm285_vm1, %v287_v46, %v283_v45 }
 0x762   :  { %v301_v53 = vsub.f32 1.0, %v288_v48  ;;  %v307_v55 = vmul.f32 %v288_v48, %v233_v27 }
 0x7b4   :  { %v292_v47 = vpop.permute.xlu0 %291 }
 0x7b5   :  { %v294_v49 = vmul.f32 %v292_v47, %v288_v48 }
 0x7b7   :  { %296 = vrot.lane.b32.xlu1 %v294_v49, %s702_s20 }
 0x829   :  { %v297_v50 = vpop.permute.xlu1 %296 }
 0x82a   :  { %v299_v51 = vadd.f32 %v625_v32, %v297_v50 }
 0x82c   :  { %674 = vtanh.f32 %v299_v51 }
 0x832   :  { %v675_v52 = vpop.eup %674 }
 0x833   :  { %303 = vrot.lane.b32.xlu2 %v675_v52, %s703_s21 }
 0x88d   :  { %v304_v54 = vpop.permute.xlu2 %303 }
 0x88e   :  { %v306_v56 = vmul.f32 %v304_v54, %v301_v53 }
 0x890   :  { %v308_v57 = vadd.f32 %v307_v55, %v306_v56  ;;  %v650_v55 = vld [vmem:[%s850_s2] ss:$0 sm:$0xff] }
 0x892   :  { %310 = vrot.lane.b32.xlu0 %v308_v57, %s703_s21 }
 0x904   :  { %v311_v58 = vpop.permute.xlu0 %310 }
 0x905   :  { %627 = vst.msk [vmem:[%s852_s3 + $0x6] sm:$0x3] %vm88_vm4, %v311_v58  ;;  %629 = vmatmul.msk.f32.vlgmr.msrb.gmra.mxu0 %vm21_vm5, %v311_v58  ;;  %v634_v58 = vld [vmem:[%s851_s0 + $0xc] sm:$0x3] }
 0x982   :  { %v342_v60 = vpop.f32.mrf.mxu0 }
 0x983   :  { %v343_v61 = vadd.f32 %v648_v59, %v342_v60 }
 0x985   :  { %366 = vrot.lane.b32.xlu1 %v343_v61, %s701_s17  ;;  %v345_v63 = vadd.f32 %v628_v62, %v343_v61 }
 0x987   :  { %v346_v0 = vsub.f32 0.0, %v345_v63 }
 0x989   :  { %v347_v1 = vmul.f32 1.442695, %v346_v0 }
 0x98b   :  { %676 = vpow2.f32 %v347_v1 }
 0x991   :  { %v677_v2 = vpop.eup %676 }
 0x992   :  { %v349_v3 = vadd.f32 1.0, %v677_v2 }
 0x994   :  { %678 = vrcp.f32 %v349_v3  ;;  %v361_v9 = vand.u32 2147483648, %v349_v3  ;;  %vm355_vm3 = vweird.f32 %v349_v3  ;;  %v359_v10 = vand.u32 2147483647, %v349_v3 }
 0x996   :  { %v362_v12 = vor.u32 1.1754944e-38, %v361_v9  ;;  %vm360_vm7 = vcmp.eq.f32.partialorder %v359_v10, 8.507059e+37 }
 0x99a   :  { %v679_v4 = vpop.eup %678 }
 0x99b   :  { %v351_v5 = vmul.f32 %v679_v4, %v349_v3  ;;  %vm356_vm2 = vweird.f32 %v679_v4 }
 0x99c   :  { %vm357_vm6 = vmor %vm355_vm3, %vm356_vm2 }
 0x99d   :  { %v352_v6 = vsub.f32 1.0, %v351_v5 }
 0x99f   :  { %v353_v7 = vmul.f32 %v679_v4, %v352_v6 }
 0x9a1   :  { %v354_v8 = vadd.f32 %v679_v4, %v353_v7 }
 0x9a3   :  { %v358_v11 = vsel %vm357_vm6, %v679_v4, %v354_v8 }
 0x9a4   :  { %v363_v14 = vsel %vm360_vm7, %v362_v12, %v358_v11 }
 0x9a5   :  { %v376_v19 = vsub.f32 1.0, %v363_v14  ;;  %v382_v21 = vmul.f32 %v363_v14, %v308_v57 }
 0x9f7   :  { %v367_v13 = vpop.permute.xlu1 %366 }
 0x9f8   :  { %v369_v15 = vmul.f32 %v367_v13, %v363_v14 }
 0x9fa   :  { %371 = vrot.lane.b32.xlu2 %v369_v15, %s702_s20 }
 0xa54   :  { %v372_v16 = vpop.permute.xlu2 %371 }
 0xa55   :  { %v374_v17 = vadd.f32 %v628_v62, %v372_v16 }
 0xa57   :  { %680 = vtanh.f32 %v374_v17 }
 0xa5d   :  { %v681_v18 = vpop.eup %680 }
 0xa5e   :  { %378 = vrot.lane.b32.xlu0 %v681_v18, %s703_s21 }
 0xad0   :  { %v379_v20 = vpop.permute.xlu0 %378 }
 0xad1   :  { %v381_v22 = vmul.f32 %v379_v20, %v376_v19 }
 0xad3   :  { %v383_v23 = vadd.f32 %v382_v21, %v381_v22  ;;  %v651_v21 = vld [vmem:[%s850_s2] ss:$0 sm:$0xff] }
 0xad5   :  { %385 = vrot.lane.b32.xlu1 %v383_v23, %s703_s21 }
 0xb47   :  { %v386_v24 = vpop.permute.xlu1 %385 }
 0xb48   :  { %630 = vst.msk [vmem:[%s852_s3 + $0x8] sm:$0x3] %vm88_vm4, %v386_v24  ;;  %632 = vmatmul.msk.f32.vlgmr.msrb.gmra.mxu1 %vm21_vm5, %v386_v24  ;;  %v637_v24 = vld [vmem:[%s851_s0 + $0xe] sm:$0x3] }
 0xbc5   :  { %v417_v26 = vpop.f32.mrf.mxu1 }
 0xbc6   :  { %v418_v27 = vadd.f32 %v649_v25, %v417_v26 }
 0xbc8   :  { %441 = vrot.lane.b32.xlu2 %v418_v27, %s701_s17  ;;  %v420_v29 = vadd.f32 %v631_v28, %v418_v27 }
 0xbca   :  { %v421_v30 = vsub.f32 0.0, %v420_v29 }
 0xbcc   :  { %v422_v31 = vmul.f32 1.442695, %v421_v30 }
 0xbce   :  { %682 = vpow2.f32 %v422_v31 }
 0xbd4   :  { %v683_v32 = vpop.eup %682 }
 0xbd5   :  { %v424_v33 = vadd.f32 1.0, %v683_v32 }
 0xbd7   :  { %684 = vrcp.f32 %v424_v33  ;;  %v436_v39 = vand.u32 2147483648, %v424_v33  ;;  %vm430_vm9 = vweird.f32 %v424_v33  ;;  %v434_v40 = vand.u32 2147483647, %v424_v33 }
 0xbd9   :  { %v437_v42 = vor.u32 1.1754944e-38, %v436_v39  ;;  %vm435_vm11 = vcmp.eq.f32.partialorder %v434_v40, 8.507059e+37 }
 0xbdd   :  { %v685_v34 = vpop.eup %684 }
 0xbde   :  { %v426_v35 = vmul.f32 %v685_v34, %v424_v33  ;;  %vm431_vm8 = vweird.f32 %v685_v34 }
 0xbdf   :  { %vm432_vm10 = vmor %vm430_vm9, %vm431_vm8 }
 0xbe0   :  { %v427_v36 = vsub.f32 1.0, %v426_v35 }
 0xbe2   :  { %v428_v37 = vmul.f32 %v685_v34, %v427_v36 }
 0xbe4   :  { %v429_v38 = vadd.f32 %v685_v34, %v428_v37 }
 0xbe6   :  { %v433_v41 = vsel %vm432_vm10, %v685_v34, %v429_v38 }
 0xbe7   :  { %v438_v44 = vsel %vm435_vm11, %v437_v42, %v433_v41 }
 0xbe8   :  { %v451_v49 = vsub.f32 1.0, %v438_v44  ;;  %v457_v51 = vmul.f32 %v438_v44, %v383_v23 }
 0xc22   :  { %v442_v43 = vpop.permute.xlu2 %441 }
 0xc23   :  { %v444_v45 = vmul.f32 %v442_v43, %v438_v44 }
 0xc25   :  { %446 = vrot.lane.b32.xlu0 %v444_v45, %s702_s20 }
 0xc97   :  { %v447_v46 = vpop.permute.xlu0 %446 }
 0xc98   :  { %v449_v47 = vadd.f32 %v631_v28, %v447_v46 }
 0xc9a   :  { %686 = vtanh.f32 %v449_v47 }
 0xca0   :  { %v687_v48 = vpop.eup %686 }
 0xca1   :  { %453 = vrot.lane.b32.xlu1 %v687_v48, %s703_s21 }
 0xd13   :  { %v454_v50 = vpop.permute.xlu1 %453 }
 0xd14   :  { %v456_v52 = vmul.f32 %v454_v50, %v451_v49 }
 0xd16   :  { %v458_v53 = vadd.f32 %v457_v51, %v456_v52 }
 0xd18   :  { %460 = vrot.lane.b32.xlu2 %v458_v53, %s703_s21 }
 0xd72   :  { %v461_v54 = vpop.permute.xlu2 %460 }
 0xd73   :  { %633 = vst.msk [vmem:[%s852_s3 + $0xa] sm:$0x3] %vm88_vm4, %v461_v54  ;;  %635 = vmatmul.msk.f32.vlgmr.msrb.gmra.mxu2 %vm21_vm5, %v461_v54 }
 0xdf6   :  { %v492_v56 = vpop.f32.mrf.mxu2 }
 0xdf7   :  { %v493_v57 = vadd.f32 %v650_v55, %v492_v56 }
 0xdf9   :  { %516 = vrot.lane.b32.xlu0 %v493_v57, %s701_s17  ;;  %v495_v59 = vadd.f32 %v634_v58, %v493_v57 }
 0xdfb   :  { %v496_v60 = vsub.f32 0.0, %v495_v59 }
 0xdfd   :  { %v497_v61 = vmul.f32 1.442695, %v496_v60 }
 0xdff   :  { %688 = vpow2.f32 %v497_v61 }
 0xe05   :  { %v689_v62 = vpop.eup %688 }
 0xe06   :  { %v499_v63 = vadd.f32 1.0, %v689_v62 }
 0xe08   :  { %690 = vrcp.f32 %v499_v63  ;;  %v511_v5 = vand.u32 2147483648, %v499_v63  ;;  %vm505_vm13 = vweird.f32 %v499_v63  ;;  %v509_v6 = vand.u32 2147483647, %v499_v63 }
 0xe0a   :  { %v512_v8 = vor.u32 1.1754944e-38, %v511_v5  ;;  %vm510_vm15 = vcmp.eq.f32.partialorder %v509_v6, 8.507059e+37 }
 0xe0e   :  { %v691_v0 = vpop.eup %690 }
 0xe0f   :  { %v501_v1 = vmul.f32 %v691_v0, %v499_v63  ;;  %vm506_vm12 = vweird.f32 %v691_v0 }
 0xe10   :  { %vm507_vm14 = vmor %vm505_vm13, %vm506_vm12 }
 0xe11   :  { %v502_v2 = vsub.f32 1.0, %v501_v1 }
 0xe13   :  { %v503_v3 = vmul.f32 %v691_v0, %v502_v2 }
 0xe15   :  { %v504_v4 = vadd.f32 %v691_v0, %v503_v3 }
 0xe17   :  { %v508_v7 = vsel %vm507_vm14, %v691_v0, %v504_v4 }
 0xe18   :  { %v513_v10 = vsel %vm510_vm15, %v512_v8, %v508_v7 }
 0xe19   :  { %v526_v15 = vsub.f32 1.0, %v513_v10  ;;  %v532_v17 = vmul.f32 %v513_v10, %v458_v53 }
 0xe6b   :  { %v517_v9 = vpop.permute.xlu0 %516 }
 0xe6c   :  { %v519_v11 = vmul.f32 %v517_v9, %v513_v10 }
 0xe6e   :  { %521 = vrot.lane.b32.xlu1 %v519_v11, %s702_s20 }
 0xee0   :  { %v522_v12 = vpop.permute.xlu1 %521 }
 0xee1   :  { %v524_v13 = vadd.f32 %v634_v58, %v522_v12 }
 0xee3   :  { %692 = vtanh.f32 %v524_v13 }
 0xee9   :  { %v693_v14 = vpop.eup %692 }
 0xeea   :  { %528 = vrot.lane.b32.xlu2 %v693_v14, %s703_s21 }
 0xf44   :  { %v529_v16 = vpop.permute.xlu2 %528 }
 0xf45   :  { %v531_v18 = vmul.f32 %v529_v16, %v526_v15 }
 0xf47   :  { %v533_v19 = vadd.f32 %v532_v17, %v531_v18 }
 0xf49   :  { %535 = vrot.lane.b32.xlu0 %v533_v19, %s703_s21 }
 0xfbb   :  { %v536_v20 = vpop.permute.xlu0 %535 }
 0xfbc   :  { %636 = vst.msk [vmem:[%s852_s3 + $0xc] sm:$0x3] %vm88_vm4, %v536_v20  ;;  %638 = vmatmul.msk.f32.vlgmr.msrb.gmra.mxu3 %vm21_vm5, %v536_v20 }
0x103f   :  { %v567_v22 = vpop.f32.mrf.mxu3 }
0x1040   :  { %v568_v23 = vadd.f32 %v651_v21, %v567_v22 }
0x1042   :  { %591 = vrot.lane.b32.xlu1 %v568_v23, %s701_s17  ;;  %v570_v25 = vadd.f32 %v637_v24, %v568_v23 }
0x1044   :  { %v571_v26 = vsub.f32 0.0, %v570_v25 }
0x1046   :  { %v572_v27 = vmul.f32 1.442695, %v571_v26 }
0x1048   :  { %694 = vpow2.f32 %v572_v27 }
0x104e   :  { %v695_v28 = vpop.eup %694 }
0x104f   :  { %v574_v29 = vadd.f32 1.0, %v695_v28 }
0x1051   :  { %696 = vrcp.f32 %v574_v29  ;;  %v586_v35 = vand.u32 2147483648, %v574_v29  ;;  %vm580_vm0 = vweird.f32 %v574_v29  ;;  %v584_v36 = vand.u32 2147483647, %v574_v29 }
0x1053   :  { %v587_v38 = vor.u32 1.1754944e-38, %v586_v35  ;;  %vm585_vm2 = vcmp.eq.f32.partialorder %v584_v36, 8.507059e+37 }
0x1057   :  { %v697_v30 = vpop.eup %696 }
0x1058   :  { %v576_v31 = vmul.f32 %v697_v30, %v574_v29  ;;  %vm581_vm5 = vweird.f32 %v697_v30 }
0x1059   :  { %vm582_vm1 = vmor %vm580_vm0, %vm581_vm5 }
0x105a   :  { %v577_v32 = vsub.f32 1.0, %v576_v31 }
0x105c   :  { %v578_v33 = vmul.f32 %v697_v30, %v577_v32 }
0x105e   :  { %v579_v34 = vadd.f32 %v697_v30, %v578_v33 }
0x1060   :  { %v583_v37 = vsel %vm582_vm1, %v697_v30, %v579_v34 }
0x1061   :  { %v588_v40 = vsel %vm585_vm2, %v587_v38, %v583_v37 }
0x1062   :  { %v601_v45 = vsub.f32 1.0, %v588_v40  ;;  %v607_v47 = vmul.f32 %v588_v40, %v533_v19 }
0x10b4   :  { %v592_v39 = vpop.permute.xlu1 %591 }
0x10b5   :  { %v594_v41 = vmul.f32 %v592_v39, %v588_v40 }
0x10b7   :  { %596 = vrot.lane.b32.xlu2 %v594_v41, %s702_s20 }
0x1111   :  { %v597_v42 = vpop.permute.xlu2 %596 }
0x1112   :  { %v599_v43 = vadd.f32 %v637_v24, %v597_v42 }
0x1114   :  { %698 = vtanh.f32 %v599_v43 }
0x111a   :  { %v699_v44 = vpop.eup %698 }
0x111b   :  { %603 = vrot.lane.b32.xlu0 %v699_v44, %s703_s21 }
0x118d   :  { %v604_v46 = vpop.permute.xlu0 %603 }
0x118e   :  { %v606_v48 = vmul.f32 %v604_v46, %v601_v45 }
0x1190   :  { %v608_v49 = vadd.f32 %v607_v47, %v606_v48 }
0x1192   :  { %610 = vrot.lane.b32.xlu1 %v608_v49, %s703_s21 }
0x1204   :  { %v611_v50 = vpop.permute.xlu1 %610 }
0x1205   :  { %639 = vst.msk [vmem:[%s852_s3 + $0xe] sm:$0x3] %vm88_vm4, %v611_v50 }

</bundles_post_ra>
